<compile_context>
chip_gen: v6e
topology: v6e:2x2x1
jax: 0.10.0
libtpu: 0.0.40
codegen_flags: <defaults>
</compile_context>

<pallas_src>
import functools

import jax
import jax.numpy as jnp
from jax import lax
from jax.experimental import pallas as pl
from jax.experimental.pallas import tpu as pltpu


# -----------------------------------------------------------------------------
# Pallas kernel: fused token-embedding gather + positional-embedding add
# -----------------------------------------------------------------------------
def _embed_kernel(tok_ids_ref, pos_ids_ref, tok_tab_ref, pos_tab_ref, out_ref):
    tm = out_ref.shape[0]
    vocab = tok_tab_ref.shape[0]
    seq = pos_tab_ref.shape[0]

    tok_ids = tok_ids_ref[...]          # (TM, 1) int32
    pos_ids = pos_ids_ref[...]          # (TM, 1) int32

    one = jnp.float32(1.0)
    zero = jnp.float32(0.0)

    # One-hot rows (exactly one 1.0 per row) built from broadcasted_iota; the
    # subsequent MXU matmul is therefore an exact row gather.
    tok_oh = jnp.where(
        tok_ids == lax.broadcasted_iota(jnp.int32, (tm, vocab), 1), one, zero)
    pos_oh = jnp.where(
        pos_ids == lax.broadcasted_iota(jnp.int32, (tm, seq), 1), one, zero)

    tok = jnp.dot(tok_oh, tok_tab_ref[...],
                  preferred_element_type=jnp.float32,
                  precision=lax.Precision.HIGHEST)
    pos = jnp.dot(pos_oh, pos_tab_ref[...],
                  preferred_element_type=jnp.float32,
                  precision=lax.Precision.HIGHEST)

    # nn.Dropout(p=0.1): identity at inference time.
    out_ref[...] = tok + pos


# -----------------------------------------------------------------------------
# Wrapper
# -----------------------------------------------------------------------------
def _round_up(n, m):
    return ((n + m - 1) // m) * m


def transform_embedding_forward(params, tokens, *, max_tile_rows=128):
    """out[b, s, :] = tok_emb[tokens[b, s]] + pos_emb[s]   (dropout = identity)."""
    tok_tab = params["tok_emb"]                 # (V, D) float32
    pos_tab = params["pos_emb"]                 # (maxlen, D) float32
    B, S = tokens.shape
    V, D = tok_tab.shape
    assert D % 128 == 0, "d_model must be lane-dense (multiple of 128)"
    assert S <= pos_tab.shape[0]

    # Collapse (B, S) into one row axis, tile rows in lane-dense (TM, D) slabs.
    N = B * S
    TM = min(max_tile_rows, _round_up(N, 8))
    N_pad = _round_up(N, TM)

    tok_ids = tokens.reshape(N).astype(jnp.int32)
    pos_ids = jnp.tile(jnp.arange(S, dtype=jnp.int32), B)
    if N_pad != N:
        pad = N_pad - N
        tok_ids = jnp.concatenate([tok_ids, jnp.zeros((pad,), jnp.int32)])
        pos_ids = jnp.concatenate([pos_ids, jnp.zeros((pad,), jnp.int32)])
    tok_ids = tok_ids.reshape(N_pad, 1)
    pos_ids = pos_ids.reshape(N_pad, 1)
    pos_used = pos_tab[:S]                      # (S, D) static slice

    grid = (N_pad // TM,)
    out = pl.pallas_call(
        _embed_kernel,
        out_shape=jax.ShapeDtypeStruct((N_pad, D), jnp.float32),
        grid=grid,
        in_specs=[
            pl.BlockSpec((TM, 1), lambda i: (i, 0)),   # token ids (row tile)
            pl.BlockSpec((TM, 1), lambda i: (i, 0)),   # position ids (row tile)
            pl.BlockSpec((V, D), lambda i: (0, 0)),    # token table (VMEM-resident)
            pl.BlockSpec((S, D), lambda i: (0, 0)),    # positional table
        ],
        out_specs=pl.BlockSpec((TM, D), lambda i: (i, 0)),
        compiler_params=pltpu.CompilerParams(
            dimension_semantics=("parallel",)),
    )(tok_ids, pos_ids, tok_tab, pos_used)
    return out[:N].reshape(B, S, D)


# -----------------------------------------------------------------------------
# Parameter construction (plain JAX glue)
# -----------------------------------------------------------------------------
def sinusoidal_pe(maxlen, d_model):
    # TODO(synk): the reference PositionEmbedding.__init__/forward are not
    # runnable as written (torch.zeros(1,maxlen,d_model,device), requires_grad
    # call, x.shape(1), 0:2/1:2 slices); implementing the intended sin/cos
    # positional encoding instead.
    pos = jnp.arange(maxlen, dtype=jnp.float32)[:, None]
    i2 = jnp.arange(0, d_model, 2, dtype=jnp.float32)
    angle = pos / jnp.power(10000.0, i2 / d_model)
    pe = jnp.zeros((maxlen, d_model), jnp.float32)
    pe = pe.at[:, 0::2].set(jnp.sin(angle))
    pe = pe.at[:, 1::2].set(jnp.cos(angle))
    return pe


def init_params(key, vocab_size, d_model, maxlen):
    tok_emb = jax.random.normal(key, (vocab_size, d_model), jnp.float32) * 0.05
    tok_emb = tok_emb.at[1].set(0.0)            # nn.Embedding(padding_idx=1)
    return {"tok_emb": tok_emb, "pos_emb": sinusoidal_pe(maxlen, d_model)}


# -----------------------------------------------------------------------------
if __name__ == "__main__":
    # Small but TPU-friendly shapes: lane-dense d_model (=128), enough rows
    # (B*S = 256) for two parallel grid steps of 128 rows each.
    B, S, D, V, MAXLEN = 4, 64, 128, 512, 128

    key = jax.random.PRNGKey(0)
    kp, kt = jax.random.split(key)
    params = init_params(kp, V, D, MAXLEN)
    tokens = jax.random.randint(kt, (B, S), 0, V)

    fwd = jax.jit(functools.partial(transform_embedding_forward))
    out = jax.block_until_ready(fwd(params, tokens))

    assert out.shape == (B, S, D), out.shape
    assert bool(jnp.all(jnp.isfinite(out)))

    # Pure-JAX reference: embedding gather + positional add (dropout identity).
    ref = params["tok_emb"][tokens] + params["pos_emb"][None, :S, :]
    max_err = float(jnp.max(jnp.abs(out - ref)))
    assert max_err < 1e-4, f"max abs error vs reference: {max_err}"

    print("KERNEL_OK")
</pallas_src>

<mosaic_0001>
module attributes {stable_mosaic.version = 11 : i64} {
  func.func @_embed_kernel(%arg0: i32, %arg1: memref<128x1xi32, #tpu.memory_space<vmem>>, %arg2: memref<128x1xi32, #tpu.memory_space<vmem>>, %arg3: memref<512x128xf32, #tpu.memory_space<vmem>>, %arg4: memref<64x128xf32, #tpu.memory_space<vmem>>, %arg5: memref<128x128xf32, #tpu.memory_space<vmem>>) attributes {dimension_semantics = [#tpu.dimension_semantics<parallel>], iteration_bounds = array<i64: 2>, scalar_prefetch = 0 : i64, scratch_operands = 0 : i64, tpu.core_type = #tpu.core_type<tc>, window_params = [{transform_indices = @transform_0, window_bounds = array<i64: 128, 1>}, {transform_indices = @transform_1, window_bounds = array<i64: 128, 1>}, {pipeline_mode = #tpu.pipeline_mode<synchronous>, transform_indices = @transform_2, window_bounds = array<i64: 512, 128>}, {pipeline_mode = #tpu.pipeline_mode<synchronous>, transform_indices = @transform_3, window_bounds = array<i64: 64, 128>}, {transform_indices = @transform_4, window_bounds = array<i64: 128, 128>}]} {
    %c0 = arith.constant 0 : index
    %c0_0 = arith.constant 0 : index
    %0 = vector.load %arg1[%c0, %c0_0] : memref<128x1xi32, #tpu.memory_space<vmem>>, vector<128x1xi32>
    %c0_1 = arith.constant 0 : index
    %c0_2 = arith.constant 0 : index
    %1 = vector.load %arg2[%c0_1, %c0_2] : memref<128x1xi32, #tpu.memory_space<vmem>>, vector<128x1xi32>
    %2 = tpu.iota {dimensions = array<i32: 1>} : vector<128x512xi32>
    %3 = vector.broadcast %0 : vector<128x1xi32> to vector<128x512xi32>
    %4 = arith.cmpi eq, %3, %2 : vector<128x512xi32>
    %cst = arith.constant 1.000000e+00 : f32
    %cst_3 = arith.constant 0.000000e+00 : f32
    %5 = vector.broadcast %cst : f32 to vector<128x512xf32>
    %6 = vector.broadcast %cst_3 : f32 to vector<128x512xf32>
    %7 = arith.select %4, %5, %6 : vector<128x512xi1>, vector<128x512xf32>
    %8 = tpu.iota {dimensions = array<i32: 1>} : vector<128x64xi32>
    %9 = vector.broadcast %1 : vector<128x1xi32> to vector<128x64xi32>
    %10 = arith.cmpi eq, %9, %8 : vector<128x64xi32>
    %cst_4 = arith.constant 1.000000e+00 : f32
    %cst_5 = arith.constant 0.000000e+00 : f32
    %11 = vector.broadcast %cst_4 : f32 to vector<128x64xf32>
    %12 = vector.broadcast %cst_5 : f32 to vector<128x64xf32>
    %13 = arith.select %10, %11, %12 : vector<128x64xi1>, vector<128x64xf32>
    %c0_6 = arith.constant 0 : index
    %c0_7 = arith.constant 0 : index
    %14 = vector.load %arg3[%c0_6, %c0_7] : memref<512x128xf32, #tpu.memory_space<vmem>>, vector<512x128xf32>
    %cst_8 = arith.constant dense<0.000000e+00> : vector<128x128xf32>
    %15 = tpu.matmul %7, %14, %cst_8 {dimension_numbers = #tpu.dot_dimension_numbers<[1], [0], [0], [1], [0, 0, 1, 1], [], []>, precision = #tpu.contract_precision<fp32>} : vector<128x512xf32>, vector<512x128xf32>, vector<128x128xf32> -> vector<128x128xf32>
    %c0_9 = arith.constant 0 : index
    %c0_10 = arith.constant 0 : index
    %16 = vector.load %arg4[%c0_9, %c0_10] : memref<64x128xf32, #tpu.memory_space<vmem>>, vector<64x128xf32>
    %cst_11 = arith.constant dense<0.000000e+00> : vector<128x128xf32>
    %17 = tpu.matmul %13, %16, %cst_11 {dimension_numbers = #tpu.dot_dimension_numbers<[1], [0], [0], [1], [0, 0, 1, 1], [], []>, precision = #tpu.contract_precision<fp32>} : vector<128x64xf32>, vector<64x128xf32>, vector<128x128xf32> -> vector<128x128xf32>
    %18 = arith.addf %15, %17 : vector<128x128xf32>
    %c0_12 = arith.constant 0 : index
    %c0_13 = arith.constant 0 : index
    %19 = vector.load %arg5[%c0_12, %c0_13] : memref<128x128xf32, #tpu.memory_space<vmem>>, vector<128x128xf32>
    tpu.vector_store %arg5[%c0_12, %c0_13], %18 {strides = array<i32>} : memref<128x128xf32, #tpu.memory_space<vmem>>, vector<128x128xf32>,
    return
  }
  func.func @transform_0(%arg0: i32) -> (i32, i32) {
    %c0_i32 = arith.constant 0 : i32
    %c0_i32_0 = arith.constant 0 : i32
    return %arg0, %c0_i32 : i32, i32
  }
  func.func @transform_1(%arg0: i32) -> (i32, i32) {
    %c0_i32 = arith.constant 0 : i32
    %c0_i32_0 = arith.constant 0 : i32
    return %arg0, %c0_i32 : i32, i32
  }
  func.func @transform_2(%arg0: i32) -> (i32, i32) {
    %c0_i32 = arith.constant 0 : i32
    %c0_i32_0 = arith.constant 0 : i32
    %c0_i32_1 = arith.constant 0 : i32
    return %c0_i32, %c0_i32_0 : i32, i32
  }
  func.func @transform_3(%arg0: i32) -> (i32, i32) {
    %c0_i32 = arith.constant 0 : i32
    %c0_i32_0 = arith.constant 0 : i32
    %c0_i32_1 = arith.constant 0 : i32
    return %c0_i32, %c0_i32_0 : i32, i32
  }
  func.func @transform_4(%arg0: i32) -> (i32, i32) {
    %c0_i32 = arith.constant 0 : i32
    %c0_i32_0 = arith.constant 0 : i32
    return %arg0, %c0_i32 : i32, i32
  }
}

</mosaic_0001>

<bundles_post_ra>
// kernel: tile.0
= control target key start
LH: loop header
LB: loop body
LE: loop exit
PB: predicated region body
PF: predicated region fallthrough
CT: control target
= control target key end

     0   :  { %s1091_s8 = smov 125   ;;  %s1092_s9 = smov 126   ;;  %vm8_vm0 = vcmask 7168   ;;  %s2190_s0 = inlined_call_operand.vmem [shape: s32[4,64], index: 0, kind: input, shape index: {}]   ;;  %s2191_s1 = inlined_call_operand.vmem [shape: s32[256,1], index: 1, kind: output, shape index: {}]  }
   0x1   :  { %v5_v0 = vld [vmem:[%s2190_s0] sm:$0xf]  ;;  %s1090_s0 = smov 127   ;;  %s1093_s10 = smov 124  }
   0x2   :  { %6 = vst [vmem:[#allocation0] sm:$0xf] %v5_v0  ;;  %s1094_s11 = smov 123   ;;  %s1095_s12 = smov 122  }
   0x3   :  { %s1096_s13 = smov 121   ;;  %s1097_s14 = smov 120  }
   0x4   :  { %s1098_s15 = smov 119   ;;  %s1099_s16 = smov 118  }
   0x5   :  { %s1100_s17 = smov 117   ;;  %s1101_s18 = smov 116  }
   0x6   :  { %s1102_s19 = smov 115   ;;  %s1103_s20 = smov 114  }
   0x7   :  { %s1104_s21 = smov 113   ;;  %s1105_s22 = smov 112  }
   0x8   :  { %s1106_s23 = smov 111   ;;  %s1107_s24 = smov 110  }
   0x9   :  { %v16_v1 = vld [vmem:[#allocation0] sm:$0xf]   ;;  %s1108_s25 = smov 109   ;;  %s1109_s26 = smov 108  }
   0xa   :  { %v40_v2 = vld [vmem:[#allocation0] sm:$0xf]   ;;  %17 = vrot.lane.b32.xlu0 %v16_v1, %s1090_s0  ;;  %s1110_s27 = smov 107   ;;  %s1111_s28 = smov 106  }
   0xb   :  { %41 = vrot.lane.b32.xlu1 %v40_v2, %s1091_s8  ;;  %v28_v3 = vld [vmem:[#allocation0] sm:$0xf]   ;;  %s1112_s29 = smov 105   ;;  %s1113_s30 = smov 104  }
   0xc   :  { %v52_v4 = vld [vmem:[#allocation0] sm:$0xf]   ;;  %s1114_s2 = smov 103   ;;  %s1115_s3 = smov 102  }
   0xd   :  { %v64_v5 = vld [vmem:[#allocation0] sm:$0xf]   ;;  %s1116_s4 = smov 101   ;;  %s1117_s5 = smov 100  }
   0xe   :  { %29 = vrot.lane.b32.xlu0 %v28_v3, %s1092_s9  ;;  %v76_v6 = vld [vmem:[#allocation0] sm:$0xf]   ;;  %s1118_s6 = smov 99   ;;  %s1119_s7 = smov 98  }
   0xf   :  { %53 = vrot.lane.b32.xlu1 %v52_v4, %s1093_s10  ;;  %v88_v7 = vld [vmem:[#allocation0] sm:$0xf]   ;;  %s1120_s0 = smov 97   ;;  %s1121_s8 = smov 96  }
  0x10   :  { %v100_v8 = vld [vmem:[#allocation0] sm:$0xf]   ;;  %s1122_s9 = smov 95   ;;  %s1123_s10 = smov 94  }
  0x11   :  { %v112_v9 = vld [vmem:[#allocation0] sm:$0xf]  }
  0x12   :  { %65 = vrot.lane.b32.xlu0 %v64_v5, %s1094_s11  ;;  %v124_v10 = vld [vmem:[#allocation0] sm:$0xf]   ;;  %s1124_s11 = smov 93  }
  0x13   :  { %77 = vrot.lane.b32.xlu1 %v76_v6, %s1095_s12  ;;  %v136_v11 = vld [vmem:[#allocation0] sm:$0xf]   ;;  %s1125_s12 = smov 92  }
  0x14   :  { %v148_v12 = vld [vmem:[#allocation0] sm:$0xf]  }
  0x15   :  { %v160_v13 = vld [vmem:[#allocation0] sm:$0xf]  }
  0x16   :  { %89 = vrot.lane.b32.xlu0 %v88_v7, %s1096_s13  ;;  %v172_v14 = vld [vmem:[#allocation0] sm:$0xf]   ;;  %s1126_s13 = smov 91  }
  0x17   :  { %101 = vrot.lane.b32.xlu1 %v100_v8, %s1097_s14  ;;  %v184_v15 = vld [vmem:[#allocation0] sm:$0xf]   ;;  %s1127_s14 = smov 90  }
  0x18   :  { %v196_v16 = vld [vmem:[#allocation0] sm:$0xf]  }
  0x19   :  { %v208_v17 = vld [vmem:[#allocation0] sm:$0xf]  }
  0x1a   :  { %113 = vrot.lane.b32.xlu0 %v112_v9, %s1098_s15  ;;  %v220_v18 = vld [vmem:[#allocation0] sm:$0xf]   ;;  %s1128_s15 = smov 89  }
  0x1b   :  { %125 = vrot.lane.b32.xlu1 %v124_v10, %s1099_s16  ;;  %v232_v19 = vld [vmem:[#allocation0] sm:$0xf]   ;;  %s1129_s16 = smov 88  }
  0x1c   :  { %v244_v20 = vld [vmem:[#allocation0] sm:$0xf]  }
  0x1d   :  { %v256_v21 = vld [vmem:[#allocation0] sm:$0xf]  }
  0x1e   :  { %137 = vrot.lane.b32.xlu0 %v136_v11, %s1100_s17  ;;  %v268_v22 = vld [vmem:[#allocation0] sm:$0xf]   ;;  %s1130_s17 = smov 87  }
  0x1f   :  { %149 = vrot.lane.b32.xlu1 %v148_v12, %s1101_s18  ;;  %v280_v23 = vld [vmem:[#allocation0] sm:$0xf]   ;;  %s1131_s18 = smov 86  }
  0x20   :  { %v292_v24 = vld [vmem:[#allocation0] sm:$0xf]  }
  0x21   :  { %v304_v25 = vld [vmem:[#allocation0] sm:$0xf]  }
  0x22   :  { %161 = vrot.lane.b32.xlu0 %v160_v13, %s1102_s19  ;;  %v316_v26 = vld [vmem:[#allocation0] sm:$0xf]   ;;  %s1132_s19 = smov 85  }
  0x23   :  { %173 = vrot.lane.b32.xlu1 %v172_v14, %s1103_s20  ;;  %v328_v27 = vld [vmem:[#allocation0] sm:$0xf]   ;;  %s1133_s20 = smov 84  }
  0x24   :  { %v340_v28 = vld [vmem:[#allocation0] sm:$0xf]  }
  0x25   :  { %v352_v29 = vld [vmem:[#allocation0] sm:$0xf]  }
  0x26   :  { %185 = vrot.lane.b32.xlu0 %v184_v15, %s1104_s21  ;;  %v364_v30 = vld [vmem:[#allocation0] sm:$0xf]   ;;  %s1134_s21 = smov 83  }
  0x27   :  { %197 = vrot.lane.b32.xlu1 %v196_v16, %s1105_s22  ;;  %v376_v31 = vld [vmem:[#allocation0] sm:$0xf]   ;;  %s1135_s22 = smov 82  }
  0x28   :  { %v388_v32 = vld [vmem:[#allocation0] sm:$0xf]  }
  0x29   :  { %v400_v33 = vld [vmem:[#allocation0] sm:$0xf]  }
  0x2a   :  { %209 = vrot.lane.b32.xlu0 %v208_v17, %s1106_s23  ;;  %v412_v34 = vld [vmem:[#allocation0] sm:$0xf]   ;;  %s1136_s23 = smov 81  }
  0x2b   :  { %221 = vrot.lane.b32.xlu1 %v220_v18, %s1107_s24  ;;  %v424_v35 = vld [vmem:[#allocation0] sm:$0xf]   ;;  %s1137_s24 = smov 80  }
  0x2c   :  { %v436_v36 = vld [vmem:[#allocation0] sm:$0xf]  }
  0x2d   :  { %v448_v37 = vld [vmem:[#allocation0] sm:$0xf]  }
  0x2e   :  { %233 = vrot.lane.b32.xlu0 %v232_v19, %s1108_s25  ;;  %v460_v38 = vld [vmem:[#allocation0] sm:$0xf]   ;;  %s1138_s25 = smov 79  }
  0x2f   :  { %245 = vrot.lane.b32.xlu1 %v244_v20, %s1109_s26  ;;  %v472_v39 = vld [vmem:[#allocation0] sm:$0xf]   ;;  %s1139_s26 = smov 78  }
  0x30   :  { %v484_v40 = vld [vmem:[#allocation0] sm:$0xf]  }
  0x31   :  { %v496_v41 = vld [vmem:[#allocation0] sm:$0xf]  }
  0x32   :  { %257 = vrot.lane.b32.xlu0 %v256_v21, %s1110_s27  ;;  %v508_v42 = vld [vmem:[#allocation0] sm:$0xf]   ;;  %s1140_s27 = smov 77  }
  0x33   :  { %269 = vrot.lane.b32.xlu1 %v268_v22, %s1111_s28  ;;  %v520_v43 = vld [vmem:[#allocation0] sm:$0xf]   ;;  %s1141_s28 = smov 76  }
  0x34   :  { %v532_v44 = vld [vmem:[#allocation0] sm:$0xf]  }
  0x35   :  { %v544_v45 = vld [vmem:[#allocation0] sm:$0xf]  }
  0x36   :  { %281 = vrot.lane.b32.xlu0 %v280_v23, %s1112_s29  ;;  %v556_v46 = vld [vmem:[#allocation0] sm:$0xf]   ;;  %s1142_s29 = smov 75  }
  0x37   :  { %293 = vrot.lane.b32.xlu1 %v292_v24, %s1113_s30  ;;  %v568_v47 = vld [vmem:[#allocation0] sm:$0xf]   ;;  %s1143_s30 = smov 74  }
  0x38   :  { %v580_v48 = vld [vmem:[#allocation0] sm:$0xf]  }
  0x39   :  { %v592_v49 = vld [vmem:[#allocation0] sm:$0xf]  }
  0x3a   :  { %305 = vrot.lane.b32.xlu0 %v304_v25, %s1114_s2  ;;  %v604_v50 = vld [vmem:[#allocation0] sm:$0xf]   ;;  %s1144_s2 = smov 73  }
  0x3b   :  { %317 = vrot.lane.b32.xlu1 %v316_v26, %s1115_s3  ;;  %v616_v51 = vld [vmem:[#allocation0] sm:$0xf]   ;;  %s1145_s3 = smov 72  }
  0x3c   :  { %v628_v52 = vld [vmem:[#allocation0] sm:$0xf]  }
  0x3d   :  { %v640_v53 = vld [vmem:[#allocation0] sm:$0xf]  }
  0x3e   :  { %329 = vrot.lane.b32.xlu0 %v328_v27, %s1116_s4  ;;  %v652_v54 = vld [vmem:[#allocation0] sm:$0xf]  }
  0x3f   :  { %341 = vrot.lane.b32.xlu1 %v340_v28, %s1117_s5  ;;  %v664_v55 = vld [vmem:[#allocation0] sm:$0xf]  }
  0x40   :  { %v676_v56 = vld [vmem:[#allocation0] sm:$0xf]  }
  0x41   :  { %v688_v57 = vld [vmem:[#allocation0] sm:$0xf]  }
  0x42   :  { %353 = vrot.lane.b32.xlu0 %v352_v29, %s1118_s6  ;;  %v700_v58 = vld [vmem:[#allocation0] sm:$0xf]   ;;  %s1152_s6 = smov 65  }
  0x43   :  { %365 = vrot.lane.b32.xlu1 %v364_v30, %s1119_s7  ;;  %v7_v59 = vld [vmem:[#allocation0] sm:$0xf]  }
  0x44   :  { %9 = vst.msk [vmem:[%s2191_s1] sm:$0x1] %vm8_vm0, %v7_v59   ;;  %772 = vst.msk [vmem:[%s2191_s1 + $0x3f] sm:$0x2] %vm8_vm0, %v7_v59   ;;  %v712_v60 = vld [vmem:[#allocation0] sm:$0xf]  }
  0x45   :  { %773 = vst.msk [vmem:[%s2191_s1 + $0x7e] sm:$0x4] %vm8_vm0, %v7_v59   ;;  %774 = vst.msk [vmem:[%s2191_s1 + $0xbd] sm:$0x8] %vm8_vm0, %v7_v59   ;;  %v724_v61 = vld [vmem:[#allocation0] sm:$0xf]  }
  0x46   :  { %377 = vrot.lane.b32.xlu0 %v376_v31, %s1120_s0  ;;  %v736_v0 = vld [vmem:[#allocation0] sm:$0xf]  }
  0x47   :  { %389 = vrot.lane.b32.xlu1 %v388_v32, %s1121_s8  ;;  %v748_v1 = vld [vmem:[#allocation0] sm:$0xf]  }
  0x48   :  { %v760_v4 = vld [vmem:[#allocation0] sm:$0xf]  }
  0x4a   :  { %401 = vrot.lane.b32.xlu0 %v400_v33, %s1122_s9 }
  0x4b   :  { %413 = vrot.lane.b32.xlu1 %v412_v34, %s1123_s10 }
  0x4e   :  { %425 = vrot.lane.b32.xlu0 %v424_v35, %s1124_s11  ;;  %s1146_s11 = smov 71  }
  0x4f   :  { %437 = vrot.lane.b32.xlu1 %v436_v36, %s1125_s12  ;;  %s1147_s12 = smov 70  }
  0x52   :  { %449 = vrot.lane.b32.xlu0 %v448_v37, %s1126_s13 }
  0x53   :  { %461 = vrot.lane.b32.xlu1 %v460_v38, %s1127_s14 }
  0x56   :  { %473 = vrot.lane.b32.xlu0 %v472_v39, %s1128_s15 }
  0x57   :  { %485 = vrot.lane.b32.xlu1 %v484_v40, %s1129_s16 }
  0x5a   :  { %497 = vrot.lane.b32.xlu0 %v496_v41, %s1130_s17  ;;  %s1150_s17 = smov 67  }
  0x5b   :  { %509 = vrot.lane.b32.xlu1 %v508_v42, %s1131_s18  ;;  %s1151_s18 = smov 66  }
  0x5e   :  { %521 = vrot.lane.b32.xlu0 %v520_v43, %s1132_s19 }
  0x5f   :  { %533 = vrot.lane.b32.xlu1 %v532_v44, %s1133_s20 }
  0x62   :  { %545 = vrot.lane.b32.xlu0 %v544_v45, %s1134_s21 }
  0x63   :  { %557 = vrot.lane.b32.xlu1 %v556_v46, %s1135_s22 }
  0x66   :  { %569 = vrot.lane.b32.xlu0 %v568_v47, %s1136_s23 }
  0x67   :  { %581 = vrot.lane.b32.xlu1 %v580_v48, %s1137_s24 }
  0x6a   :  { %593 = vrot.lane.b32.xlu0 %v592_v49, %s1138_s25 }
  0x6b   :  { %605 = vrot.lane.b32.xlu1 %v604_v50, %s1139_s26 }
  0x6e   :  { %617 = vrot.lane.b32.xlu0 %v616_v51, %s1140_s27 }
  0x6f   :  { %629 = vrot.lane.b32.xlu1 %v628_v52, %s1141_s28 }
  0x72   :  { %641 = vrot.lane.b32.xlu0 %v640_v53, %s1142_s29  ;;  %s1148_s29 = smov 69  }
  0x73   :  { %653 = vrot.lane.b32.xlu1 %v652_v54, %s1143_s30  ;;  %s1149_s30 = smov 68  }
  0x76   :  { %665 = vrot.lane.b32.xlu0 %v664_v55, %s1144_s2 }
  0x77   :  { %677 = vrot.lane.b32.xlu1 %v676_v56, %s1145_s3 }
  0x7a   :  { %689 = vrot.lane.b32.xlu0 %v688_v57, %s1146_s11 }
  0x7b   :  { %701 = vrot.lane.b32.xlu1 %v700_v58, %s1147_s12 }
  0x7c   :  { %v18_v62 = vpop.permute.xlu0 %17  }
  0x7d   :  { %v42_v63 = vpop.permute.xlu1 %41   ;;  %775 = vst.msk [vmem:[%s2191_s1 + $0x1] sm:$0x1] %vm8_vm0, %v18_v62   ;;  %776 = vst.msk [vmem:[%s2191_s1 + $0x40] sm:$0x2] %vm8_vm0, %v18_v62  }
  0x7e   :  { %777 = vst.msk [vmem:[%s2191_s1 + $0x7f] sm:$0x4] %vm8_vm0, %v18_v62   ;;  %778 = vst.msk [vmem:[%s2191_s1 + $0xbe] sm:$0x8] %vm8_vm0, %v18_v62   ;;  %713 = vrot.lane.b32.xlu0 %v712_v60, %s1148_s29 }
  0x7f   :  { %783 = vst.msk [vmem:[%s2191_s1 + $0x3] sm:$0x1] %vm8_vm0, %v42_v63   ;;  %784 = vst.msk [vmem:[%s2191_s1 + $0x42] sm:$0x2] %vm8_vm0, %v42_v63   ;;  %725 = vrot.lane.b32.xlu1 %v724_v61, %s1149_s30 }
  0x80   :  { %785 = vst.msk [vmem:[%s2191_s1 + $0x81] sm:$0x4] %vm8_vm0, %v42_v63   ;;  %786 = vst.msk [vmem:[%s2191_s1 + $0xc0] sm:$0x8] %vm8_vm0, %v42_v63   ;;  %v30_v2 = vpop.permute.xlu0 %29  }
  0x81   :  { %v54_v3 = vpop.permute.xlu1 %53   ;;  %779 = vst.msk [vmem:[%s2191_s1 + $0x2] sm:$0x1] %vm8_vm0, %v30_v2   ;;  %780 = vst.msk [vmem:[%s2191_s1 + $0x41] sm:$0x2] %vm8_vm0, %v30_v2  }
  0x82   :  { %781 = vst.msk [vmem:[%s2191_s1 + $0x80] sm:$0x4] %vm8_vm0, %v30_v2   ;;  %782 = vst.msk [vmem:[%s2191_s1 + $0xbf] sm:$0x8] %vm8_vm0, %v30_v2   ;;  %737 = vrot.lane.b32.xlu0 %v736_v0, %s1150_s17 }
  0x83   :  { %787 = vst.msk [vmem:[%s2191_s1 + $0x4] sm:$0x1] %vm8_vm0, %v54_v3   ;;  %788 = vst.msk [vmem:[%s2191_s1 + $0x43] sm:$0x2] %vm8_vm0, %v54_v3   ;;  %749 = vrot.lane.b32.xlu1 %v748_v1, %s1151_s18 }
  0x84   :  { %789 = vst.msk [vmem:[%s2191_s1 + $0x82] sm:$0x4] %vm8_vm0, %v54_v3   ;;  %790 = vst.msk [vmem:[%s2191_s1 + $0xc1] sm:$0x8] %vm8_vm0, %v54_v3   ;;  %v66_v5 = vpop.permute.xlu0 %65  }
  0x85   :  { %v78_v6 = vpop.permute.xlu1 %77   ;;  %791 = vst.msk [vmem:[%s2191_s1 + $0x5] sm:$0x1] %vm8_vm0, %v66_v5   ;;  %792 = vst.msk [vmem:[%s2191_s1 + $0x44] sm:$0x2] %vm8_vm0, %v66_v5  }
  0x86   :  { %793 = vst.msk [vmem:[%s2191_s1 + $0x83] sm:$0x4] %vm8_vm0, %v66_v5   ;;  %794 = vst.msk [vmem:[%s2191_s1 + $0xc2] sm:$0x8] %vm8_vm0, %v66_v5   ;;  %761 = vrot.lane.b32.xlu0 %v760_v4, %s1152_s6 }
  0x87   :  { %795 = vst.msk [vmem:[%s2191_s1 + $0x6] sm:$0x1] %vm8_vm0, %v78_v6   ;;  %796 = vst.msk [vmem:[%s2191_s1 + $0x45] sm:$0x2] %vm8_vm0, %v78_v6  }
  0x88   :  { %797 = vst.msk [vmem:[%s2191_s1 + $0x84] sm:$0x4] %vm8_vm0, %v78_v6   ;;  %798 = vst.msk [vmem:[%s2191_s1 + $0xc3] sm:$0x8] %vm8_vm0, %v78_v6   ;;  %v90_v7 = vpop.permute.xlu0 %89  }
  0x89   :  { %v102_v8 = vpop.permute.xlu1 %101   ;;  %799 = vst.msk [vmem:[%s2191_s1 + $0x7] sm:$0x1] %vm8_vm0, %v90_v7   ;;  %800 = vst.msk [vmem:[%s2191_s1 + $0x46] sm:$0x2] %vm8_vm0, %v90_v7  }
  0x8a   :  { %801 = vst.msk [vmem:[%s2191_s1 + $0x85] sm:$0x4] %vm8_vm0, %v90_v7   ;;  %802 = vst.msk [vmem:[%s2191_s1 + $0xc4] sm:$0x8] %vm8_vm0, %v90_v7  }
  0x8b   :  { %803 = vst.msk [vmem:[%s2191_s1 + $0x8] sm:$0x1] %vm8_vm0, %v102_v8   ;;  %804 = vst.msk [vmem:[%s2191_s1 + $0x47] sm:$0x2] %vm8_vm0, %v102_v8  }
  0x8c   :  { %805 = vst.msk [vmem:[%s2191_s1 + $0x86] sm:$0x4] %vm8_vm0, %v102_v8   ;;  %806 = vst.msk [vmem:[%s2191_s1 + $0xc5] sm:$0x8] %vm8_vm0, %v102_v8   ;;  %v114_v9 = vpop.permute.xlu0 %113  }
  0x8d   :  { %v126_v10 = vpop.permute.xlu1 %125   ;;  %807 = vst.msk [vmem:[%s2191_s1 + $0x9] sm:$0x1] %vm8_vm0, %v114_v9   ;;  %808 = vst.msk [vmem:[%s2191_s1 + $0x48] sm:$0x2] %vm8_vm0, %v114_v9  }
  0x8e   :  { %809 = vst.msk [vmem:[%s2191_s1 + $0x87] sm:$0x4] %vm8_vm0, %v114_v9   ;;  %810 = vst.msk [vmem:[%s2191_s1 + $0xc6] sm:$0x8] %vm8_vm0, %v114_v9  }
  0x8f   :  { %811 = vst.msk [vmem:[%s2191_s1 + $0xa] sm:$0x1] %vm8_vm0, %v126_v10   ;;  %812 = vst.msk [vmem:[%s2191_s1 + $0x49] sm:$0x2] %vm8_vm0, %v126_v10  }
  0x90   :  { %813 = vst.msk [vmem:[%s2191_s1 + $0x88] sm:$0x4] %vm8_vm0, %v126_v10   ;;  %814 = vst.msk [vmem:[%s2191_s1 + $0xc7] sm:$0x8] %vm8_vm0, %v126_v10   ;;  %v138_v11 = vpop.permute.xlu0 %137  }
  0x91   :  { %v150_v12 = vpop.permute.xlu1 %149   ;;  %815 = vst.msk [vmem:[%s2191_s1 + $0xb] sm:$0x1] %vm8_vm0, %v138_v11   ;;  %816 = vst.msk [vmem:[%s2191_s1 + $0x4a] sm:$0x2] %vm8_vm0, %v138_v11  }
  0x92   :  { %817 = vst.msk [vmem:[%s2191_s1 + $0x89] sm:$0x4] %vm8_vm0, %v138_v11   ;;  %818 = vst.msk [vmem:[%s2191_s1 + $0xc8] sm:$0x8] %vm8_vm0, %v138_v11  }
  0x93   :  { %819 = vst.msk [vmem:[%s2191_s1 + $0xc] sm:$0x1] %vm8_vm0, %v150_v12   ;;  %820 = vst.msk [vmem:[%s2191_s1 + $0x4b] sm:$0x2] %vm8_vm0, %v150_v12  }
  0x94   :  { %821 = vst.msk [vmem:[%s2191_s1 + $0x8a] sm:$0x4] %vm8_vm0, %v150_v12   ;;  %822 = vst.msk [vmem:[%s2191_s1 + $0xc9] sm:$0x8] %vm8_vm0, %v150_v12   ;;  %v162_v13 = vpop.permute.xlu0 %161  }
  0x95   :  { %v174_v14 = vpop.permute.xlu1 %173   ;;  %823 = vst.msk [vmem:[%s2191_s1 + $0xd] sm:$0x1] %vm8_vm0, %v162_v13   ;;  %824 = vst.msk [vmem:[%s2191_s1 + $0x4c] sm:$0x2] %vm8_vm0, %v162_v13  }
  0x96   :  { %825 = vst.msk [vmem:[%s2191_s1 + $0x8b] sm:$0x4] %vm8_vm0, %v162_v13   ;;  %826 = vst.msk [vmem:[%s2191_s1 + $0xca] sm:$0x8] %vm8_vm0, %v162_v13  }
  0x97   :  { %827 = vst.msk [vmem:[%s2191_s1 + $0xe] sm:$0x1] %vm8_vm0, %v174_v14   ;;  %828 = vst.msk [vmem:[%s2191_s1 + $0x4d] sm:$0x2] %vm8_vm0, %v174_v14  }
  0x98   :  { %829 = vst.msk [vmem:[%s2191_s1 + $0x8c] sm:$0x4] %vm8_vm0, %v174_v14   ;;  %830 = vst.msk [vmem:[%s2191_s1 + $0xcb] sm:$0x8] %vm8_vm0, %v174_v14   ;;  %v186_v15 = vpop.permute.xlu0 %185  }
  0x99   :  { %v198_v16 = vpop.permute.xlu1 %197   ;;  %831 = vst.msk [vmem:[%s2191_s1 + $0xf] sm:$0x1] %vm8_vm0, %v186_v15   ;;  %832 = vst.msk [vmem:[%s2191_s1 + $0x4e] sm:$0x2] %vm8_vm0, %v186_v15  }
  0x9a   :  { %833 = vst.msk [vmem:[%s2191_s1 + $0x8d] sm:$0x4] %vm8_vm0, %v186_v15   ;;  %834 = vst.msk [vmem:[%s2191_s1 + $0xcc] sm:$0x8] %vm8_vm0, %v186_v15  }
  0x9b   :  { %835 = vst.msk [vmem:[%s2191_s1 + $0x10] sm:$0x1] %vm8_vm0, %v198_v16   ;;  %836 = vst.msk [vmem:[%s2191_s1 + $0x4f] sm:$0x2] %vm8_vm0, %v198_v16  }
  0x9c   :  { %837 = vst.msk [vmem:[%s2191_s1 + $0x8e] sm:$0x4] %vm8_vm0, %v198_v16   ;;  %838 = vst.msk [vmem:[%s2191_s1 + $0xcd] sm:$0x8] %vm8_vm0, %v198_v16   ;;  %v210_v17 = vpop.permute.xlu0 %209  }
  0x9d   :  { %v222_v18 = vpop.permute.xlu1 %221   ;;  %839 = vst.msk [vmem:[%s2191_s1 + $0x11] sm:$0x1] %vm8_vm0, %v210_v17   ;;  %840 = vst.msk [vmem:[%s2191_s1 + $0x50] sm:$0x2] %vm8_vm0, %v210_v17  }
  0x9e   :  { %841 = vst.msk [vmem:[%s2191_s1 + $0x8f] sm:$0x4] %vm8_vm0, %v210_v17   ;;  %842 = vst.msk [vmem:[%s2191_s1 + $0xce] sm:$0x8] %vm8_vm0, %v210_v17  }
  0x9f   :  { %843 = vst.msk [vmem:[%s2191_s1 + $0x12] sm:$0x1] %vm8_vm0, %v222_v18   ;;  %844 = vst.msk [vmem:[%s2191_s1 + $0x51] sm:$0x2] %vm8_vm0, %v222_v18  }
  0xa0   :  { %845 = vst.msk [vmem:[%s2191_s1 + $0x90] sm:$0x4] %vm8_vm0, %v222_v18   ;;  %846 = vst.msk [vmem:[%s2191_s1 + $0xcf] sm:$0x8] %vm8_vm0, %v222_v18   ;;  %v234_v19 = vpop.permute.xlu0 %233  }
  0xa1   :  { %v246_v20 = vpop.permute.xlu1 %245   ;;  %847 = vst.msk [vmem:[%s2191_s1 + $0x13] sm:$0x1] %vm8_vm0, %v234_v19   ;;  %848 = vst.msk [vmem:[%s2191_s1 + $0x52] sm:$0x2] %vm8_vm0, %v234_v19  }
  0xa2   :  { %849 = vst.msk [vmem:[%s2191_s1 + $0x91] sm:$0x4] %vm8_vm0, %v234_v19   ;;  %850 = vst.msk [vmem:[%s2191_s1 + $0xd0] sm:$0x8] %vm8_vm0, %v234_v19  }
  0xa3   :  { %851 = vst.msk [vmem:[%s2191_s1 + $0x14] sm:$0x1] %vm8_vm0, %v246_v20   ;;  %852 = vst.msk [vmem:[%s2191_s1 + $0x53] sm:$0x2] %vm8_vm0, %v246_v20  }
  0xa4   :  { %853 = vst.msk [vmem:[%s2191_s1 + $0x92] sm:$0x4] %vm8_vm0, %v246_v20   ;;  %854 = vst.msk [vmem:[%s2191_s1 + $0xd1] sm:$0x8] %vm8_vm0, %v246_v20   ;;  %v258_v21 = vpop.permute.xlu0 %257  }
  0xa5   :  { %v270_v22 = vpop.permute.xlu1 %269   ;;  %855 = vst.msk [vmem:[%s2191_s1 + $0x15] sm:$0x1] %vm8_vm0, %v258_v21   ;;  %856 = vst.msk [vmem:[%s2191_s1 + $0x54] sm:$0x2] %vm8_vm0, %v258_v21  }
  0xa6   :  { %857 = vst.msk [vmem:[%s2191_s1 + $0x93] sm:$0x4] %vm8_vm0, %v258_v21   ;;  %858 = vst.msk [vmem:[%s2191_s1 + $0xd2] sm:$0x8] %vm8_vm0, %v258_v21  }
  0xa7   :  { %859 = vst.msk [vmem:[%s2191_s1 + $0x16] sm:$0x1] %vm8_vm0, %v270_v22   ;;  %860 = vst.msk [vmem:[%s2191_s1 + $0x55] sm:$0x2] %vm8_vm0, %v270_v22  }
  0xa8   :  { %861 = vst.msk [vmem:[%s2191_s1 + $0x94] sm:$0x4] %vm8_vm0, %v270_v22   ;;  %862 = vst.msk [vmem:[%s2191_s1 + $0xd3] sm:$0x8] %vm8_vm0, %v270_v22   ;;  %v282_v23 = vpop.permute.xlu0 %281  }
  0xa9   :  { %v294_v24 = vpop.permute.xlu1 %293   ;;  %863 = vst.msk [vmem:[%s2191_s1 + $0x17] sm:$0x1] %vm8_vm0, %v282_v23   ;;  %864 = vst.msk [vmem:[%s2191_s1 + $0x56] sm:$0x2] %vm8_vm0, %v282_v23  }
  0xaa   :  { %865 = vst.msk [vmem:[%s2191_s1 + $0x95] sm:$0x4] %vm8_vm0, %v282_v23   ;;  %866 = vst.msk [vmem:[%s2191_s1 + $0xd4] sm:$0x8] %vm8_vm0, %v282_v23  }
  0xab   :  { %867 = vst.msk [vmem:[%s2191_s1 + $0x18] sm:$0x1] %vm8_vm0, %v294_v24   ;;  %868 = vst.msk [vmem:[%s2191_s1 + $0x57] sm:$0x2] %vm8_vm0, %v294_v24  }
  0xac   :  { %869 = vst.msk [vmem:[%s2191_s1 + $0x96] sm:$0x4] %vm8_vm0, %v294_v24   ;;  %870 = vst.msk [vmem:[%s2191_s1 + $0xd5] sm:$0x8] %vm8_vm0, %v294_v24   ;;  %v306_v25 = vpop.permute.xlu0 %305  }
  0xad   :  { %v318_v26 = vpop.permute.xlu1 %317   ;;  %871 = vst.msk [vmem:[%s2191_s1 + $0x19] sm:$0x1] %vm8_vm0, %v306_v25   ;;  %872 = vst.msk [vmem:[%s2191_s1 + $0x58] sm:$0x2] %vm8_vm0, %v306_v25  }
  0xae   :  { %873 = vst.msk [vmem:[%s2191_s1 + $0x97] sm:$0x4] %vm8_vm0, %v306_v25   ;;  %874 = vst.msk [vmem:[%s2191_s1 + $0xd6] sm:$0x8] %vm8_vm0, %v306_v25  }
  0xaf   :  { %875 = vst.msk [vmem:[%s2191_s1 + $0x1a] sm:$0x1] %vm8_vm0, %v318_v26   ;;  %876 = vst.msk [vmem:[%s2191_s1 + $0x59] sm:$0x2] %vm8_vm0, %v318_v26  }
  0xb0   :  { %877 = vst.msk [vmem:[%s2191_s1 + $0x98] sm:$0x4] %vm8_vm0, %v318_v26   ;;  %878 = vst.msk [vmem:[%s2191_s1 + $0xd7] sm:$0x8] %vm8_vm0, %v318_v26   ;;  %v330_v27 = vpop.permute.xlu0 %329  }
  0xb1   :  { %v342_v28 = vpop.permute.xlu1 %341   ;;  %879 = vst.msk [vmem:[%s2191_s1 + $0x1b] sm:$0x1] %vm8_vm0, %v330_v27   ;;  %880 = vst.msk [vmem:[%s2191_s1 + $0x5a] sm:$0x2] %vm8_vm0, %v330_v27  }
  0xb2   :  { %881 = vst.msk [vmem:[%s2191_s1 + $0x99] sm:$0x4] %vm8_vm0, %v330_v27   ;;  %882 = vst.msk [vmem:[%s2191_s1 + $0xd8] sm:$0x8] %vm8_vm0, %v330_v27  }
  0xb3   :  { %883 = vst.msk [vmem:[%s2191_s1 + $0x1c] sm:$0x1] %vm8_vm0, %v342_v28   ;;  %884 = vst.msk [vmem:[%s2191_s1 + $0x5b] sm:$0x2] %vm8_vm0, %v342_v28  }
  0xb4   :  { %885 = vst.msk [vmem:[%s2191_s1 + $0x9a] sm:$0x4] %vm8_vm0, %v342_v28   ;;  %886 = vst.msk [vmem:[%s2191_s1 + $0xd9] sm:$0x8] %vm8_vm0, %v342_v28   ;;  %v354_v29 = vpop.permute.xlu0 %353  }
  0xb5   :  { %v366_v30 = vpop.permute.xlu1 %365   ;;  %887 = vst.msk [vmem:[%s2191_s1 + $0x1d] sm:$0x1] %vm8_vm0, %v354_v29   ;;  %888 = vst.msk [vmem:[%s2191_s1 + $0x5c] sm:$0x2] %vm8_vm0, %v354_v29  }
  0xb6   :  { %889 = vst.msk [vmem:[%s2191_s1 + $0x9b] sm:$0x4] %vm8_vm0, %v354_v29   ;;  %890 = vst.msk [vmem:[%s2191_s1 + $0xda] sm:$0x8] %vm8_vm0, %v354_v29  }
  0xb7   :  { %891 = vst.msk [vmem:[%s2191_s1 + $0x1e] sm:$0x1] %vm8_vm0, %v366_v30   ;;  %892 = vst.msk [vmem:[%s2191_s1 + $0x5d] sm:$0x2] %vm8_vm0, %v366_v30  }
  0xb8   :  { %893 = vst.msk [vmem:[%s2191_s1 + $0x9c] sm:$0x4] %vm8_vm0, %v366_v30   ;;  %894 = vst.msk [vmem:[%s2191_s1 + $0xdb] sm:$0x8] %vm8_vm0, %v366_v30   ;;  %v378_v31 = vpop.permute.xlu0 %377  }
  0xb9   :  { %v390_v32 = vpop.permute.xlu1 %389   ;;  %895 = vst.msk [vmem:[%s2191_s1 + $0x1f] sm:$0x1] %vm8_vm0, %v378_v31   ;;  %896 = vst.msk [vmem:[%s2191_s1 + $0x5e] sm:$0x2] %vm8_vm0, %v378_v31  }
  0xba   :  { %897 = vst.msk [vmem:[%s2191_s1 + $0x9d] sm:$0x4] %vm8_vm0, %v378_v31   ;;  %898 = vst.msk [vmem:[%s2191_s1 + $0xdc] sm:$0x8] %vm8_vm0, %v378_v31  }
  0xbb   :  { %899 = vst.msk [vmem:[%s2191_s1 + $0x20] sm:$0x1] %vm8_vm0, %v390_v32   ;;  %900 = vst.msk [vmem:[%s2191_s1 + $0x5f] sm:$0x2] %vm8_vm0, %v390_v32  }
  0xbc   :  { %901 = vst.msk [vmem:[%s2191_s1 + $0x9e] sm:$0x4] %vm8_vm0, %v390_v32   ;;  %902 = vst.msk [vmem:[%s2191_s1 + $0xdd] sm:$0x8] %vm8_vm0, %v390_v32   ;;  %v402_v33 = vpop.permute.xlu0 %401  }
  0xbd   :  { %v414_v34 = vpop.permute.xlu1 %413   ;;  %903 = vst.msk [vmem:[%s2191_s1 + $0x21] sm:$0x1] %vm8_vm0, %v402_v33   ;;  %904 = vst.msk [vmem:[%s2191_s1 + $0x60] sm:$0x2] %vm8_vm0, %v402_v33  }
  0xbe   :  { %905 = vst.msk [vmem:[%s2191_s1 + $0x9f] sm:$0x4] %vm8_vm0, %v402_v33   ;;  %906 = vst.msk [vmem:[%s2191_s1 + $0xde] sm:$0x8] %vm8_vm0, %v402_v33  }
  0xbf   :  { %907 = vst.msk [vmem:[%s2191_s1 + $0x22] sm:$0x1] %vm8_vm0, %v414_v34   ;;  %908 = vst.msk [vmem:[%s2191_s1 + $0x61] sm:$0x2] %vm8_vm0, %v414_v34  }
  0xc0   :  { %909 = vst.msk [vmem:[%s2191_s1 + $0xa0] sm:$0x4] %vm8_vm0, %v414_v34   ;;  %910 = vst.msk [vmem:[%s2191_s1 + $0xdf] sm:$0x8] %vm8_vm0, %v414_v34   ;;  %v426_v35 = vpop.permute.xlu0 %425  }
  0xc1   :  { %v438_v36 = vpop.permute.xlu1 %437   ;;  %911 = vst.msk [vmem:[%s2191_s1 + $0x23] sm:$0x1] %vm8_vm0, %v426_v35   ;;  %912 = vst.msk [vmem:[%s2191_s1 + $0x62] sm:$0x2] %vm8_vm0, %v426_v35  }
  0xc2   :  { %913 = vst.msk [vmem:[%s2191_s1 + $0xa1] sm:$0x4] %vm8_vm0, %v426_v35   ;;  %914 = vst.msk [vmem:[%s2191_s1 + $0xe0] sm:$0x8] %vm8_vm0, %v426_v35  }
  0xc3   :  { %915 = vst.msk [vmem:[%s2191_s1 + $0x24] sm:$0x1] %vm8_vm0, %v438_v36   ;;  %916 = vst.msk [vmem:[%s2191_s1 + $0x63] sm:$0x2] %vm8_vm0, %v438_v36  }
  0xc4   :  { %917 = vst.msk [vmem:[%s2191_s1 + $0xa2] sm:$0x4] %vm8_vm0, %v438_v36   ;;  %918 = vst.msk [vmem:[%s2191_s1 + $0xe1] sm:$0x8] %vm8_vm0, %v438_v36   ;;  %v450_v37 = vpop.permute.xlu0 %449  }
  0xc5   :  { %v462_v38 = vpop.permute.xlu1 %461   ;;  %919 = vst.msk [vmem:[%s2191_s1 + $0x25] sm:$0x1] %vm8_vm0, %v450_v37   ;;  %920 = vst.msk [vmem:[%s2191_s1 + $0x64] sm:$0x2] %vm8_vm0, %v450_v37  }
  0xc6   :  { %921 = vst.msk [vmem:[%s2191_s1 + $0xa3] sm:$0x4] %vm8_vm0, %v450_v37   ;;  %922 = vst.msk [vmem:[%s2191_s1 + $0xe2] sm:$0x8] %vm8_vm0, %v450_v37  }
  0xc7   :  { %923 = vst.msk [vmem:[%s2191_s1 + $0x26] sm:$0x1] %vm8_vm0, %v462_v38   ;;  %924 = vst.msk [vmem:[%s2191_s1 + $0x65] sm:$0x2] %vm8_vm0, %v462_v38  }
  0xc8   :  { %925 = vst.msk [vmem:[%s2191_s1 + $0xa4] sm:$0x4] %vm8_vm0, %v462_v38   ;;  %926 = vst.msk [vmem:[%s2191_s1 + $0xe3] sm:$0x8] %vm8_vm0, %v462_v38   ;;  %v474_v39 = vpop.permute.xlu0 %473  }
  0xc9   :  { %v486_v40 = vpop.permute.xlu1 %485   ;;  %927 = vst.msk [vmem:[%s2191_s1 + $0x27] sm:$0x1] %vm8_vm0, %v474_v39   ;;  %928 = vst.msk [vmem:[%s2191_s1 + $0x66] sm:$0x2] %vm8_vm0, %v474_v39  }
  0xca   :  { %929 = vst.msk [vmem:[%s2191_s1 + $0xa5] sm:$0x4] %vm8_vm0, %v474_v39   ;;  %930 = vst.msk [vmem:[%s2191_s1 + $0xe4] sm:$0x8] %vm8_vm0, %v474_v39  }
  0xcb   :  { %931 = vst.msk [vmem:[%s2191_s1 + $0x28] sm:$0x1] %vm8_vm0, %v486_v40   ;;  %932 = vst.msk [vmem:[%s2191_s1 + $0x67] sm:$0x2] %vm8_vm0, %v486_v40  }
  0xcc   :  { %933 = vst.msk [vmem:[%s2191_s1 + $0xa6] sm:$0x4] %vm8_vm0, %v486_v40   ;;  %934 = vst.msk [vmem:[%s2191_s1 + $0xe5] sm:$0x8] %vm8_vm0, %v486_v40   ;;  %v498_v41 = vpop.permute.xlu0 %497  }
  0xcd   :  { %v510_v42 = vpop.permute.xlu1 %509   ;;  %935 = vst.msk [vmem:[%s2191_s1 + $0x29] sm:$0x1] %vm8_vm0, %v498_v41   ;;  %936 = vst.msk [vmem:[%s2191_s1 + $0x68] sm:$0x2] %vm8_vm0, %v498_v41  }
  0xce   :  { %937 = vst.msk [vmem:[%s2191_s1 + $0xa7] sm:$0x4] %vm8_vm0, %v498_v41   ;;  %938 = vst.msk [vmem:[%s2191_s1 + $0xe6] sm:$0x8] %vm8_vm0, %v498_v41  }
  0xcf   :  { %939 = vst.msk [vmem:[%s2191_s1 + $0x2a] sm:$0x1] %vm8_vm0, %v510_v42   ;;  %940 = vst.msk [vmem:[%s2191_s1 + $0x69] sm:$0x2] %vm8_vm0, %v510_v42  }
  0xd0   :  { %941 = vst.msk [vmem:[%s2191_s1 + $0xa8] sm:$0x4] %vm8_vm0, %v510_v42   ;;  %942 = vst.msk [vmem:[%s2191_s1 + $0xe7] sm:$0x8] %vm8_vm0, %v510_v42   ;;  %v522_v43 = vpop.permute.xlu0 %521  }
  0xd1   :  { %v534_v44 = vpop.permute.xlu1 %533   ;;  %943 = vst.msk [vmem:[%s2191_s1 + $0x2b] sm:$0x1] %vm8_vm0, %v522_v43   ;;  %944 = vst.msk [vmem:[%s2191_s1 + $0x6a] sm:$0x2] %vm8_vm0, %v522_v43  }
  0xd2   :  { %945 = vst.msk [vmem:[%s2191_s1 + $0xa9] sm:$0x4] %vm8_vm0, %v522_v43   ;;  %946 = vst.msk [vmem:[%s2191_s1 + $0xe8] sm:$0x8] %vm8_vm0, %v522_v43  }
  0xd3   :  { %947 = vst.msk [vmem:[%s2191_s1 + $0x2c] sm:$0x1] %vm8_vm0, %v534_v44   ;;  %948 = vst.msk [vmem:[%s2191_s1 + $0x6b] sm:$0x2] %vm8_vm0, %v534_v44  }
  0xd4   :  { %949 = vst.msk [vmem:[%s2191_s1 + $0xaa] sm:$0x4] %vm8_vm0, %v534_v44   ;;  %950 = vst.msk [vmem:[%s2191_s1 + $0xe9] sm:$0x8] %vm8_vm0, %v534_v44   ;;  %v546_v45 = vpop.permute.xlu0 %545  }
  0xd5   :  { %v558_v46 = vpop.permute.xlu1 %557   ;;  %951 = vst.msk [vmem:[%s2191_s1 + $0x2d] sm:$0x1] %vm8_vm0, %v546_v45   ;;  %952 = vst.msk [vmem:[%s2191_s1 + $0x6c] sm:$0x2] %vm8_vm0, %v546_v45  }
  0xd6   :  { %953 = vst.msk [vmem:[%s2191_s1 + $0xab] sm:$0x4] %vm8_vm0, %v546_v45   ;;  %954 = vst.msk [vmem:[%s2191_s1 + $0xea] sm:$0x8] %vm8_vm0, %v546_v45  }
  0xd7   :  { %955 = vst.msk [vmem:[%s2191_s1 + $0x2e] sm:$0x1] %vm8_vm0, %v558_v46   ;;  %956 = vst.msk [vmem:[%s2191_s1 + $0x6d] sm:$0x2] %vm8_vm0, %v558_v46  }
  0xd8   :  { %957 = vst.msk [vmem:[%s2191_s1 + $0xac] sm:$0x4] %vm8_vm0, %v558_v46   ;;  %958 = vst.msk [vmem:[%s2191_s1 + $0xeb] sm:$0x8] %vm8_vm0, %v558_v46   ;;  %v570_v47 = vpop.permute.xlu0 %569  }
  0xd9   :  { %v582_v48 = vpop.permute.xlu1 %581   ;;  %959 = vst.msk [vmem:[%s2191_s1 + $0x2f] sm:$0x1] %vm8_vm0, %v570_v47   ;;  %960 = vst.msk [vmem:[%s2191_s1 + $0x6e] sm:$0x2] %vm8_vm0, %v570_v47  }
  0xda   :  { %961 = vst.msk [vmem:[%s2191_s1 + $0xad] sm:$0x4] %vm8_vm0, %v570_v47   ;;  %962 = vst.msk [vmem:[%s2191_s1 + $0xec] sm:$0x8] %vm8_vm0, %v570_v47  }
  0xdb   :  { %963 = vst.msk [vmem:[%s2191_s1 + $0x30] sm:$0x1] %vm8_vm0, %v582_v48   ;;  %964 = vst.msk [vmem:[%s2191_s1 + $0x6f] sm:$0x2] %vm8_vm0, %v582_v48  }
  0xdc   :  { %965 = vst.msk [vmem:[%s2191_s1 + $0xae] sm:$0x4] %vm8_vm0, %v582_v48   ;;  %966 = vst.msk [vmem:[%s2191_s1 + $0xed] sm:$0x8] %vm8_vm0, %v582_v48   ;;  %v594_v49 = vpop.permute.xlu0 %593  }
  0xdd   :  { %v606_v50 = vpop.permute.xlu1 %605   ;;  %967 = vst.msk [vmem:[%s2191_s1 + $0x31] sm:$0x1] %vm8_vm0, %v594_v49   ;;  %968 = vst.msk [vmem:[%s2191_s1 + $0x70] sm:$0x2] %vm8_vm0, %v594_v49  }
  0xde   :  { %969 = vst.msk [vmem:[%s2191_s1 + $0xaf] sm:$0x4] %vm8_vm0, %v594_v49   ;;  %970 = vst.msk [vmem:[%s2191_s1 + $0xee] sm:$0x8] %vm8_vm0, %v594_v49  }
  0xdf   :  { %971 = vst.msk [vmem:[%s2191_s1 + $0x32] sm:$0x1] %vm8_vm0, %v606_v50   ;;  %972 = vst.msk [vmem:[%s2191_s1 + $0x71] sm:$0x2] %vm8_vm0, %v606_v50  }
  0xe0   :  { %973 = vst.msk [vmem:[%s2191_s1 + $0xb0] sm:$0x4] %vm8_vm0, %v606_v50   ;;  %974 = vst.msk [vmem:[%s2191_s1 + $0xef] sm:$0x8] %vm8_vm0, %v606_v50   ;;  %v618_v51 = vpop.permute.xlu0 %617  }
  0xe1   :  { %v630_v52 = vpop.permute.xlu1 %629   ;;  %975 = vst.msk [vmem:[%s2191_s1 + $0x33] sm:$0x1] %vm8_vm0, %v618_v51   ;;  %976 = vst.msk [vmem:[%s2191_s1 + $0x72] sm:$0x2] %vm8_vm0, %v618_v51  }
  0xe2   :  { %977 = vst.msk [vmem:[%s2191_s1 + $0xb1] sm:$0x4] %vm8_vm0, %v618_v51   ;;  %978 = vst.msk [vmem:[%s2191_s1 + $0xf0] sm:$0x8] %vm8_vm0, %v618_v51  }
  0xe3   :  { %979 = vst.msk [vmem:[%s2191_s1 + $0x34] sm:$0x1] %vm8_vm0, %v630_v52   ;;  %980 = vst.msk [vmem:[%s2191_s1 + $0x73] sm:$0x2] %vm8_vm0, %v630_v52  }
  0xe4   :  { %981 = vst.msk [vmem:[%s2191_s1 + $0xb2] sm:$0x4] %vm8_vm0, %v630_v52   ;;  %982 = vst.msk [vmem:[%s2191_s1 + $0xf1] sm:$0x8] %vm8_vm0, %v630_v52   ;;  %v642_v53 = vpop.permute.xlu0 %641  }
  0xe5   :  { %v654_v54 = vpop.permute.xlu1 %653   ;;  %983 = vst.msk [vmem:[%s2191_s1 + $0x35] sm:$0x1] %vm8_vm0, %v642_v53   ;;  %984 = vst.msk [vmem:[%s2191_s1 + $0x74] sm:$0x2] %vm8_vm0, %v642_v53  }
  0xe6   :  { %985 = vst.msk [vmem:[%s2191_s1 + $0xb3] sm:$0x4] %vm8_vm0, %v642_v53   ;;  %986 = vst.msk [vmem:[%s2191_s1 + $0xf2] sm:$0x8] %vm8_vm0, %v642_v53  }
  0xe7   :  { %987 = vst.msk [vmem:[%s2191_s1 + $0x36] sm:$0x1] %vm8_vm0, %v654_v54   ;;  %988 = vst.msk [vmem:[%s2191_s1 + $0x75] sm:$0x2] %vm8_vm0, %v654_v54  }
  0xe8   :  { %989 = vst.msk [vmem:[%s2191_s1 + $0xb4] sm:$0x4] %vm8_vm0, %v654_v54   ;;  %990 = vst.msk [vmem:[%s2191_s1 + $0xf3] sm:$0x8] %vm8_vm0, %v654_v54   ;;  %v666_v55 = vpop.permute.xlu0 %665  }
  0xe9   :  { %v678_v56 = vpop.permute.xlu1 %677   ;;  %991 = vst.msk [vmem:[%s2191_s1 + $0x37] sm:$0x1] %vm8_vm0, %v666_v55   ;;  %992 = vst.msk [vmem:[%s2191_s1 + $0x76] sm:$0x2] %vm8_vm0, %v666_v55  }
  0xea   :  { %993 = vst.msk [vmem:[%s2191_s1 + $0xb5] sm:$0x4] %vm8_vm0, %v666_v55   ;;  %994 = vst.msk [vmem:[%s2191_s1 + $0xf4] sm:$0x8] %vm8_vm0, %v666_v55  }
  0xeb   :  { %995 = vst.msk [vmem:[%s2191_s1 + $0x38] sm:$0x1] %vm8_vm0, %v678_v56   ;;  %996 = vst.msk [vmem:[%s2191_s1 + $0x77] sm:$0x2] %vm8_vm0, %v678_v56  }
  0xec   :  { %997 = vst.msk [vmem:[%s2191_s1 + $0xb6] sm:$0x4] %vm8_vm0, %v678_v56   ;;  %998 = vst.msk [vmem:[%s2191_s1 + $0xf5] sm:$0x8] %vm8_vm0, %v678_v56   ;;  %v690_v57 = vpop.permute.xlu0 %689  }
  0xed   :  { %v702_v58 = vpop.permute.xlu1 %701   ;;  %999 = vst.msk [vmem:[%s2191_s1 + $0x39] sm:$0x1] %vm8_vm0, %v690_v57   ;;  %1000 = vst.msk [vmem:[%s2191_s1 + $0x78] sm:$0x2] %vm8_vm0, %v690_v57  }
  0xee   :  { %1001 = vst.msk [vmem:[%s2191_s1 + $0xb7] sm:$0x4] %vm8_vm0, %v690_v57   ;;  %1002 = vst.msk [vmem:[%s2191_s1 + $0xf6] sm:$0x8] %vm8_vm0, %v690_v57  }
  0xef   :  { %1003 = vst.msk [vmem:[%s2191_s1 + $0x3a] sm:$0x1] %vm8_vm0, %v702_v58   ;;  %1004 = vst.msk [vmem:[%s2191_s1 + $0x79] sm:$0x2] %vm8_vm0, %v702_v58  }
  0xf0   :  { %1005 = vst.msk [vmem:[%s2191_s1 + $0xb8] sm:$0x4] %vm8_vm0, %v702_v58   ;;  %1006 = vst.msk [vmem:[%s2191_s1 + $0xf7] sm:$0x8] %vm8_vm0, %v702_v58   ;;  %v714_v59 = vpop.permute.xlu0 %713  }
  0xf1   :  { %v726_v60 = vpop.permute.xlu1 %725   ;;  %1007 = vst.msk [vmem:[%s2191_s1 + $0x3b] sm:$0x1] %vm8_vm0, %v714_v59   ;;  %1008 = vst.msk [vmem:[%s2191_s1 + $0x7a] sm:$0x2] %vm8_vm0, %v714_v59  }
  0xf2   :  { %1009 = vst.msk [vmem:[%s2191_s1 + $0xb9] sm:$0x4] %vm8_vm0, %v714_v59   ;;  %1010 = vst.msk [vmem:[%s2191_s1 + $0xf8] sm:$0x8] %vm8_vm0, %v714_v59  }
  0xf3   :  { %1011 = vst.msk [vmem:[%s2191_s1 + $0x3c] sm:$0x1] %vm8_vm0, %v726_v60   ;;  %1012 = vst.msk [vmem:[%s2191_s1 + $0x7b] sm:$0x2] %vm8_vm0, %v726_v60  }
  0xf4   :  { %1013 = vst.msk [vmem:[%s2191_s1 + $0xba] sm:$0x4] %vm8_vm0, %v726_v60   ;;  %1014 = vst.msk [vmem:[%s2191_s1 + $0xf9] sm:$0x8] %vm8_vm0, %v726_v60   ;;  %v738_v61 = vpop.permute.xlu0 %737  }
  0xf5   :  { %v750_v62 = vpop.permute.xlu1 %749   ;;  %1015 = vst.msk [vmem:[%s2191_s1 + $0x3d] sm:$0x1] %vm8_vm0, %v738_v61   ;;  %1016 = vst.msk [vmem:[%s2191_s1 + $0x7c] sm:$0x2] %vm8_vm0, %v738_v61  }
  0xf6   :  { %1017 = vst.msk [vmem:[%s2191_s1 + $0xbb] sm:$0x4] %vm8_vm0, %v738_v61   ;;  %1018 = vst.msk [vmem:[%s2191_s1 + $0xfa] sm:$0x8] %vm8_vm0, %v738_v61  }
  0xf7   :  { %1019 = vst.msk [vmem:[%s2191_s1 + $0x3e] sm:$0x1] %vm8_vm0, %v750_v62   ;;  %1020 = vst.msk [vmem:[%s2191_s1 + $0x7d] sm:$0x2] %vm8_vm0, %v750_v62  }
  0xf8   :  { %1021 = vst.msk [vmem:[%s2191_s1 + $0xbc] sm:$0x4] %vm8_vm0, %v750_v62   ;;  %1022 = vst.msk [vmem:[%s2191_s1 + $0xfb] sm:$0x8] %vm8_vm0, %v750_v62   ;;  %v762_v63 = vpop.permute.xlu0 %761  }
  0xf9   :  { %1023 = vst.msk [vmem:[%s2191_s1 + $0x3f] sm:$0x1] %vm8_vm0, %v762_v63   ;;  %1024 = vst.msk [vmem:[%s2191_s1 + $0x7e] sm:$0x2] %vm8_vm0, %v762_v63  }
  0xfa   :  { %1025 = vst.msk [vmem:[%s2191_s1 + $0xbd] sm:$0x4] %vm8_vm0, %v762_v63   ;;  %1026 = vst.msk [vmem:[%s2191_s1 + $0xfc] sm:$0x8] %vm8_vm0, %v762_v63  }

// kernel: transform_embedding_forward.1
= control target key start
LH: loop header
LB: loop body
LE: loop exit
PB: predicated region body
PF: predicated region fallthrough
CT: control target
= control target key end

     0   :  { %9 = vsyncpa [#allocation3], 0  ;;  %s10949_s0 = inlined_call_operand.vmem [shape: s32[256,1], index: 0, kind: input, shape index: {}]   ;;  %s10950_s1 = inlined_call_operand.vmem [shape: s32[256,1], index: 1, kind: input, shape index: {}]   ;;  %s10951_s2 = inlined_call_operand.vmem [shape: f32[512,128], index: 2, kind: input, shape index: {}]   ;;  %s10952_s3 = inlined_call_operand.vmem [shape: f32[64,128], index: 3, kind: input, shape index: {}]   ;;  %s10953_s4 = inlined_call_operand.hbm [shape: f32[256,128], index: 4, kind: output, shape index: {}]  }
   0x1   :  { %11 = vsyncpa [#allocation3 + $0x1], 0  ;;  %s6679_s15 = smov 0   ;;  %s6681_s16 = smov 0  }
   0x2   :  { %s6683_s17 = smov 0   ;;  %s6685_s18 = smov 0  }
   0x3 LB: > { %s6700_s19 = sadd.s32 4294967295, %s6646_s18   ;;  %s4941_s20 = sadd.s32 4294967294, %s6646_s18   ;;  %s6646_s18 = sphi %s6685_s18, %s12099_s18   ;;  %s6642_s17 = sphi %s6683_s17, %s12098_s17   ;;  %s6638_s16 = sphi %s6681_s16, %s12097_s16   ;;  %s6634_s15 = sphi %s6679_s15, %s12096_s15  }
   0x4   : > { %s6704_s21 = sadd.s32 1, %s6646_s18   ;;  %s118_s22 = sadd.s32 1, %s6642_s17 }
   0x5   : > { %s115_s23 = ssub.s32 %s6646_s18, %s6704_s21  ;;  %p128_p0 = scmp.ne.s32.totalorder %s6642_s17, %s6638_s16 }
   0x6   : > { %p116_p1 = scmp.eq.s32.totalorder %s115_s23, 0  ;;  %p129_p2 = scmp.eq.s32.totalorder %s6700_s19, 1 }
   0x7   : > { %p134_p3 = scmp.ne.s32.totalorder %s6638_s16, %s6634_s15  ;;  %p135_p4 = scmp.eq.s32.totalorder %s4941_s20, 1 }
   0x8   : > { %s6715_s24 = scalar_select %p116_p1, %s6642_s17, %s118_s22  }
   0x9   : > { %p6717_p5 = por %p129_p2, %p128_p0  ;;  %p6721_p6 = por %p135_p4, %p134_p3 }
   0xa   : > { %p4944_p7 = scmp.ge.s32.totalorder %s6646_s18, 1  ;;  %p177_p8 = scmp.lt.s32.totalorder %s6646_s18, 3 }
   0xc   : > { %p178_p9 = pnand %p4944_p7, %p177_p8 }
   0xe   : > { %181 = sbr.rel (%p178_p9) target bundleno = 879 (0x36f), region = 36 }
  0x13   : > { %s4946_s27 = sshll.u32 %s6700_s19, 4  ;;  %v585_v0 = vld [vmem:[%s10952_s3 + $0x38] sm:$0xff]  ;;  %v584_v1 = vld [vmem:[%s10952_s3 + $0x30] sm:$0xff]  ;;  %v583_v2 = vld [vmem:[%s10952_s3 + $0x28] sm:$0xff]  ;;  %v6648_v3 = vmov 0   ;;  %vm586_vm0 = vcmask 523264  }
  0x14   : > { %6585 = vset.pattern.permute.xlu1 %v6648_v3  ;;  %6584 = vset.pattern.permute.xlu0 %v6648_v3  ;;  %p209_p10 = scmp.lt.s32.totalorder %s4946_s27, 31  ;;  %v6737_v4 = vand.u32 4294901760, %v585_v0  ;;  %v6739_v5 = vand.u32 4294901760, %v584_v1  ;;  %v6741_v6 = vand.u32 4294901760, %v583_v2  ;;  %v582_v7 = vld [vmem:[%s10952_s3 + $0x20] sm:$0xff]  ;;  %v581_v8 = vld [vmem:[%s10952_s3 + $0x18] sm:$0xff] }
  0x15   : > { %v6749_v9 = vand.u32 4294901760, %v582_v7  ;;  %v6751_v10 = vand.u32 4294901760, %v581_v8  ;;  %v580_v11 = vld [vmem:[%s10952_s3 + $0x10] sm:$0xff]  ;;  %v579_v16 = vld [vmem:[%s10952_s3 + $0x8] sm:$0xff]  ;;  %v578_v28 = vld [vmem:[%s10952_s3] sm:$0xff]  ;;  %s205_s23 = sand.u32 1, %s6638_s16  }
  0x16   : > { %s12101_s27 = smov (!%p209_p10, %s4946_s27), 31  ;;  %v6759_v12 = vsub.f32 %v585_v0, %v6737_v4  ;;  %v6762_v13 = vsub.f32 %v584_v1, %v6739_v5  ;;  %v6765_v14 = vsub.f32 %v583_v2, %v6741_v6  ;;  %6300 = vmatprep.subr.mxu0 %v6737_v4  ;;  %v6786_v20 = vand.u32 4294901760, %v580_v11  ;;  %s4945_s28 = sshll.u32 %s205_s23, 7 }
  0x17   : > { %v6769_v15 = vsub.f32 %v582_v7, %v6749_v9  ;;  %6301 = vmatpush3.msra.mxu0 %v6737_v4  ;;  %s4947_s22 = sshll.u32 %s12101_s27, 3  ;;  %v6796_v21 = vsub.f32 %v581_v8, %v6751_v10  ;;  %v6809_v27 = vand.u32 4294901760, %v579_v16  ;;  %v6826_v36 = vand.u32 4294901760, %v578_v28  ;;  %s5195_s30 = sshll.u32 %s6700_s19, 11 }
  0x18   : > { %v6777_v17 = vand.u32 4294901760, %v6759_v12  ;;  %v6780_v18 = vand.u32 4294901760, %v6762_v13  ;;  %v6783_v19 = vand.u32 4294901760, %v6765_v14  ;;  %6302 = vmatprep.subr.mxu0 %v6739_v5  ;;  %s6793_s29 = scalar_lea.vmem %s10950_s1, %s4947_s22  ;;  %v6819_v33 = vsub.f32 %v580_v11, %v6786_v20  ;;  %s6881_s8 = scalar_lea.vmem %s10949_s0, %s4947_s22 }
  0x19   : > { %6303 = vmatpush3.msra.mxu0 %v6739_v5  ;;  %v239_v22 = vld [vmem:[%s6793_s29 + $0x10] sm:$0xff]  ;;  %v237_v23 = vld [vmem:[%s6793_s29] sm:$0xff]  ;;  %v6806_v26 = vand.u32 4294901760, %v6769_v15  ;;  %v240_v29 = vld [vmem:[%s6793_s29 + $0x18] sm:$0xff]  ;;  %v6823_v35 = vand.u32 4294901760, %v6796_v21  ;;  %v6831_v38 = vsub.f32 %v579_v16, %v6809_v27  ;;  %v6843_v44 = vsub.f32 %v578_v28, %v6826_v36  ;;  %s10909_s27 = scalar_lea.sflag [#allocation3], %s205_s23 }
  0x1a   : > { %v888_v24 = vsub.f32 %v6759_v12, %v6777_v17  ;;  %v895_v25 = vsub.f32 %v6762_v13, %v6780_v18  ;;  %6304 = vmatprep.subr.mxu0 %v6741_v6  ;;  %441 = vperm.xlu1 %6585, %v239_v22   ;;  %v238_v30 = vld [vmem:[%s6793_s29 + $0x8] sm:$0xff]  ;;  %v902_v32 = vsub.f32 %v6765_v14, %v6783_v19  ;;  %v241_v40 = vld [vmem:[%s6793_s29 + $0x20] sm:$0xff]  ;;  %v6837_v42 = vand.u32 4294901760, %v6819_v33  ;;  %v244_v47 = vld [vmem:[%s6793_s29 + $0x38] sm:$0xff]  ;;  %s6651_s9 = smov [#allocation2]  }
  0x1b   : > { %435 = vperm.xlu0 %6584, %v237_v23   ;;  %6305 = vmatpush3.msra.mxu0 %v6741_v6  ;;  %v909_v37 = vsub.f32 %v6769_v15, %v6806_v26  ;;  %v242_v39 = vld [vmem:[%s6793_s29 + $0x28] sm:$0xff]  ;;  %v916_v43 = vsub.f32 %v6796_v21, %v6823_v35  ;;  %v6847_v46 = vand.u32 4294901760, %v6831_v38  ;;  %v243_v48 = vld [vmem:[%s6793_s29 + $0x30] sm:$0xff]  ;;  %v6856_v51 = vand.u32 4294901760, %v6843_v44  ;;  %v245_v54 = vld [vmem:[%s6793_s29 + $0x40] sm:$0xff]  ;;  %s6590_s10 = sshll.u32 %s6651_s9, 4  ;;  %s6591_s10 = int_to_ptr.vmem [resolvable:$false] %s6590_s10 }
  0x1c   : > { %v889_v31 = vand.u32 4294901760, %v888_v24  ;;  %v896_v34 = vand.u32 4294901760, %v895_v25  ;;  %6306 = vmatprep.subr.mxu0 %v6749_v9  ;;  %v903_v41 = vand.u32 4294901760, %v902_v32  ;;  %v923_v49 = vsub.f32 %v6819_v33, %v6837_v42  ;;  %v246_v53 = vld [vmem:[%s6793_s29 + $0x48] sm:$0xff]  ;;  %v248_v58 = vld [vmem:[%s6793_s29 + $0x58] sm:$0xff]  ;;  %v247_v59 = vld [vmem:[%s6793_s29 + $0x50] sm:$0xff] }
  0x1d   : > { %6307 = vmatpush3.msra.mxu0 %v6749_v9  ;;  %v910_v45 = vand.u32 4294901760, %v909_v37  ;;  %v917_v50 = vand.u32 4294901760, %v916_v43  ;;  %v930_v52 = vsub.f32 %v6831_v38, %v6847_v46  ;;  %v937_v56 = vsub.f32 %v6843_v44, %v6856_v51  ;;  %v250_v61 = vld [vmem:[%s6793_s29 + $0x68] sm:$0xff]  ;;  %v249_v62 = vld [vmem:[%s6793_s29 + $0x60] sm:$0xff]  ;;  %v252_v63 = vld [vmem:[%s6793_s29 + $0x78] sm:$0xff]  ;;  %s6592_s11 = scalar_lea.vmem %s6591_s10, 4096 }
  0x1e   : > { %6340 = vmatprep.subr.mxu1 %v889_v31  ;;  %444 = vperm.xlu1 %6585, %v240_v29   ;;  %v924_v55 = vand.u32 4294901760, %v923_v49  ;;  %v251_v0 = vld [vmem:[%s6793_s29 + $0x70] sm:$0xff]  ;;  %v222_v1 = vld [vmem:[%s6881_s8 + $0x8] sm:$0xff]  ;;  %v221_v2 = vld [vmem:[%s6881_s8] sm:$0xff]  ;;  %s10817_s29 = scalar_lea.vmem [#allocation2], %s4945_s28 }
  0x1f   : > { %438 = vperm.xlu0 %6584, %v238_v30   ;;  %6341 = vmatpush3.msra.mxu1 %v889_v31  ;;  %v931_v57 = vand.u32 4294901760, %v930_v52  ;;  %v938_v60 = vand.u32 4294901760, %v937_v56  ;;  %v224_v3 = vld [vmem:[%s6881_s8 + $0x18] sm:$0xff]  ;;  %v223_v7 = vld [vmem:[%s6881_s8 + $0x10] sm:$0xff]  ;;  %v226_v8 = vld [vmem:[%s6881_s8 + $0x28] sm:$0xff]  ;;  %s4867_s5 = sshll.u32 %s10817_s29, 4  ;;  %s10904_s5 = int_to_ptr.vmem [resolvable:$true] %s4867_s5 }
  0x20   : > { %6308 = vmatprep.subr.mxu0 %v6751_v10  ;;  %6342 = vmatprep.subr.mxu1 %v896_v34  ;;  %v225_v11 = vld [vmem:[%s6881_s8 + $0x20] sm:$0xff]  ;;  %v228_v16 = vld [vmem:[%s6881_s8 + $0x38] sm:$0xff]  ;;  %v227_v22 = vld [vmem:[%s6881_s8 + $0x30] sm:$0xff]  ;;  %s6586_s19 = scalar_lea.vmem %s10904_s5, 2048  ;;  %p6593_p0 = scmp.lt.s32.totalorder %s10904_s5, %s6591_s10 }
  0x21   : > { %6309 = vmatpush3.msra.mxu0 %v6751_v10  ;;  %6343 = vmatpush3.msra.mxu1 %v896_v34  ;;  %v230_v23 = vld [vmem:[%s6881_s8 + $0x48] sm:$0xff]  ;;  %v229_v24 = vld [vmem:[%s6881_s8 + $0x40] sm:$0xff]  ;;  %v232_v25 = vld [vmem:[%s6881_s8 + $0x58] sm:$0xff]  ;;  %v253_v34 = vlaneseq  ;;  %p6587_p11 = scmp.ne.s32.totalorder %s10904_s5, %s6586_s19  ;;  %p6594_p1 = scmp.lt.s32.totalorder %s6592_s11, %s6586_s19 }
  0x22   : > { %6310 = vmatprep.subr.mxu0 %v6786_v20  ;;  %450 = vperm.xlu1 %6585, %v242_v39   ;;  %v231_v28 = vld [vmem:[%s6881_s8 + $0x50] sm:$0xff]  ;;  %v234_v29 = vld [vmem:[%s6881_s8 + $0x68] sm:$0xff]  ;;  %v233_v30 = vld [vmem:[%s6881_s8 + $0x60] sm:$0xff] }
  0x23   : > { %447 = vperm.xlu0 %6584, %v241_v40   ;;  %6344 = vmatprep.subr.mxu1 %v903_v41  ;;  %v236_v31 = vld [vmem:[%s6881_s8 + $0x78] sm:$0xff]  ;;  %v235_v32 = vld [vmem:[%s6881_s8 + $0x70] sm:$0xff]  ;;  %v6899_v37 = vand.u32 127, %v253_v34  ;;  %s10902_s8 = scalar_lea.hbm %s10953_s4, %s5195_s30  ;;  %p6588_p12 = pnand %p6587_p11, %p6717_p5 }
  0x24   : > { %6311 = vmatpush3.msra.mxu0 %v6786_v20  ;;  %6345 = vmatpush3.msra.mxu1 %v903_v41  ;;  %v10962_v41 = vmov 0.0   ;;  %p6595_p2 = por %p6594_p1, %p6593_p0 }
  0x25   : > { %6312 = vmatprep.subr.mxu0 %v6809_v27  ;;  %6346 = vmatprep.subr.mxu1 %v910_v45  ;;  %11325 = vst [vmem:[#allocation5_spill] sm:$0xff] %v6899_v37  ;;  %p6589_p13 = pneg %p6588_p12 }
  0x26   : > { %6313 = vmatpush3.msra.mxu0 %v6809_v27  ;;  %456 = vperm.xlu1 %6585, %v244_v47  }
  0x27   : > { %453 = vperm.xlu0 %6584, %v243_v48   ;;  %6347 = vmatpush3.msra.mxu1 %v910_v45  ;;  %p6596_p3 = pnand %p6595_p2, %p6589_p13 }
  0x28   : > { %6314 = vmatprep.subr.mxu0 %v6826_v36  ;;  %6348 = vmatprep.subr.mxu1 %v917_v50 }
  0x29   : > { %6315 = vmatpush3.msra.mxu0 %v6826_v36  ;;  %6349 = vmatpush3.msra.mxu1 %v917_v50 }
  0x2a   : > { %6380 = vmatprep.subr.mxu0 %v6759_v12  ;;  %462 = vperm.xlu1 %6585, %v246_v53  }
  0x2b   : > { %459 = vperm.xlu0 %6584, %v245_v54   ;;  %6350 = vmatprep.subr.mxu1 %v924_v55 }
  0x2c   : > { %6351 = vmatpush3.msra.mxu1 %v924_v55 }
  0x2d   : > { %6352 = vmatprep.subr.mxu1 %v931_v57 }
  0x2e   : > { %468 = vperm.xlu1 %6585, %v248_v58   ;;  %6353 = vmatpush3.msra.mxu1 %v931_v57 }
  0x2f   : > { %465 = vperm.xlu0 %6584, %v247_v59   ;;  %6354 = vmatprep.subr.mxu1 %v938_v60 }
  0x30   : > { %6355 = vmatpush3.msra.mxu1 %v938_v60 }
  0x31   : > { %6420 = vmatprep.subr.mxu1 %v6737_v4 }
  0x32   : > { %474 = vperm.xlu1 %6585, %v250_v61  }
  0x33   : > { %471 = vperm.xlu0 %6584, %v249_v62  }
  0x36   : > { %480 = vperm.xlu1 %6585, %v252_v63  }
  0x37   : > { %477 = vperm.xlu0 %6584, %v251_v0  }
  0x3a   : > { %262 = vperm.xlu1 %6585, %v222_v1  }
  0x3b   : > { %259 = vperm.xlu0 %6584, %v221_v2  }
  0x3e   : > { %268 = vperm.xlu1 %6585, %v224_v3  }
  0x3f   : > { %265 = vperm.xlu0 %6584, %v223_v7  }
  0x42   : > { %274 = vperm.xlu1 %6585, %v226_v8  }
  0x43   : > { %271 = vperm.xlu0 %6584, %v225_v11  }
  0x46   : > { %280 = vperm.xlu1 %6585, %v228_v16  }
  0x47   : > { %277 = vperm.xlu0 %6584, %v227_v22  }
  0x4a   : > { %286 = vperm.xlu1 %6585, %v230_v23  }
  0x4b   : > { %283 = vperm.xlu0 %6584, %v229_v24  }
  0x4e   : > { %292 = vperm.xlu1 %6585, %v232_v25  }
  0x4f   : > { %289 = vperm.xlu0 %6584, %v231_v28  }
  0x52   : > { %298 = vperm.xlu1 %6585, %v234_v29  }
  0x53   : > { %295 = vperm.xlu0 %6584, %v233_v30  }
  0x56   : > { %304 = vperm.xlu1 %6585, %v236_v31  }
  0x57   : > { %301 = vperm.xlu0 %6584, %v235_v32  }
  0x95   : > { %v442_v39 = vpop.permute.xlu1 %441 }
  0x96   : > { %v436_v40 = vpop.permute.xlu0 %435  ;;  %vm484_vm1 = vcmp.eq.s32.totalorder %v442_v39, %v6899_v37 }
  0x97   : > { %vm482_vm2 = vcmp.eq.s32.totalorder %v436_v40, %v6899_v37  ;;  %v6904_v43 = vsel %vm484_vm1, 1.0, %v10962_v41 }
  0x98   : > { %v6907_v45 = vsel %vm482_vm2, 1.0, %v10962_v41  ;;  %v594_v47 = vsel %vm586_vm0, %v6904_v43, 0 }
  0x99   : > { %6356 = vmatprep.mubr.msk.f32.mxu1 %vm586_vm0, %v6907_v45  ;;  %v588_v48 = vsel %vm586_vm0, %v6907_v45, 0  ;;  %v6915_v49 = vsub.f32 %v594_v47, %v594_v47  ;;  %v445_v50 = vpop.permute.xlu1 %444 }
  0x9a   : > { %v439_v52 = vpop.permute.xlu0 %438  ;;  %v6917_v53 = vsub.f32 %v588_v48, %v588_v48  ;;  %vm485_vm3 = vcmp.eq.s32.totalorder %v445_v50, %v6899_v37 }
  0x9b   : > { %vm483_vm4 = vcmp.eq.s32.totalorder %v439_v52, %v6899_v37  ;;  %v6922_v54 = vsel %vm485_vm3, 1.0, %v10962_v41  ;;  %v730_v59 = vand.u32 4294901760, %v6915_v49 }
  0x9c   : > { %v6925_v55 = vsel %vm483_vm4, 1.0, %v10962_v41  ;;  %v710_v56 = vand.u32 4294901760, %v6917_v53  ;;  %v597_v57 = vsel %vm586_vm0, %v6922_v54, 0 }
  0x9d   : > { %v591_v58 = vsel %vm586_vm0, %v6925_v55, 0  ;;  %6357 = vmatmul.mubr.msk.f32.vlgmr.msra.gmra.mxu1 %vm586_vm0, %v6925_v55  ;;  %v6935_v60 = vsub.f32 %v597_v57, %v597_v57  ;;  %v451_v62 = vpop.permute.xlu1 %450  ;;  %v731_v16 = vsub.f32 %v6915_v49, %v730_v59 }
  0x9e   : > { %v6937_v61 = vsub.f32 %v591_v58, %v591_v58  ;;  %6359 = vmatprep.mubr.msk.f32.mxu1 %vm586_vm0, %v6904_v43  ;;  %v448_v63 = vpop.permute.xlu0 %447  ;;  %v711_v0 = vsub.f32 %v6917_v53, %v710_v56  ;;  %vm487_vm5 = vcmp.eq.s32.totalorder %v451_v62, %v6899_v37  ;;  %6421 = vmatpush3.msra.mxu1 %v6737_v4 }
  0x9f   : > { %vm486_vm6 = vcmp.eq.s32.totalorder %v448_v63, %v6899_v37  ;;  %v6948_v1 = vsel %vm487_vm5, 1.0, %v10962_v41  ;;  %6422 = vmatprep.subr.mxu1 %v6739_v5  ;;  %v10960_v22 = vand.u32 4294901760, %v6935_v60  ;;  %v732_v48 = vand.u32 4294901760, %v731_v16 }
  0xa0   : > { %v6951_v2 = vsel %vm486_vm6, 1.0, %v10962_v41  ;;  %v712_v3 = vand.u32 4294901760, %v711_v0  ;;  %v720_v7 = vand.u32 4294901760, %v6937_v61  ;;  %v603_v8 = vsel %vm586_vm0, %v6948_v1, 0  ;;  %6423 = vmatpush3.msra.mxu1 %v6739_v5 }
  0xa1   : > { %v600_v11 = vsel %vm586_vm0, %v6951_v2, 0  ;;  %6360 = vmatmul.mubr.msk.f32.gmra.mxu1 %vm586_vm0, %v6922_v54  ;;  %v6965_v23 = vsub.f32 %v603_v8, %v603_v8  ;;  %v457_v25 = vpop.permute.xlu1 %456  ;;  %v741_v30 = vsub.f32 %v6935_v60, %v10960_v22  ;;  %6424 = vmatprep.subr.mxu1 %v6741_v6 }
  0xa2   : > { %v6967_v24 = vsub.f32 %v600_v11, %v600_v11  ;;  %6316 = vmatprep.mubr.f32.mxu0 %v712_v3  ;;  %6362 = vmatprep.mubr.msk.f32.mxu1 %vm586_vm0, %v6951_v2  ;;  %v454_v28 = vpop.permute.xlu0 %453  ;;  %v721_v29 = vsub.f32 %v6937_v61, %v720_v7  ;;  %vm489_vm7 = vcmp.eq.s32.totalorder %v457_v25, %v6899_v37 }
  0xa3   : > { %vm488_vm8 = vcmp.eq.s32.totalorder %v454_v28, %v6899_v37  ;;  %v6981_v31 = vsel %vm489_vm7, 1.0, %v10962_v41  ;;  %v10956_v50 = vand.u32 4294901760, %v6965_v23  ;;  %v742_v0 = vand.u32 4294901760, %v741_v30  ;;  %6425 = vmatpush3.msra.mxu1 %v6741_v6 }
  0xa4   : > { %v6984_v32 = vsel %vm488_vm8, 1.0, %v10962_v41  ;;  %v722_v34 = vand.u32 4294901760, %v721_v29  ;;  %v10959_v39 = vand.u32 4294901760, %v6967_v24  ;;  %v609_v40 = vsel %vm586_vm0, %v6981_v31, 0  ;;  %6426 = vmatprep.subr.mxu1 %v6749_v9 }
  0xa5   : > { %v606_v47 = vsel %vm586_vm0, %v6984_v32, 0  ;;  %6363 = vmatmul.mubr.msk.f32.gmra.mxu1 %vm586_vm0, %v6948_v1  ;;  %v6995_v52 = vsub.f32 %v609_v40, %v609_v40  ;;  %v463_v58 = vpop.permute.xlu1 %462  ;;  %v761_v3 = vsub.f32 %v6965_v23, %v10956_v50 }
  0xa6   : > { %v6997_v57 = vsub.f32 %v606_v47, %v606_v47  ;;  %6317 = vmatmul.mubr.f32.vlgmr.msra.gmra.mxu0 %v722_v34  ;;  %6365 = vmatprep.mubr.msk.f32.mxu1 %vm586_vm0, %v6984_v32  ;;  %v460_v62 = vpop.permute.xlu0 %459  ;;  %v751_v63 = vsub.f32 %v6967_v24, %v10959_v39  ;;  %vm491_vm9 = vcmp.eq.s32.totalorder %v463_v58, %v6899_v37 }
  0xa7   : > { %6381 = vmatpush3.msra.mxu0 %v6759_v12  ;;  %vm490_vm10 = vcmp.eq.s32.totalorder %v460_v62, %v6899_v37  ;;  %6319 = vmatprep.mubr.f32.mxu0 %v732_v48  ;;  %v7011_v8 = vsel %vm491_vm9, 1.0, %v10962_v41  ;;  %v10954_v29 = vand.u32 4294901760, %v6995_v52 }
  0xa8   : > { %v7014_v11 = vsel %vm490_vm10, 1.0, %v10962_v41  ;;  %6382 = vmatprep.subr.mxu0 %v6762_v13  ;;  %v752_v16 = vand.u32 4294901760, %v751_v63  ;;  %v10955_v25 = vand.u32 4294901760, %v6997_v57  ;;  %v615_v12 = vsel %vm586_vm0, %v7011_v8, 0  ;;  %6427 = vmatpush3.msra.mxu1 %v6749_v9 }
  0xa9   : > { %v612_v28 = vsel %vm586_vm0, %v7014_v11, 0  ;;  %6366 = vmatmul.mubr.msk.f32.gmra.mxu1 %vm586_vm0, %v6981_v31  ;;  %6383 = vmatpush3.msra.mxu0 %v6762_v13  ;;  %v7027_v30 = vsub.f32 %v615_v12, %v615_v12  ;;  %v469_v40 = vpop.permute.xlu1 %468  ;;  %v762_v13 = vand.u32 4294901760, %v761_v3  ;;  %v781_v58 = vsub.f32 %v6995_v52, %v10954_v29 }
  0xaa   : > { %v7029_v34 = vsub.f32 %v612_v28, %v612_v28  ;;  %6320 = vmatmul.mubr.f32.gmra.mxu0 %v742_v0  ;;  %6368 = vmatprep.mubr.msk.f32.mxu1 %vm586_vm0, %v7014_v11  ;;  %v466_v47 = vpop.permute.xlu0 %465  ;;  %v771_v48 = vsub.f32 %v6997_v57, %v10955_v25  ;;  %vm493_vm11 = vcmp.eq.s32.totalorder %v469_v40, %v6899_v37 }
  0xab   : > { %vm492_vm12 = vcmp.eq.s32.totalorder %v466_v47, %v6899_v37  ;;  %6322 = vmatprep.mubr.f32.mxu0 %v752_v16  ;;  %6384 = vmatprep.subr.mxu0 %v6765_v14  ;;  %v7043_v62 = vsel %vm493_vm11, 1.0, %v10962_v41  ;;  %v10957_v28 = vand.u32 4294901760, %v7027_v30  ;;  %v782_v25 = vand.u32 4294901760, %v781_v58 }
  0xac   : > { %v7046_v63 = vsel %vm492_vm12, 1.0, %v10962_v41  ;;  %6385 = vmatpush3.msra.mxu0 %v6765_v14  ;;  %v772_v0 = vand.u32 4294901760, %v771_v48  ;;  %v10958_v12 = vand.u32 4294901760, %v7029_v34  ;;  %v621_v3 = vsel %vm586_vm0, %v7043_v62, 0  ;;  %6428 = vmatprep.subr.mxu1 %v6751_v10 }
  0xad   : > { %v618_v16 = vsel %vm586_vm0, %v7046_v63, 0  ;;  %6369 = vmatmul.mubr.msk.f32.gmra.mxu1 %vm586_vm0, %v7011_v8  ;;  %6386 = vmatprep.subr.mxu0 %v6769_v15  ;;  %v7059_v40 = vsub.f32 %v621_v3, %v621_v3  ;;  %v475_v47 = vpop.permute.xlu1 %474 }
  0xae   : > { %v7061_v14 = vsub.f32 %v618_v16, %v618_v16  ;;  %6323 = vmatmul.mubr.f32.gmra.mxu0 %v762_v13  ;;  %6371 = vmatprep.mubr.msk.f32.mxu1 %vm586_vm0, %v7046_v63  ;;  %v472_v48 = vpop.permute.xlu0 %471  ;;  %v791_v29 = vsub.f32 %v7029_v34, %v10958_v12  ;;  %vm495_vm13 = vcmp.eq.s32.totalorder %v475_v47, %v6899_v37 }
  0xaf   : > { %vm494_vm14 = vcmp.eq.s32.totalorder %v472_v48, %v6899_v37  ;;  %6325 = vmatprep.mubr.f32.mxu0 %v772_v0  ;;  %6387 = vmatpush3.msra.mxu0 %v6769_v15  ;;  %v801_v13 = vsub.f32 %v7027_v30, %v10957_v28  ;;  %v7075_v3 = vsel %vm495_vm13, 1.0, %v10962_v41  ;;  %v10964_v47 = vand.u32 4294901760, %v7059_v40 }
  0xb0   : > { %v7078_v16 = vsel %vm494_vm14, 1.0, %v10962_v41  ;;  %v792_v50 = vand.u32 4294901760, %v791_v29  ;;  %6388 = vmatprep.subr.mxu0 %v6796_v21  ;;  %v10961_v0 = vand.u32 4294901760, %v7061_v14  ;;  %v627_v15 = vsel %vm586_vm0, %v7075_v3, 0  ;;  %6429 = vmatpush3.msra.mxu1 %v6751_v10 }
  0xb1   : > { %v624_v58 = vsel %vm586_vm0, %v7078_v16, 0  ;;  %6372 = vmatmul.mubr.msk.f32.gmra.mxu1 %vm586_vm0, %v7043_v62  ;;  %v7091_v29 = vsub.f32 %v627_v15, %v627_v15  ;;  %v481_v28 = vpop.permute.xlu1 %480  ;;  %v802_v22 = vand.u32 4294901760, %v801_v13  ;;  %6389 = vmatpush3.msra.mxu0 %v6796_v21 }
  0xb2   : > { %v7093_v48 = vsub.f32 %v624_v58, %v624_v58  ;;  %6326 = vmatmul.mubr.f32.gmra.mxu0 %v782_v25  ;;  %6374 = vmatprep.mubr.msk.f32.mxu1 %vm586_vm0, %v7078_v16  ;;  %v478_v12 = vpop.permute.xlu0 %477  ;;  %v811_v39 = vsub.f32 %v7061_v14, %v10961_v0  ;;  %vm497_vm15 = vcmp.eq.s32.totalorder %v481_v28, %v6899_v37 }
  0xb3   : > { %vm496_vm1 = vcmp.eq.s32.totalorder %v478_v12, %v6899_v37  ;;  %6328 = vmatprep.mubr.f32.mxu0 %v792_v50  ;;  %v821_v25 = vsub.f32 %v7059_v40, %v10964_v47  ;;  %v7107_v15 = vsel %vm497_vm15, 1.0, %v10962_v41  ;;  %6390 = vmatprep.subr.mxu0 %v6819_v33  ;;  %v840_v28 = vand.u32 4294901760, %v7091_v29 }
  0xb4   : > { %v7110_v58 = vsel %vm496_vm1, 1.0, %v10962_v41  ;;  %v812_v0 = vand.u32 4294901760, %v811_v39  ;;  %v830_v50 = vand.u32 4294901760, %v7093_v48  ;;  %v633_v21 = vsel %vm586_vm0, %v7107_v15, 0  ;;  %6430 = vmatprep.subr.mxu1 %v6786_v20  ;;  %6391 = vmatpush3.msra.mxu0 %v6819_v33 }
  0xb5   : > { %v630_v12 = vsel %vm586_vm0, %v7110_v58, 0  ;;  %6375 = vmatmul.mubr.msk.f32.gmra.mxu1 %vm586_vm0, %v7075_v3  ;;  %v7123_v13 = vsub.f32 %v633_v21, %v633_v21  ;;  %v822_v47 = vand.u32 4294901760, %v821_v25  ;;  %6392 = vmatprep.subr.mxu0 %v6831_v38 }
  0xb6   : > { %v7125_v39 = vsub.f32 %v630_v12, %v630_v12  ;;  %6329 = vmatmul.mubr.f32.gmra.mxu0 %v802_v22  ;;  %6377 = vmatprep.mubr.msk.f32.mxu1 %vm586_vm0, %v7110_v58  ;;  %v831_v41 = vsub.f32 %v7093_v48, %v830_v50  ;;  %v841_v22 = vsub.f32 %v7091_v29, %v840_v28 }
  0xb7   : > { %6331 = vmatprep.mubr.f32.mxu0 %v812_v0  ;;  %6431 = vmatpush3.msra.mxu1 %v6786_v20  ;;  %v860_v0 = vand.u32 4294901760, %v7123_v13 }
  0xb8   : > { %6432 = vmatprep.subr.mxu1 %v6809_v27  ;;  %v832_v21 = vand.u32 4294901760, %v831_v41  ;;  %v850_v12 = vand.u32 4294901760, %v7125_v39  ;;  %v842_v41 = vand.u32 4294901760, %v841_v22  ;;  %6393 = vmatpush3.msra.mxu0 %v6831_v38  ;;  %v11326_v38 = vand.u32 4294901760, %v6935_v60 }
  0xb9   : > { %6378 = vmatmul.mubr.msk.f32.gmra.mxu1 %vm586_vm0, %v7107_v15  ;;  %6394 = vmatprep.subr.mxu0 %v6843_v44 }
  0xba   : > { %6332 = vmatmul.mubr.f32.gmra.mxu0 %v822_v47  ;;  %6433 = vmatpush3.msra.mxu1 %v6809_v27  ;;  %v851_v33 = vsub.f32 %v7125_v39, %v850_v12  ;;  %v861_v47 = vsub.f32 %v7123_v13, %v860_v0 }
  0xbb   : > { %6436 = vmatprep.mubr.f32.mxu1 %v710_v56  ;;  %6334 = vmatprep.mubr.f32.mxu0 %v832_v21  ;;  %v543_v21 = vld [vmem:[%s10951_s2 + $0xe8] sm:$0xff] }
  0xbc   : > { %6434 = vmatprep.subr.mxu1 %v6826_v36  ;;  %v852_v25 = vand.u32 4294901760, %v851_v33  ;;  %v862_v56 = vand.u32 4294901760, %v861_v47  ;;  %6395 = vmatpush3.msra.mxu0 %v6843_v44  ;;  %v11328_v44 = vand.u32 4294901760, %v6965_v23  ;;  %v7229_v47 = vand.u32 4294901760, %v543_v21 }
  0xbd   : > { %6435 = vmatpush3.msra.mxu1 %v6826_v36  ;;  %6460 = vmatprep.subr.mxu0 %v6777_v17 }
  0xbe   : > { %6437 = vmatmul.mubr.f32.vlgmr.msra.gmra.mxu1 %v720_v7  ;;  %6335 = vmatmul.mubr.f32.gmra.mxu0 %v842_v41  ;;  %v11327_v7 = vand.u32 4294901760, %v6967_v24  ;;  %v527_v41 = vld [vmem:[%s10951_s2 + $0x68] sm:$0xff]  ;;  %11338 = vst [vmem:[#allocation10_spill] sm:$0xff] %v7229_v47 }
  0xbf   : > { %6439 = vmatprep.mubr.f32.mxu1 %v730_v59  ;;  %6337 = vmatprep.mubr.f32.mxu0 %v852_v25  ;;  %v545_v59 = vld [vmem:[%s10951_s2 + $0xf8] sm:$0xff]  ;;  %v11337_v25 = vand.u32 4294901760, %v7061_v14 }
  0xc0   : > { %6500 = vmatprep.subr.mxu1 %v6737_v4 }
  0xc1   : > { %6501 = vmatpush3.msra.mxu1 %v6737_v4  ;;  %v11329_v4 = vand.u32 4294901760, %v6997_v57 }
  0xc2   : > { %6440 = vmatmul.mubr.f32.gmra.mxu1 %v11326_v38  ;;  %6338 = vmatmul.mubr.f32.gmra.mxu0 %v862_v56  ;;  %v526_v56 = vld [vmem:[%s10951_s2 + $0x60] sm:$0xff] }
  0xc3   : > { %6442 = vmatprep.mubr.f32.mxu1 %v11327_v7  ;;  %6396 = vmatprep.mubr.f32.mxu0 %v6917_v53  ;;  %v11330_v53 = vand.u32 4294901760, %v6995_v52 }
  0xc4   : > { %6502 = vmatprep.subr.mxu1 %v6739_v5 }
  0xc5   : > { %6503 = vmatpush3.msra.mxu1 %v6739_v5  ;;  %v529_v5 = vld [vmem:[%s10951_s2 + $0x78] sm:$0xff] }
  0xc6   : > { %6443 = vmatmul.mubr.f32.gmra.mxu1 %v11328_v44  ;;  %6397 = vmatmul.mubr.f32.vlgmr.msra.gmra.mxu0 %v6937_v61  ;;  %v11332_v61 = vand.u32 4294901760, %v7029_v34  ;;  %v11343_v44 = vand.u32 4294901760, %v7059_v40 }
  0xc7   : > { %6445 = vmatprep.mubr.f32.mxu1 %v11329_v4  ;;  %6461 = vmatpush3.msra.mxu0 %v6777_v17  ;;  %v7190_v17 = vand.u32 4294901760, %v545_v59 }
  0xc8   : > { %6399 = vmatprep.mubr.f32.mxu0 %v6915_v49  ;;  %6462 = vmatprep.subr.mxu0 %v6780_v18  ;;  %v544_v49 = vld [vmem:[%s10951_s2 + $0xf0] sm:$0xff] }
  0xc9   : > { %6463 = vmatpush3.msra.mxu0 %v6780_v18  ;;  %6504 = vmatprep.subr.mxu1 %v6741_v6  ;;  %11331 = vst [vmem:[#allocation6_spill] sm:$0xff] %v7190_v17  ;;  %v528_v18 = vld [vmem:[%s10951_s2 + $0x70] sm:$0xff]  ;;  %v7210_v22 = vand.u32 4294901760, %v544_v49  ;;  %v7216_v33 = vsub.f32 %v545_v59, %v7190_v17  ;;  %v7262_v59 = vsub.f32 %v543_v21, %v7229_v47 }
  0xca   : > { %6446 = vmatmul.mubr.f32.gmra.mxu1 %v11330_v53  ;;  %6400 = vmatmul.mubr.f32.gmra.mxu0 %v6935_v60  ;;  %v7203_v60 = vand.u32 4294901760, %v529_v5  ;;  %v525_v53 = vld [vmem:[%s10951_s2 + $0x58] sm:$0xff] }
  0xcb   : > { %6448 = vmatprep.mubr.f32.mxu1 %v11332_v61  ;;  %6402 = vmatprep.mubr.f32.mxu0 %v6967_v24  ;;  %v11334_v24 = vand.u32 4294901760, %v7027_v30  ;;  %11335 = vst [vmem:[#allocation8_spill] sm:$0xff] %v7216_v33  ;;  %v7242_v38 = vsub.f32 %v544_v49, %v7210_v22  ;;  %11345 = vst [vmem:[#allocation16_spill] sm:$0xff] %v7262_v59  ;;  %v7293_v21 = vand.u32 4294901760, %v525_v53 }
  0xcc   : > { %6464 = vmatprep.subr.mxu0 %v6783_v19  ;;  %6505 = vmatpush3.msra.mxu1 %v6741_v6  ;;  %11333 = vst [vmem:[#allocation7_spill] sm:$0xff] %v7203_v60  ;;  %v7218_v6 = vand.u32 4294901760, %v528_v18 }
  0xcd   : > { %6465 = vmatpush3.msra.mxu0 %v6783_v19  ;;  %6506 = vmatprep.subr.mxu1 %v6749_v9  ;;  %v542_v19 = vld [vmem:[%s10951_s2 + $0xe0] sm:$0xff]  ;;  %11340 = vst [vmem:[#allocation12_spill] sm:$0xff] %v7242_v38 }
  0xce   : > { %6449 = vmatmul.mubr.f32.gmra.mxu1 %v11334_v24  ;;  %6403 = vmatmul.mubr.f32.gmra.mxu0 %v6965_v23  ;;  %11336 = vst [vmem:[#allocation9_spill] sm:$0xff] %v7218_v6  ;;  %v7234_v23 = vsub.f32 %v529_v5, %v7203_v60  ;;  %v7246_v7 = vand.u32 4294901760, %v542_v19  ;;  %v7256_v4 = vsub.f32 %v528_v18, %v7218_v6  ;;  %v7264_v5 = vand.u32 4294901760, %v526_v56  ;;  %v524_v24 = vld [vmem:[%s10951_s2 + $0x50] sm:$0xff] }
  0xcf   : > { %6451 = vmatprep.mubr.f32.mxu1 %v11337_v25  ;;  %6405 = vmatprep.mubr.f32.mxu0 %v6997_v57  ;;  %v7244_v57 = vand.u32 4294901760, %v527_v41 }
  0xd0   : > { %6466 = vmatprep.subr.mxu0 %v6806_v26  ;;  %6507 = vmatpush3.msra.mxu1 %v6749_v9  ;;  %11339 = vst [vmem:[#allocation11_spill] sm:$0xff] %v7234_v23  ;;  %11342 = vst [vmem:[#allocation14_spill] sm:$0xff] %v7246_v7  ;;  %v541_v9 = vld [vmem:[%s10951_s2 + $0xd8] sm:$0xff]  ;;  %v7281_v61 = vsub.f32 %v542_v19, %v7246_v7  ;;  %v10968_v18 = vand.u32 4294901760, %v7256_v4 }
  0xd1   : > { %6467 = vmatpush3.msra.mxu0 %v6806_v26  ;;  %6508 = vmatprep.subr.mxu1 %v6751_v10  ;;  %11341 = vst [vmem:[#allocation13_spill] sm:$0xff] %v7244_v57  ;;  %v10967_v26 = vand.u32 4294901760, %v7216_v33  ;;  %11344 = vst [vmem:[#allocation15_spill] sm:$0xff] %v7256_v4  ;;  %v7272_v49 = vand.u32 4294901760, %v541_v9 }
  0xd2   : > { %6452 = vmatmul.mubr.f32.gmra.mxu1 %v11343_v44  ;;  %6406 = vmatmul.mubr.f32.gmra.mxu0 %v6995_v52  ;;  %v10966_v52 = vand.u32 4294901760, %v7234_v23  ;;  %11348 = vst [vmem:[#allocation19_spill] sm:$0xff] %v7281_v61  ;;  %v7325_v44 = vand.u32 4294901760, %v524_v24 }
  0xd3   : > { %6454 = vmatprep.mubr.f32.mxu1 %v830_v50  ;;  %6408 = vmatprep.mubr.f32.mxu0 %v7029_v34  ;;  %11346 = vst [vmem:[#allocation17_spill] sm:$0xff] %v7272_v49  ;;  %v10965_v34 = vand.u32 4294901760, %v7242_v38  ;;  %v7278_v50 = vsub.f32 %v527_v41, %v7244_v57  ;;  %v539_v41 = vld [vmem:[%s10951_s2 + $0xc8] sm:$0xff] }
  0xd4   : > { %6468 = vmatprep.subr.mxu0 %v6823_v35  ;;  %6509 = vmatpush3.msra.mxu1 %v6751_v10  ;;  %v540_v10 = vld [vmem:[%s10951_s2 + $0xd0] sm:$0xff]  ;;  %v2126_v19 = vsub.f32 %v7234_v23, %v10966_v52  ;;  %11352 = vst [vmem:[#allocation23_spill] sm:$0xff] %v7325_v44  ;;  %v7337_v52 = vsub.f32 %v525_v53, %v7293_v21 }
  0xd5   : > { %6469 = vmatpush3.msra.mxu0 %v6823_v35  ;;  %6510 = vmatprep.subr.mxu1 %v6786_v20  ;;  %11347 = vst [vmem:[#allocation18_spill] sm:$0xff] %v7278_v50  ;;  %v2238_v35 = vsub.f32 %v7216_v33, %v10967_v26  ;;  %v2245_v25 = vsub.f32 %v7242_v38, %v10965_v34  ;;  %v7339_v26 = vand.u32 4294901760, %v539_v41 }
  0xd6   : > { %6455 = vmatmul.mubr.f32.gmra.mxu1 %v840_v28  ;;  %6409 = vmatmul.mubr.f32.gmra.mxu0 %v7027_v30  ;;  %v10969_v28 = vand.u32 4294901760, %v7262_v59  ;;  %v7303_v30 = vsub.f32 %v526_v56, %v7264_v5  ;;  %v2133_v34 = vsub.f32 %v7256_v4, %v10968_v18  ;;  %11353 = vst [vmem:[#allocation24_spill] sm:$0xff] %v7337_v52  ;;  %v2127_v53 = vand.u32 4294901760, %v2126_v19 }
  0xd7   : > { %6457 = vmatprep.mubr.f32.mxu1 %v850_v12  ;;  %6411 = vmatprep.mubr.f32.mxu0 %v7061_v14  ;;  %v7314_v12 = vsub.f32 %v541_v9, %v7272_v49  ;;  %v7316_v14 = vand.u32 4294901760, %v540_v10  ;;  %v523_v9 = vld [vmem:[%s10951_s2 + $0x48] sm:$0xff]  ;;  %11354 = vst [vmem:[#allocation25_spill] sm:$0xff] %v7339_v26  ;;  %v11356_v19 = vand.u32 4294901760, %v7281_v61 }
  0xd8   : > { %11349 = vst [vmem:[#allocation20_spill] sm:$0xff] %v7303_v30  ;;  %6511 = vmatpush3.msra.mxu1 %v6786_v20  ;;  %6470 = vmatprep.subr.mxu0 %v6837_v42  ;;  %v10976_v20 = vand.u32 4294901760, %v7278_v50  ;;  %v7357_v56 = vand.u32 4294901760, %v523_v9  ;;  %v2134_v4 = vand.u32 4294901760, %v2133_v34 }
  0xd9   : > { %11350 = vst [vmem:[#allocation21_spill] sm:$0xff] %v7314_v12  ;;  %11351 = vst [vmem:[#allocation22_spill] sm:$0xff] %v7316_v14  ;;  %6512 = vmatprep.subr.mxu1 %v6809_v27  ;;  %6471 = vmatpush3.msra.mxu0 %v6837_v42  ;;  %v2239_v42 = vand.u32 4294901760, %v2238_v35  ;;  %v538_v35 = vld [vmem:[%s10951_s2 + $0xc0] sm:$0xff]  ;;  %v7355_v18 = vsub.f32 %v540_v10, %v7316_v14 }
  0xda   : > { %6458 = vmatmul.mubr.f32.gmra.mxu1 %v860_v0  ;;  %6412 = vmatmul.mubr.f32.gmra.mxu0 %v7059_v40  ;;  %v2252_v0 = vsub.f32 %v7262_v59, %v10969_v28  ;;  %v522_v28 = vld [vmem:[%s10951_s2 + $0x40] sm:$0xff]  ;;  %v537_v40 = vld [vmem:[%s10951_s2 + $0xb8] sm:$0xff]  ;;  %v2140_v10 = vsub.f32 %v7278_v50, %v10976_v20  ;;  %v7374_v59 = vsub.f32 %v524_v24, %v7325_v44  ;;  %v7382_v38 = vand.u32 4294901760, %v538_v35 }
  0xdb   : > { %6513 = vmatpush3.msra.mxu1 %v6809_v27  ;;  %6516 = vmatprep.mubr.msk.f32.mxu1 %vm586_vm0, %v6907_v45  ;;  %11355 = vst [vmem:[#allocation26_spill] sm:$0xff] %v7355_v18  ;;  %v2259_v27 = vsub.f32 %v7281_v61, %v11356_v19  ;;  %v11359_v24 = vand.u32 4294901760, %v7303_v30  ;;  %v7390_v61 = vand.u32 4294901760, %v522_v28  ;;  %v7392_v34 = vand.u32 4294901760, %v537_v40 }
  0xdc   : > { %6414 = vmatprep.mubr.f32.mxu0 %v7093_v48  ;;  %6514 = vmatprep.subr.mxu1 %v6826_v36  ;;  %v2246_v48 = vand.u32 4294901760, %v2245_v25  ;;  %11357 = vst [vmem:[#allocation27_spill] sm:$0xff] %v7374_v59  ;;  %v7380_v25 = vsub.f32 %v539_v41, %v7339_v26  ;;  %v2253_v19 = vand.u32 4294901760, %v2252_v0  ;;  %v521_v41 = vld [vmem:[%s10951_s2 + $0x38] sm:$0xff]  ;;  %v10985_v0 = vand.u32 4294901760, %v7355_v18 }
  0xdd   : > { %6515 = vmatpush3.msra.mxu1 %v6826_v36  ;;  %6472 = vmatprep.subr.mxu0 %v6847_v46  ;;  %v2147_v20 = vsub.f32 %v7303_v30, %v11359_v24  ;;  %11360 = vst [vmem:[#allocation29_spill] sm:$0xff] %v7392_v34  ;;  %v7403_v36 = vsub.f32 %v523_v9, %v7357_v56  ;;  %v2141_v24 = vand.u32 4294901760, %v2140_v10  ;;  %v2260_v30 = vand.u32 4294901760, %v2259_v27  ;;  %v520_v27 = vld [vmem:[%s10951_s2 + $0x30] sm:$0xff] }
  0xde   : > { %6517 = vmatmul.mubr.msk.f32.vlgmr.msra.gmra.mxu1 %vm586_vm0, %v6925_v55  ;;  %5420 = vmatprep.subr.mxu1 %v2239_v42  ;;  %11358 = vst [vmem:[#allocation28_spill] sm:$0xff] %v7380_v25  ;;  %v2273_v50 = vsub.f32 %v7355_v18, %v10985_v0 }
  0xdf   : > { %6415 = vmatmul.mubr.f32.gmra.mxu0 %v7091_v29  ;;  %6519 = vmatprep.mubr.msk.f32.mxu1 %vm586_vm0, %v6904_v43  ;;  %v11361_v29 = vand.u32 4294901760, %v7314_v12  ;;  %11362 = vst [vmem:[#allocation30_spill] sm:$0xff] %v7403_v36  ;;  %v2148_v10 = vand.u32 4294901760, %v2147_v20 }
  0xe0   : > { %6473 = vmatpush3.msra.mxu0 %v6847_v46  ;;  %5421 = vmatpush3.msra.mxu1 %v2127_v53  ;;  %v536_v46 = vld [vmem:[%s10951_s2 + $0xb0] sm:$0xff]  ;;  %v11363_v53 = vand.u32 4294901760, %v7337_v52 }
  0xe1   : > { %v2266_v42 = vsub.f32 %v7314_v12, %v11361_v29  ;;  %6417 = vmatprep.mubr.f32.mxu0 %v7125_v39  ;;  %5422 = vmatprep.subr.mxu1 %v2246_v48  ;;  %v7416_v39 = vsub.f32 %v538_v35, %v7382_v38  ;;  %v7418_v48 = vand.u32 4294901760, %v521_v41  ;;  %v7432_v35 = vsub.f32 %v537_v40, %v7392_v34 }
  0xe2   : > { %5423 = vmatpush3.msra.mxu1 %v2134_v4  ;;  %6474 = vmatprep.subr.mxu0 %v6856_v51  ;;  %v2154_v29 = vsub.f32 %v7337_v52, %v11363_v53  ;;  %v535_v4 = vld [vmem:[%s10951_s2 + $0xa8] sm:$0xff]  ;;  %v7429_v53 = vsub.f32 %v522_v28, %v7390_v61  ;;  %v11368_v28 = vand.u32 4294901760, %v7374_v59 }
  0xe3   : > { %11364 = vst [vmem:[#allocation31_spill] sm:$0xff] %v7416_v39  ;;  %11365 = vst [vmem:[#allocation32_spill] sm:$0xff] %v7418_v48  ;;  %6520 = vmatmul.mubr.msk.f32.gmra.mxu1 %vm586_vm0, %v6922_v54  ;;  %5424 = vmatprep.subr.mxu1 %v2253_v19  ;;  %v2267_v9 = vand.u32 4294901760, %v2266_v42  ;;  %v7441_v19 = vand.u32 4294901760, %v536_v46  ;;  %v7449_v40 = vand.u32 4294901760, %v535_v4  ;;  %v519_v42 = vld [vmem:[%s10951_s2 + $0x28] sm:$0xff] }
  0xe4   : > { %11366 = vst [vmem:[#allocation33_spill] sm:$0xff] %v7429_v53  ;;  %11367 = vst [vmem:[#allocation34_spill] sm:$0xff] %v7432_v35  ;;  %6418 = vmatmul.mubr.f32.gmra.mxu0 %v7123_v13  ;;  %6522 = vmatprep.mubr.msk.f32.mxu1 %vm586_vm0, %v6951_v2  ;;  %v2161_v20 = vsub.f32 %v7374_v59, %v11368_v28  ;;  %v7447_v13 = vand.u32 4294901760, %v520_v27  ;;  %v2155_v0 = vand.u32 4294901760, %v2154_v29  ;;  %v534_v59 = vld [vmem:[%s10951_s2 + $0xa0] sm:$0xff]  ;;  %v2274_v29 = vand.u32 4294901760, %v2273_v50 }
  0xe5   : > { %6475 = vmatpush3.msra.mxu0 %v6856_v51  ;;  %5425 = vmatpush3.msra.mxu1 %v2141_v24  ;;  %v11370_v51 = vand.u32 4294901760, %v7380_v25  ;;  %v7461_v28 = vsub.f32 %v521_v41, %v7418_v48  ;;  %v7475_v52 = vsub.f32 %v536_v46, %v7441_v19  ;;  %v7492_v46 = vand.u32 4294901760, %v534_v59 }
  0xe6   : > { %11369 = vst [vmem:[#allocation35_spill] sm:$0xff] %v7447_v13  ;;  %6476 = vmatprep.mubr.msk.f32.mxu0 %vm586_vm0, %v6907_v45  ;;  %5426 = vmatprep.subr.mxu1 %v2260_v30  ;;  %v2162_v50 = vand.u32 4294901760, %v2161_v20  ;;  %v533_v30 = vld [vmem:[%s10951_s2 + $0x98] sm:$0xff]  ;;  %v11377_v45 = vand.u32 4294901760, %v7416_v39  ;;  %v11379_v18 = vand.u32 4294901760, %v7432_v35 }
  0xe7   : > { %v2280_v24 = vsub.f32 %v7380_v25, %v11370_v51  ;;  %11371 = vst [vmem:[#allocation36_spill] sm:$0xff] %v7461_v28  ;;  %5427 = vmatpush3.msra.mxu1 %v2148_v10  ;;  %5340 = vmatprep.subr.mxu0 %v7190_v17  ;;  %v11372_v51 = vand.u32 4294901760, %v7403_v36  ;;  %11373 = vst [vmem:[#allocation37_spill] sm:$0xff] %v7475_v52  ;;  %v7477_v25 = vand.u32 4294901760, %v519_v42  ;;  %v518_v10 = vld [vmem:[%s10951_s2 + $0x20] sm:$0xff] }
  0xe8   : > { %6523 = vmatmul.mubr.msk.f32.gmra.mxu1 %vm586_vm0, %v6948_v1  ;;  %5428 = vmatprep.subr.mxu1 %v2267_v9  ;;  %v7487_v9 = vsub.f32 %v520_v27, %v7447_v13  ;;  %v2287_v20 = vsub.f32 %v7416_v39, %v11377_v45  ;;  %v517_v45 = vld [vmem:[%s10951_s2 + $0x18] sm:$0xff] }
  0xe9   : > { %v2168_v41 = vsub.f32 %v7403_v36, %v11372_v51  ;;  %11374 = vst [vmem:[#allocation38_spill] sm:$0xff] %v7477_v25  ;;  %6477 = vmatmul.mubr.msk.f32.vlgmr.msra.gmra.mxu0 %vm586_vm0, %v6925_v55  ;;  %6525 = vmatprep.mubr.msk.f32.mxu1 %vm586_vm0, %v6984_v32  ;;  %v7490_v51 = vsub.f32 %v535_v4, %v7449_v40  ;;  %v2281_v55 = vand.u32 4294901760, %v2280_v24  ;;  %v11378_v4 = vand.u32 4294901760, %v7429_v53 }
  0xea   : > { %11375 = vst [vmem:[#allocation39_spill] sm:$0xff] %v7487_v9  ;;  %5341 = vmatpush3.msra.mxu0 %v7203_v60  ;;  %5429 = vmatpush3.msra.mxu1 %v2155_v0  ;;  %v2294_v0 = vsub.f32 %v7432_v35, %v11379_v18  ;;  %v7511_v24 = vand.u32 4294901760, %v518_v10  ;;  %v7519_v39 = vsub.f32 %v519_v42, %v7477_v25  ;;  %v2288_v42 = vand.u32 4294901760, %v2287_v20  ;;  %v531_v20 = vld [vmem:[%s10951_s2 + $0x88] sm:$0xff] }
  0xeb   : > { %11376 = vst [vmem:[#allocation40_spill] sm:$0xff] %v7490_v51  ;;  %6479 = vmatprep.mubr.msk.f32.mxu0 %vm586_vm0, %v6904_v43  ;;  %5342 = vmatprep.subr.mxu0 %v7210_v22  ;;  %v2175_v36 = vsub.f32 %v7429_v53, %v11378_v4  ;;  %v2169_v43 = vand.u32 4294901760, %v2168_v41  ;;  %v7521_v4 = vand.u32 4294901760, %v533_v30  ;;  %v7527_v53 = vsub.f32 %v534_v59, %v7492_v46  ;;  %v516_v59 = vld [vmem:[%s10951_s2 + $0x10] sm:$0xff] }
  0xec   : > { %5430 = vmatprep.subr.mxu1 %v2274_v29  ;;  %5343 = vmatpush3.msra.mxu0 %v7218_v6  ;;  %11380 = vst [vmem:[#allocation41_spill] sm:$0xff] %v7519_v39  ;;  %v532_v29 = vld [vmem:[%s10951_s2 + $0x90] sm:$0xff]  ;;  %v11382_v41 = vand.u32 4294901760, %v7461_v28  ;;  %v7537_v27 = vand.u32 4294901760, %v517_v45  ;;  %v2295_v18 = vand.u32 4294901760, %v2294_v0  ;;  %v11385_v12 = vand.u32 4294901760, %v7487_v9 }
  0xed   : > { %5431 = vmatpush3.msra.mxu1 %v2162_v50  ;;  %5344 = vmatprep.subr.mxu0 %v7229_v47  ;;  %11381 = vst [vmem:[#allocation42_spill] sm:$0xff] %v7527_v53  ;;  %v2176_v35 = vand.u32 4294901760, %v2175_v36  ;;  %v7563_v0 = vand.u32 4294901760, %v532_v29 }
  0xee   : > { %6526 = vmatmul.mubr.msk.f32.gmra.mxu1 %vm586_vm0, %v6981_v31  ;;  %5432 = vmatprep.subr.mxu1 %v2281_v55  ;;  %v2182_v50 = vsub.f32 %v7461_v28, %v11382_v41  ;;  %v7547_v55 = vsub.f32 %v518_v10, %v7511_v24  ;;  %v515_v41 = vld [vmem:[%s10951_s2 + $0x8] sm:$0xff]  ;;  %v7561_v10 = vsub.f32 %v533_v30, %v7521_v4 }
  0xef   : > { %6480 = vmatmul.mubr.msk.f32.gmra.mxu0 %vm586_vm0, %v6922_v54  ;;  %6528 = vmatprep.mubr.msk.f32.mxu1 %vm586_vm0, %v7014_v11  ;;  %v11384_v54 = vand.u32 4294901760, %v7475_v52  ;;  %v7583_v47 = vand.u32 4294901760, %v515_v41 }
  0xf0   : > { %11383 = vst [vmem:[#allocation43_spill] sm:$0xff] %v7547_v55  ;;  %5345 = vmatpush3.msra.mxu0 %v7244_v57  ;;  %5433 = vmatpush3.msra.mxu1 %v2169_v43  ;;  %v2189_v43 = vsub.f32 %v7487_v9, %v11385_v12  ;;  %v11386_v57 = vand.u32 4294901760, %v7490_v51  ;;  %v2183_v30 = vand.u32 4294901760, %v2182_v50  ;;  %v530_v12 = vld [vmem:[%s10951_s2 + $0x80] sm:$0xff] }
  0xf1   : > { %v2301_v28 = vsub.f32 %v7475_v52, %v11384_v54  ;;  %6482 = vmatprep.mubr.msk.f32.mxu0 %vm586_vm0, %v6951_v2  ;;  %5346 = vmatprep.subr.mxu0 %v7246_v7  ;;  %v7575_v52 = vand.u32 4294901760, %v516_v59  ;;  %v7579_v2 = vsub.f32 %v517_v45, %v7537_v27  ;;  %v7581_v7 = vand.u32 4294901760, %v531_v20 }
  0xf2   : > { %v2308_v54 = vsub.f32 %v7490_v51, %v11386_v57  ;;  %5434 = vmatprep.subr.mxu1 %v2288_v42  ;;  %5347 = vmatpush3.msra.mxu0 %v7264_v5  ;;  %v11387_v45 = vand.u32 4294901760, %v7519_v39  ;;  %v514_v57 = vld [vmem:[%s10951_s2] sm:$0xff]  ;;  %v11388_v51 = vand.u32 4294901760, %v7527_v53 }
  0xf3   : > { %5435 = vmatpush3.msra.mxu1 %v2176_v35  ;;  %5348 = vmatprep.subr.mxu0 %v7272_v49  ;;  %v2302_v42 = vand.u32 4294901760, %v2301_v28  ;;  %v7597_v35 = vsub.f32 %v532_v29, %v7563_v0  ;;  %v2190_v28 = vand.u32 4294901760, %v2189_v43  ;;  %v7610_v36 = vsub.f32 %v516_v59, %v7575_v52 }
  0xf4   : > { %6529 = vmatmul.mubr.msk.f32.gmra.mxu1 %vm586_vm0, %v7011_v8  ;;  %5436 = vmatprep.subr.mxu1 %v2295_v18  ;;  %v2196_v50 = vsub.f32 %v7519_v39, %v11387_v45  ;;  %v2309_v18 = vand.u32 4294901760, %v2308_v54  ;;  %v2315_v45 = vsub.f32 %v7527_v53, %v11388_v51  ;;  %v7615_v39 = vsub.f32 %v531_v20, %v7581_v7 }
  0xf5   : > { %6483 = vmatmul.mubr.msk.f32.gmra.mxu0 %vm586_vm0, %v6948_v1  ;;  %6531 = vmatprep.mubr.msk.f32.mxu1 %vm586_vm0, %v7046_v63  ;;  %v7618_v1 = vsub.f32 %v515_v41, %v7583_v47  ;;  %v7620_v43 = vand.u32 4294901760, %v530_v12  ;;  %v11389_v51 = vand.u32 4294901760, %v7547_v55  ;;  %v7628_v54 = vand.u32 4294901760, %v514_v57 }
  0xf6   : > { %5349 = vmatpush3.msra.mxu0 %v7293_v21  ;;  %5437 = vmatpush3.msra.mxu1 %v2183_v30  ;;  %v2197_v20 = vand.u32 4294901760, %v2196_v50  ;;  %v11390_v41 = vand.u32 4294901760, %v7561_v10  ;;  %v11020_v29 = vand.u32 4294901760, %v7597_v35 }
  0xf7   : > { %6485 = vmatprep.mubr.msk.f32.mxu0 %vm586_vm0, %v6984_v32  ;;  %5350 = vmatprep.subr.mxu0 %v7316_v14  ;;  %v2203_v59 = vsub.f32 %v7547_v55, %v11389_v51  ;;  %v2316_v32 = vand.u32 4294901760, %v2315_v45  ;;  %v7638_v51 = vadd.s32 128, %v6899_v37  ;;  %v7640_v55 = vpop.permute.xlu0 %259  ;;  %v7650_v45 = vsub.f32 %v530_v12, %v7620_v43 }
  0xf8   : > { %5438 = vmatprep.subr.mxu1 %v2302_v42  ;;  %5351 = vmatpush3.msra.mxu0 %v7325_v44  ;;  %v2322_v30 = vsub.f32 %v7561_v10, %v11390_v41  ;;  %11391 = vst [vmem:[#allocation44_spill] sm:$0xff] %v7640_v55  ;;  %v11392_v42 = vand.u32 4294901760, %v7579_v2  ;;  %v2329_v41 = vsub.f32 %v7597_v35, %v11020_v29  ;;  %v7681_v29 = vpop.permute.xlu1 %262 }
  0xf9   : > { %5439 = vmatpush3.msra.mxu1 %v2190_v28  ;;  %5352 = vmatprep.subr.mxu0 %v7339_v26  ;;  %v11021_v28 = vand.u32 4294901760, %v7615_v39  ;;  %11393 = vst [vmem:[#allocation45_spill] sm:$0xff] %v7650_v45  ;;  %v2204_v53 = vand.u32 4294901760, %v2203_v59  ;;  %vm307_vm2 = vcmp.eq.s32.totalorder %v7640_v55, %v7638_v51  ;;  %11397 = vst [vmem:[#allocation47_spill] sm:$0xff] %v7681_v29 }
  0xfa   : > { %6532 = vmatmul.mubr.msk.f32.gmra.mxu1 %vm586_vm0, %v7043_v62  ;;  %5440 = vmatprep.subr.mxu1 %v2309_v18  ;;  %v2210_v50 = vsub.f32 %v7579_v2, %v11392_v42  ;;  %v7657_v18 = vsub.f32 %v514_v57, %v7628_v54  ;;  %v2323_v42 = vand.u32 4294901760, %v2322_v30  ;;  %v11022_v30 = vand.u32 4294901760, %v7650_v45 }
  0xfb   : > { %6486 = vmatmul.mubr.msk.f32.gmra.mxu0 %vm586_vm0, %v6981_v31  ;;  %6534 = vmatprep.mubr.msk.f32.mxu1 %vm586_vm0, %v7078_v16  ;;  %v11395_v31 = vand.u32 4294901760, %v7610_v36  ;;  %v2336_v59 = vsub.f32 %v7615_v39, %v11021_v28  ;;  %vm306_vm3 = vcmp.eq.s32.totalorder %v7640_v55, %v6899_v37  ;;  %v7695_v28 = vpop.permute.xlu0 %265  ;;  %vm311_vm4 = vcmp.eq.s32.totalorder %v7681_v29, %v7638_v51 }
  0xfc   : > { %11394 = vst [vmem:[#allocation46_spill] sm:$0xff] %v7657_v18  ;;  %5353 = vmatpush3.msra.mxu0 %v7357_v56  ;;  %5441 = vmatpush3.msra.mxu1 %v2197_v20  ;;  %v2211_v57 = vand.u32 4294901760, %v2210_v50  ;;  %v11396_v20 = vand.u32 4294901760, %v7618_v1  ;;  %v11398_v50 = vmov 0.0   ;;  %11399 = vst [vmem:[#allocation48_spill] sm:$0xff] %v7695_v28  ;;  %vm310_vm5 = vcmp.eq.s32.totalorder %v7681_v29, %v6899_v37 }
  0xfd   : > { %6488 = vmatprep.mubr.msk.f32.mxu0 %vm586_vm0, %v7014_v11  ;;  %5354 = vmatprep.subr.mxu0 %v7382_v38  ;;  %v2217_v12 = vsub.f32 %v7610_v36, %v11395_v31  ;;  %v2337_v31 = vand.u32 4294901760, %v2336_v59  ;;  %vm315_vm6 = vcmp.eq.s32.totalorder %v7695_v28, %v7638_v51  ;;  %vm314_vm7 = vcmp.eq.s32.totalorder %v7695_v28, %v6899_v37 }
  0xfe   : > { %5442 = vmatprep.subr.mxu1 %v2316_v32  ;;  %5355 = vmatpush3.msra.mxu0 %v7390_v61  ;;  %v2224_v11 = vsub.f32 %v7618_v1, %v11396_v20  ;;  %v2330_v32 = vand.u32 4294901760, %v2329_v41  ;;  %v371_v20 = vsel %vm307_vm2, 1.0, %v11398_v50  ;;  %v2343_v41 = vsub.f32 %v7650_v45, %v11022_v30 }
  0xff   : > { %5443 = vmatpush3.msra.mxu1 %v2204_v53  ;;  %5356 = vmatprep.subr.mxu0 %v7392_v34  ;;  %v2218_v53 = vand.u32 4294901760, %v2217_v12  ;;  %v7708_v12 = vsub.f32 %v371_v20, %v371_v20  ;;  %v7729_v20 = vpop.permute.xlu1 %268 }
 0x100   : > { %6535 = vmatmul.mubr.msk.f32.gmra.mxu1 %vm586_vm0, %v7075_v3  ;;  %5444 = vmatprep.subr.mxu1 %v2323_v42  ;;  %v2225_v42 = vand.u32 4294901760, %v2224_v11  ;;  %v2344_v11 = vand.u32 4294901760, %v2343_v41  ;;  %11401 = vst [vmem:[#allocation49_spill] sm:$0xff] %v7729_v20  ;;  %v11024_v41 = vmov 1.0   ;;  %vm319_vm8 = vcmp.eq.s32.totalorder %v7729_v20, %v7638_v51 }
 0x101   : > { %6489 = vmatmul.mubr.msk.f32.gmra.mxu0 %vm586_vm0, %v7011_v8  ;;  %6537 = vmatprep.mubr.msk.f32.mxu1 %vm586_vm0, %v7110_v58  ;;  %v370_v8 = vsel %vm306_vm3, 1.0, %v11398_v50  ;;  %vm318_vm9 = vcmp.eq.s32.totalorder %v7729_v20, %v6899_v37 }
 0x102   : > { %5357 = vmatpush3.msra.mxu0 %v7418_v48  ;;  %5445 = vmatpush3.msra.mxu1 %v2211_v57  ;;  %v11400_v57 = vand.u32 4294901760, %v7657_v18 }
 0x103   : > { %6491 = vmatprep.mubr.msk.f32.mxu0 %vm586_vm0, %v7046_v63  ;;  %5358 = vmatprep.subr.mxu0 %v7441_v19  ;;  %v7721_v63 = vsub.f32 %v370_v8, %v370_v8  ;;  %v374_v8 = vsel %vm310_vm5, 1.0, %v11398_v50 }
 0x104   : > { %v2231_v59 = vsub.f32 %v7657_v18, %v11400_v57  ;;  %5446 = vmatprep.subr.mxu1 %v2330_v32  ;;  %5359 = vmatpush3.msra.mxu0 %v7447_v13  ;;  %v375_v32 = vsel %vm311_vm4, 1.0, %v11398_v50  ;;  %v7754_v57 = vpop.permute.xlu0 %271 }
 0x105   : > { %5447 = vmatpush3.msra.mxu1 %v2218_v53  ;;  %5360 = vmatprep.subr.mxu0 %v7449_v40  ;;  %11402 = vst [vmem:[#allocation50_spill] sm:$0xff] %v7754_v57  ;;  %v11028_v30 = vand.u32 4294901760, %v7721_v63  ;;  %vm323_vm10 = vcmp.eq.s32.totalorder %v7754_v57, %v7638_v51  ;;  %vm11059_vm11 = vcmp.eq.s32.totalorder %v7754_v57, %v6899_v37 }
 0x106   : > { %6538 = vmatmul.mubr.msk.f32.gmra.mxu1 %vm586_vm0, %v7107_v15  ;;  %5448 = vmatprep.subr.mxu1 %v2337_v31  ;;  %v2232_v53 = vand.u32 4294901760, %v2231_v59  ;;  %v11023_v31 = vand.u32 4294901760, %v7708_v12  ;;  %v7757_v59 = vsub.f32 %v374_v8, %v374_v8  ;;  %v7801_v8 = vpop.permute.xlu1 %274 }
 0x107   : > { %6492 = vmatmul.mubr.msk.f32.gmra.mxu0 %vm586_vm0, %v7043_v62  ;;  %5449 = vmatpush3.msra.mxu1 %v2225_v42  ;;  %v379_v62 = vsel %vm315_vm6, 1.0, %v11398_v50  ;;  %v7752_v42 = vsub.f32 %v375_v32, %v375_v32  ;;  %11405 = vst [vmem:[#allocation53_spill] sm:$0xff] %v7801_v8  ;;  %vm11060_vm12 = vcmp.eq.s32.totalorder %v7801_v8, %v6899_v37 }
 0x108   : > { %5361 = vmatpush3.msra.mxu0 %v7477_v25  ;;  %4998 = vmatprep.mubr.msk.f32.mxu1 %vm307_vm2, %v11024_v41  ;;  %v1915_v32 = vsub.f32 %v7708_v12, %v11023_v31  ;;  %v7832_v31 = vpop.permute.xlu0 %277 }
 0x109   : > { %6494 = vmatprep.mubr.msk.f32.mxu0 %vm586_vm0, %v7078_v16  ;;  %5362 = vmatprep.subr.mxu0 %v7492_v46  ;;  %v7763_v16 = vsub.f32 %v379_v62, %v379_v62  ;;  %v1920_v62 = vsub.f32 %v7721_v63, %v11028_v30  ;;  %v382_v30 = vsel %vm318_vm9, 1.0, %v11398_v50  ;;  %11409 = vst [vmem:[#allocation55_spill] sm:$0xff] %v7832_v31 }
 0x10a   : > { %5450 = vmatprep.subr.mxu1 %v2344_v11  ;;  %5363 = vmatpush3.msra.mxu0 %v7511_v24  ;;  %v378_v11 = vsel %vm314_vm7, 1.0, %v11398_v50  ;;  %vm11068_vm13 = vcmp.eq.s32.totalorder %v7832_v31, %v7638_v51  ;;  %v7879_v28 = vpop.permute.xlu1 %280  ;;  %vm11065_vm14 = vcmp.eq.s32.totalorder %v7832_v31, %v6899_v37 }
 0x10b   : > { %5451 = vmatpush3.msra.mxu1 %v2232_v53  ;;  %5364 = vmatprep.subr.mxu0 %v7521_v4  ;;  %11403 = vst [vmem:[#allocation51_spill] sm:$0xff] %v7763_v16  ;;  %v383_v53 = vsel %vm319_vm8, 1.0, %v11398_v50  ;;  %v1921_v29 = vand.u32 4294901760, %v1920_v62  ;;  %11416 = vst [vmem:[#allocation59_spill] sm:$0xff] %v7879_v28  ;;  %vm11074_vm15 = vcmp.eq.s32.totalorder %v7879_v28, %v7638_v51 }
 0x10c   : > { %4999 = vmatmul.mubr.msk.f32.vlgmr.msra.gmra.mxu1 %vm306_vm3, %v11024_v41  ;;  %6495 = vmatmul.mubr.msk.f32.gmra.mxu0 %vm586_vm0, %v7075_v3  ;;  %v7795_v3 = vsub.f32 %v378_v11, %v378_v11  ;;  %v7811_v11 = vsub.f32 %v383_v53, %v383_v53  ;;  %v11408_v53 = vand.u32 4294901760, %v7752_v42  ;;  %v7914_v20 = vpop.permute.xlu0 %283  ;;  %vm11075_vm1 = vcmp.eq.s32.totalorder %v7879_v28, %v6899_v37 }
 0x10d   : > { %5365 = vmatpush3.msra.mxu0 %v7537_v27  ;;  %5000 = vmatprep.mubr.msk.f32.mxu1 %vm311_vm4, %v11024_v41  ;;  %v1916_v41 = vand.u32 4294901760, %v1915_v32  ;;  %v387_v32 = vsel %vm323_vm10, 1.0, %v11398_v50  ;;  %11421 = vst [vmem:[#allocation61_spill] sm:$0xff] %v7914_v20 }
 0x10e   : > { %6497 = vmatprep.mubr.msk.f32.mxu0 %vm586_vm0, %v7110_v58  ;;  %5366 = vmatprep.subr.mxu0 %v7563_v0  ;;  %11404 = vst [vmem:[#allocation52_spill] sm:$0xff] %v7795_v3  ;;  %v11406_v58 = vmov 1.0   ;;  %11407 = vst [vmem:[#allocation54_spill] sm:$0xff] %v7811_v11  ;;  %v1928_v55 = vsub.f32 %v7752_v42, %v11408_v53  ;;  %v7843_v53 = vsub.f32 %v382_v30, %v382_v30 }
 0x10f   : > { %5367 = vmatpush3.msra.mxu0 %v7575_v52  ;;  %5580 = vmatprep.subr.mxu1 %v7190_v17  ;;  %v11410_v17 = vand.u32 4294901760, %v7757_v59  ;;  %v7845_v45 = vsub.f32 %v387_v32, %v387_v32 }
 0x110   : > { %5368 = vmatprep.subr.mxu0 %v7581_v7  ;;  %5001 = vmatmul.mubr.msk.f32.gmra.mxu1 %vm310_vm5, %v11406_v58  ;;  %11411 = vst [vmem:[#allocation56_spill] sm:$0xff] %v7843_v53  ;;  %v1929_v32 = vand.u32 4294901760, %v1928_v55  ;;  %v11415_v55 = vand.u32 4294901760, %v7795_v3 }
 0x111   : > { %6498 = vmatmul.mubr.msk.f32.gmra.mxu0 %vm586_vm0, %v7107_v15  ;;  %5002 = vmatprep.mubr.msk.f32.mxu1 %vm315_vm6, %v11406_v58  ;;  %v1933_v18 = vsub.f32 %v7757_v59, %v11410_v17  ;;  %vm11048_vm0 = vcmp.eq.s32.totalorder %v7801_v8, %v7638_v51  ;;  %11412 = vst [vmem:[#allocation57_spill] sm:$0xff] %v7845_v45  ;;  %v386_v17 = vsel %vm11059_vm11, 1.0, %v11398_v50 }
 0x112   : > { %5369 = vmatpush3.msra.mxu0 %v7583_v47  ;;  %1917 = vmatprep.mubr.f32.mxu0 %v1916_v41  ;;  %v11413_v41 = vand.u32 4294901760, %v7763_v16  ;;  %v7874_v15 = vsub.f32 %v386_v17, %v386_v17  ;;  %v11418_v17 = vld [vmem:[#allocation15_spill] sm:$0xff] }
 0x113   : > { %5370 = vmatprep.subr.mxu0 %v7620_v43  ;;  %5581 = vmatpush3.msra.mxu1 %v7203_v60  ;;  %v1934_v30 = vand.u32 4294901760, %v1933_v18  ;;  %v11417_v60 = vld [vmem:[#allocation12_spill] sm:$0xff] }
 0x114   : > { %v1941_v62 = vsub.f32 %v7763_v16, %v11413_v41  ;;  %5371 = vmatpush3.msra.mxu0 %v7628_v54  ;;  %5003 = vmatmul.mubr.msk.f32.gmra.mxu1 %vm314_vm7, %v11406_v58  ;;  %v391_v41 = vsel %vm11048_vm0, 1.0, %v11398_v50  ;;  %11414 = vst [vmem:[#allocation58_spill] sm:$0xff] %v7874_v15  ;;  %v390_v16 = vsel %vm11060_vm12, 1.0, %v11398_v50 }
 0x115   : > { %5500 = vmatprep.subr.mxu0 %v7216_v33  ;;  %1922 = vmatmul.mubr.f32.vlgmr.msra.gmra.mxu0 %v1921_v29  ;;  %v1946_v29 = vsub.f32 %v7795_v3, %v11415_v55  ;;  %v7909_v18 = vsub.f32 %v390_v16, %v390_v16  ;;  %v11425_v16 = vand.u32 4294901760, %v7845_v45  ;;  %v11437_v3 = vld [vmem:[#allocation21_spill] sm:$0xff] }
 0x116   : > { %5004 = vmatprep.mubr.msk.f32.mxu1 %vm319_vm8, %v11406_v58  ;;  %5501 = vmatpush3.msra.mxu0 %v7234_v23  ;;  %v1942_v33 = vand.u32 4294901760, %v1941_v62  ;;  %v11420_v62 = vand.u32 4294901760, %v7811_v11  ;;  %v395_v23 = vsel %vm11068_vm13, 1.0, %v11398_v50 }
 0x117   : > { %1930 = vmatprep.mubr.f32.mxu0 %v1929_v32  ;;  %5502 = vmatprep.subr.mxu0 %v11417_v60  ;;  %v7893_v32 = vsub.f32 %v391_v41, %v391_v41  ;;  %v1947_v41 = vand.u32 4294901760, %v1946_v29  ;;  %v7921_v60 = vsub.f32 %v395_v23, %v395_v23  ;;  %v1967_v29 = vsub.f32 %v7845_v45, %v11425_v16  ;;  %v7946_v16 = vpop.permute.xlu1 %286  ;;  %v11432_v45 = vld [vmem:[#allocation19_spill] sm:$0xff] }
 0x118   : > { %5005 = vmatmul.mubr.msk.f32.gmra.mxu1 %vm318_vm9, %v11406_v58  ;;  %5503 = vmatpush3.msra.mxu0 %v11418_v17  ;;  %v1954_v55 = vsub.f32 %v7811_v11, %v11420_v62  ;;  %v11423_v17 = vand.u32 4294901760, %v7843_v53  ;;  %v394_v62 = vsel %vm11065_vm14, 1.0, %v11398_v50  ;;  %11427 = vst [vmem:[#allocation63_spill] sm:$0xff] %v7946_v16 }
 0x119   : > { %11419 = vst [vmem:[#allocation60_spill] sm:$0xff] %v7893_v32  ;;  %1935 = vmatmul.mubr.f32.gmra.mxu0 %v1934_v30  ;;  %5006 = vmatprep.mubr.msk.f32.mxu1 %vm323_vm10, %v11406_v58  ;;  %v11422_v30 = vld [vmem:[#allocation16_spill] sm:$0xff]  ;;  %11424 = vst [vmem:[#allocation62_spill] sm:$0xff] %v7921_v60  ;;  %v7949_v23 = vsub.f32 %v394_v62, %v394_v62  ;;  %v1968_v11 = vand.u32 4294901760, %v1967_v29 }
 0x11a   : > { %1943 = vmatprep.mubr.f32.mxu0 %v1942_v33  ;;  %5582 = vmatprep.subr.mxu1 %v7210_v22  ;;  %v1959_v33 = vsub.f32 %v7843_v53, %v11423_v17  ;;  %v399_v17 = vsel %vm11074_vm15, 1.0, %v11398_v50  ;;  %v11433_v62 = vld [vmem:[#allocation20_spill] sm:$0xff] }
 0x11b   : > { %5583 = vmatpush3.msra.mxu1 %v7218_v6  ;;  %5504 = vmatprep.subr.mxu0 %v11422_v30  ;;  %v11426_v30 = vld [vmem:[#allocation18_spill] sm:$0xff]  ;;  %v1955_v6 = vand.u32 4294901760, %v1954_v55 }
 0x11c   : > { %5007 = vmatmul.mubr.msk.f32.gmra.mxu1 %vm11059_vm11, %v11406_v58  ;;  %5505 = vmatpush3.msra.mxu0 %v11426_v30  ;;  %v11428_v55 = vld [vmem:[#allocation10_spill] sm:$0xff]  ;;  %v11431_v30 = vld [vmem:[#allocation13_spill] sm:$0xff]  ;;  %v1960_v53 = vand.u32 4294901760, %v1959_v33  ;;  %v398_v33 = vsel %vm11075_vm1, 1.0, %v11398_v50  ;;  %vm11081_vm11 = vcmp.eq.s32.totalorder %v7914_v20, %v6899_v37 }
 0x11d   : > { %1948 = vmatmul.mubr.f32.gmra.mxu0 %v1947_v41  ;;  %5008 = vmatprep.mubr.msk.f32.mxu1 %vm11048_vm0, %v11406_v58  ;;  %11429 = vst [vmem:[#allocation10_spill] sm:$0xff] %v7949_v23  ;;  %v11430_v41 = vand.u32 4294901760, %v7874_v15  ;;  %vm11080_vm0 = vcmp.eq.s32.totalorder %v7914_v20, %v7638_v51  ;;  %v7992_v8 = vsub.f32 %v398_v33, %v398_v33  ;;  %v11440_v33 = vld [vmem:[#allocation24_spill] sm:$0xff] }
 0x11e   : > { %1956 = vmatprep.mubr.f32.mxu0 %v1955_v6  ;;  %5584 = vmatprep.subr.mxu1 %v11428_v55  ;;  %v403_v29 = vsel %vm11080_vm0, 1.0, %v11398_v50 }
 0x11f   : > { %v1972_v57 = vsub.f32 %v7874_v15, %v11430_v41  ;;  %5585 = vmatpush3.msra.mxu1 %v11431_v30  ;;  %5506 = vmatprep.subr.mxu0 %v11432_v45  ;;  %v7965_v41 = vsub.f32 %v399_v17, %v399_v17  ;;  %v11434_v15 = vand.u32 4294901760, %v7893_v32 }
 0x120   : > { %5009 = vmatmul.mubr.msk.f32.gmra.mxu1 %vm11060_vm12, %v11406_v58  ;;  %5507 = vmatpush3.msra.mxu0 %v11433_v62  ;;  %vm343_vm12 = vcmp.eq.s32.totalorder %v7946_v16, %v7638_v51  ;;  %v11438_v62 = vand.u32 4294901760, %v7909_v18 }
 0x121   : > { %v1980_v30 = vsub.f32 %v7893_v32, %v11434_v15  ;;  %1961 = vmatmul.mubr.f32.gmra.mxu0 %v1960_v53  ;;  %5010 = vmatprep.mubr.msk.f32.mxu1 %vm11068_vm13, %v11406_v58  ;;  %v11435_v15 = vld [vmem:[#allocation14_spill] sm:$0xff]  ;;  %v1973_v17 = vand.u32 4294901760, %v1972_v57  ;;  %v7988_v53 = vpop.permute.xlu0 %289  ;;  %v11439_v32 = vand.u32 4294901760, %v7921_v60  ;;  %v402_v57 = vsel %vm11081_vm11, 1.0, %v11398_v50 }
 0x122   : > { %1969 = vmatprep.mubr.f32.mxu0 %v1968_v11  ;;  %5586 = vmatprep.subr.mxu1 %v11435_v15  ;;  %11436 = vst [vmem:[#allocation14_spill] sm:$0xff] %v7988_v53  ;;  %v1985_v45 = vsub.f32 %v7909_v18, %v11438_v62  ;;  %vm11092_vm13 = vcmp.eq.s32.totalorder %v7988_v53, %v7638_v51  ;;  %v11444_v62 = vld [vmem:[#allocation26_spill] sm:$0xff] }
 0x123   : > { %5587 = vmatpush3.msra.mxu1 %v7264_v5  ;;  %5508 = vmatprep.subr.mxu0 %v11437_v3  ;;  %v1993_v11 = vsub.f32 %v7921_v60, %v11439_v32  ;;  %v1981_v6 = vand.u32 4294901760, %v1980_v30  ;;  %v8009_v3 = vsub.f32 %v403_v29, %v403_v29  ;;  %v407_v32 = vsel %vm343_vm12, 1.0, %v11398_v50 }
 0x124   : > { %5011 = vmatmul.mubr.msk.f32.gmra.mxu1 %vm11065_vm14, %v11406_v58  ;;  %5509 = vmatpush3.msra.mxu0 %v11440_v33  ;;  %vm11087_vm14 = vcmp.eq.s32.totalorder %v7946_v16, %v6899_v37  ;;  %v8023_v30 = vsub.f32 %v402_v57, %v402_v57  ;;  %v11442_v29 = vand.u32 4294901760, %v7949_v23  ;;  %v1986_v33 = vand.u32 4294901760, %v1985_v45  ;;  %v11449_v57 = vld [vmem:[#allocation28_spill] sm:$0xff] }
 0x125   : > { %1974 = vmatmul.mubr.f32.gmra.mxu0 %v1973_v17  ;;  %5012 = vmatprep.mubr.msk.f32.mxu1 %vm11074_vm15, %v11406_v58  ;;  %v8030_v17 = vpop.permute.xlu1 %292  ;;  %v1994_v60 = vand.u32 4294901760, %v1993_v11  ;;  %v406_v45 = vsel %vm11087_vm14, 1.0, %v11398_v50  ;;  %vm11093_vm15 = vcmp.eq.s32.totalorder %v7988_v53, %v6899_v37 }
 0x126   : > { %1982 = vmatprep.mubr.f32.mxu0 %v1981_v6  ;;  %5588 = vmatprep.subr.mxu1 %v7272_v49  ;;  %11441 = vst [vmem:[#allocation64_spill] sm:$0xff] %v8023_v30  ;;  %v1998_v31 = vsub.f32 %v7949_v23, %v11442_v29  ;;  %11443 = vst [vmem:[#allocation65_spill] sm:$0xff] %v8030_v17  ;;  %v8034_v6 = vsub.f32 %v407_v32, %v407_v32  ;;  %v11446_v29 = vld [vmem:[#allocation27_spill] sm:$0xff]  ;;  %v11447_v23 = vand.u32 4294901760, %v7965_v41 }
 0x127   : > { %5589 = vmatpush3.msra.mxu1 %v7293_v21  ;;  %5510 = vmatprep.subr.mxu0 %v11444_v62  ;;  %v8068_v28 = vsub.f32 %v406_v45, %v406_v45 }
 0x128   : > { %11445 = vst [vmem:[#allocation26_spill] sm:$0xff] %v8034_v6  ;;  %5013 = vmatmul.mubr.msk.f32.gmra.mxu1 %vm11075_vm1, %v11406_v58  ;;  %5511 = vmatpush3.msra.mxu0 %v11446_v29  ;;  %v2006_v49 = vsub.f32 %v7965_v41, %v11447_v23  ;;  %v411_v23 = vsel %vm11092_vm13, 1.0, %v11398_v50  ;;  %v1999_v32 = vand.u32 4294901760, %v1998_v31  ;;  %vm11098_vm1 = vcmp.eq.s32.totalorder %v8030_v17, %v7638_v51 }
 0x129   : > { %1987 = vmatmul.mubr.f32.gmra.mxu0 %v1986_v33  ;;  %5014 = vmatprep.mubr.msk.f32.mxu1 %vm11080_vm0, %v11406_v58  ;;  %v8064_v33 = vpop.permute.xlu0 %295  ;;  %v11450_v29 = vand.u32 4294901760, %v7992_v8  ;;  %v410_v31 = vsel %vm11093_vm15, 1.0, %v11398_v50  ;;  %vm11099_vm0 = vcmp.eq.s32.totalorder %v8030_v17, %v6899_v37  ;;  %v11459_v16 = vand.u32 4294901760, %v8068_v28 }
 0x12a   : > { %1995 = vmatprep.mubr.f32.mxu0 %v1994_v60  ;;  %5590 = vmatprep.subr.mxu1 %v7316_v14  ;;  %11448 = vst [vmem:[#allocation66_spill] sm:$0xff] %v8064_v33  ;;  %v2007_v45 = vand.u32 4294901760, %v2006_v49  ;;  %v11452_v14 = vand.u32 4294901760, %v8009_v3  ;;  %v415_v49 = vsel %vm11098_vm1, 1.0, %v11398_v50 }
 0x12b   : > { %5591 = vmatpush3.msra.mxu1 %v7325_v44  ;;  %5512 = vmatprep.subr.mxu0 %v11449_v57  ;;  %v2011_v60 = vsub.f32 %v7992_v8, %v11450_v29  ;;  %v11451_v44 = vld [vmem:[#allocation30_spill] sm:$0xff]  ;;  %v8083_v57 = vsub.f32 %v411_v23, %v411_v23  ;;  %v8099_v23 = vsub.f32 %v410_v31, %v410_v31  ;;  %v414_v31 = vsel %vm11099_vm0, 1.0, %v11398_v50 }
 0x12c   : > { %5015 = vmatmul.mubr.msk.f32.gmra.mxu1 %vm11081_vm11, %v11406_v58  ;;  %5513 = vmatpush3.msra.mxu0 %v11451_v44  ;;  %v2019_v29 = vsub.f32 %v8009_v3, %v11452_v14  ;;  %v11453_v14 = vand.u32 4294901760, %v8023_v30  ;;  %vm11104_vm11 = vcmp.eq.s32.totalorder %v8064_v33, %v7638_v51  ;;  %v11455_v44 = vand.u32 4294901760, %v8034_v6 }
 0x12d   : > { %2000 = vmatmul.mubr.f32.gmra.mxu0 %v1999_v32  ;;  %5016 = vmatprep.mubr.msk.f32.mxu1 %vm343_vm12, %v11406_v58  ;;  %v11454_v32 = vld [vmem:[#allocation31_spill] sm:$0xff]  ;;  %v2012_v20 = vand.u32 4294901760, %v2011_v60  ;;  %v11464_v53 = vand.u32 4294901760, %v8099_v23 }
 0x12e   : > { %2008 = vmatprep.mubr.f32.mxu0 %v2007_v45  ;;  %5592 = vmatprep.subr.mxu1 %v7339_v26  ;;  %v2024_v11 = vsub.f32 %v8023_v30, %v11453_v14  ;;  %v2032_v45 = vsub.f32 %v8034_v6, %v11455_v44  ;;  %v8116_v14 = vpop.permute.xlu1 %298  ;;  %v2020_v60 = vand.u32 4294901760, %v2019_v29  ;;  %v8123_v30 = vsub.f32 %v415_v49, %v415_v49 }
 0x12f   : > { %5593 = vmatpush3.msra.mxu1 %v7357_v56  ;;  %5514 = vmatprep.subr.mxu0 %v11454_v32  ;;  %11456 = vst [vmem:[#allocation67_spill] sm:$0xff] %v8116_v14  ;;  %v11457_v32 = vld [vmem:[#allocation33_spill] sm:$0xff]  ;;  %v419_v26 = vsel %vm11104_vm11, 1.0, %v11398_v50  ;;  %v8137_v49 = vsub.f32 %v414_v31, %v414_v31 }
 0x130   : > { %5017 = vmatmul.mubr.msk.f32.gmra.mxu1 %vm11087_vm14, %v11406_v58  ;;  %5515 = vmatpush3.msra.mxu0 %v11457_v32  ;;  %vm11105_vm14 = vcmp.eq.s32.totalorder %v8064_v33, %v6899_v37  ;;  %v2025_v29 = vand.u32 4294901760, %v2024_v11  ;;  %v2033_v44 = vand.u32 4294901760, %v2032_v45  ;;  %v2037_v32 = vsub.f32 %v8068_v28, %v11459_v16  ;;  %v11460_v11 = vld [vmem:[#allocation36_spill] sm:$0xff] }
 0x131   : > { %2013 = vmatmul.mubr.f32.gmra.mxu0 %v2012_v20  ;;  %5018 = vmatprep.mubr.msk.f32.mxu1 %vm11092_vm13, %v11406_v58  ;;  %v11458_v20 = vld [vmem:[#allocation34_spill] sm:$0xff]  ;;  %vm359_vm13 = vcmp.eq.s32.totalorder %v8116_v14, %v7638_v51  ;;  %v8152_v31 = vsub.f32 %v419_v26, %v419_v26  ;;  %v11461_v45 = vand.u32 4294901760, %v8083_v57  ;;  %v418_v16 = vsel %vm11105_vm14, 1.0, %v11398_v50 }
 0x132   : > { %2021 = vmatprep.mubr.f32.mxu0 %v2020_v60  ;;  %5594 = vmatprep.subr.mxu1 %v7382_v38  ;;  %v423_v26 = vsel %vm359_vm13, 1.0, %v11398_v50  ;;  %v8177_v6 = vsub.f32 %v418_v16, %v418_v16  ;;  %v11468_v16 = vand.u32 4294901760, %v8137_v49 }
 0x133   : > { %5595 = vmatpush3.msra.mxu1 %v7390_v61  ;;  %5516 = vmatprep.subr.mxu0 %v11458_v20  ;;  %v2045_v60 = vsub.f32 %v8083_v57, %v11461_v45  ;;  %v8162_v20 = vpop.permute.xlu0 %301  ;;  %v11463_v45 = vld [vmem:[#allocation37_spill] sm:$0xff] }
 0x134   : > { %5019 = vmatmul.mubr.msk.f32.gmra.mxu1 %vm11093_vm15, %v11406_v58  ;;  %5517 = vmatpush3.msra.mxu0 %v11460_v11  ;;  %11462 = vst [vmem:[#allocation68_spill] sm:$0xff] %v8162_v20  ;;  %vm358_vm15 = vcmp.eq.s32.totalorder %v8116_v14, %v6899_v37  ;;  %v8200_v11 = vsub.f32 %v423_v26, %v423_v26  ;;  %v11472_v33 = vand.u32 4294901760, %v8177_v6 }
 0x135   : > { %2026 = vmatmul.mubr.f32.gmra.mxu0 %v2025_v29  ;;  %5020 = vmatprep.mubr.msk.f32.mxu1 %vm11098_vm1, %v11406_v58  ;;  %v2038_v29 = vand.u32 4294901760, %v2037_v32  ;;  %vm363_vm1 = vcmp.eq.s32.totalorder %v8162_v20, %v7638_v51  ;;  %v2063_v26 = vsub.f32 %v8137_v49, %v11468_v16 }
 0x136   : > { %2034 = vmatprep.mubr.f32.mxu0 %v2033_v44  ;;  %5596 = vmatprep.subr.mxu1 %v7392_v34  ;;  %v2050_v44 = vsub.f32 %v8099_v23, %v11464_v53  ;;  %v2046_v34 = vand.u32 4294901760, %v2045_v60  ;;  %v8194_v53 = vpop.permute.xlu1 %304  ;;  %v11467_v60 = vld [vmem:[#allocation40_spill] sm:$0xff]  ;;  %v427_v17 = vsel %vm363_vm1, 1.0, %v11398_v50 }
 0x137   : > { %5597 = vmatpush3.msra.mxu1 %v7418_v48  ;;  %5518 = vmatprep.subr.mxu0 %v11463_v45  ;;  %v11465_v48 = vand.u32 4294901760, %v8123_v30  ;;  %11466 = vst [vmem:[#allocation37_spill] sm:$0xff] %v8194_v53 }
 0x138   : > { %5021 = vmatmul.mubr.msk.f32.gmra.mxu1 %vm11099_vm0, %v11406_v58  ;;  %5519 = vmatpush3.msra.mxu0 %v7487_v9  ;;  %vm362_vm0 = vcmp.eq.s32.totalorder %v8162_v20, %v6899_v37  ;;  %v11470_v9 = vand.u32 4294901760, %v8152_v31 }
 0x139   : > { %v2058_v32 = vsub.f32 %v8123_v30, %v11465_v48  ;;  %2039 = vmatmul.mubr.f32.gmra.mxu0 %v2038_v29  ;;  %5022 = vmatprep.mubr.msk.f32.mxu1 %vm11104_vm11, %v11406_v58  ;;  %v422_v48 = vsel %vm358_vm15, 1.0, %v11398_v50  ;;  %v2051_v29 = vand.u32 4294901760, %v2050_v44  ;;  %vm367_vm11 = vcmp.eq.s32.totalorder %v8194_v53, %v7638_v51 }
 0x13a   : > { %2047 = vmatprep.mubr.f32.mxu0 %v2046_v34  ;;  %5598 = vmatprep.subr.mxu1 %v7441_v19  ;;  %v8224_v44 = vsub.f32 %v422_v48, %v422_v48  ;;  %v2071_v16 = vsub.f32 %v8152_v31, %v11470_v9  ;;  %v8241_v9 = vsub.f32 %v427_v17, %v427_v17  ;;  %v2064_v34 = vand.u32 4294901760, %v2063_v26  ;;  %v11473_v17 = vld [vmem:[#allocation43_spill] sm:$0xff] }
 0x13b   : > { %5599 = vmatpush3.msra.mxu1 %v7447_v13  ;;  %5520 = vmatprep.subr.mxu0 %v11467_v60  ;;  %v11469_v13 = vld [vmem:[#allocation41_spill] sm:$0xff]  ;;  %v2059_v60 = vand.u32 4294901760, %v2058_v32  ;;  %v426_v32 = vsel %vm362_vm0, 1.0, %v11398_v50 }
 0x13c   : > { %5023 = vmatmul.mubr.msk.f32.gmra.mxu1 %vm11105_vm14, %v11406_v58  ;;  %5521 = vmatpush3.msra.mxu0 %v11469_v13  ;;  %vm366_vm14 = vcmp.eq.s32.totalorder %v8194_v53, %v6899_v37  ;;  %v2076_v13 = vsub.f32 %v8177_v6, %v11472_v33  ;;  %v2072_v48 = vand.u32 4294901760, %v2071_v16  ;;  %v11113_v26 = vand.u32 4294901760, %v8224_v44  ;;  %v11479_v53 = vld [vmem:[#allocation46_spill] sm:$0xff] }
 0x13d   : > { %2052 = vmatmul.mubr.f32.gmra.mxu0 %v2051_v29  ;;  %5024 = vmatprep.mubr.msk.f32.mxu1 %vm359_vm13, %v11406_v58  ;;  %v11471_v29 = vld [vmem:[#allocation42_spill] sm:$0xff]  ;;  %v11474_v33 = vand.u32 4294901760, %v8200_v11  ;;  %v430_v14 = vsel %vm366_vm14, 1.0, %v11398_v50 }
 0x13e   : > { %2060 = vmatprep.mubr.f32.mxu0 %v2059_v60  ;;  %5600 = vmatprep.subr.mxu1 %v7449_v40  ;;  %v431_v60 = vsel %vm367_vm11, 1.0, %v11398_v50  ;;  %v11481_v50 = vand.u32 4294901760, %v7757_v59 }
 0x13f   : > { %5601 = vmatpush3.msra.mxu1 %v7477_v25  ;;  %5522 = vmatprep.subr.mxu0 %v11471_v29  ;;  %v8259_v25 = vsub.f32 %v426_v32, %v426_v32  ;;  %v2084_v29 = vsub.f32 %v8200_v11, %v11474_v33  ;;  %v8274_v16 = vsub.f32 %v431_v60, %v431_v60  ;;  %v2077_v32 = vand.u32 4294901760, %v2076_v13 }
 0x140   : > { %5025 = vmatmul.mubr.msk.f32.gmra.mxu1 %vm358_vm15, %v11406_v58  ;;  %5523 = vmatpush3.msra.mxu0 %v11473_v17  ;;  %v8284_v33 = vsub.f32 %v430_v14, %v430_v14 }
 0x141   : > { %2065 = vmatmul.mubr.f32.gmra.mxu0 %v2064_v34  ;;  %5026 = vmatprep.mubr.msk.f32.mxu1 %vm363_vm1, %v11406_v58  ;;  %v11115_v34 = vand.u32 4294901760, %v8241_v9  ;;  %v11114_v60 = vand.u32 4294901760, %v8259_v25  ;;  %v2085_v13 = vand.u32 4294901760, %v2084_v29  ;;  %v11116_v20 = vand.u32 4294901760, %v8274_v16 }
 0x142   : > { %2073 = vmatprep.mubr.f32.mxu0 %v2072_v48  ;;  %5602 = vmatprep.subr.mxu1 %v7492_v46  ;;  %v2089_v48 = vsub.f32 %v8224_v44, %v11113_v26  ;;  %v11119_v26 = vand.u32 4294901760, %v8284_v33 }
 0x143   : > { %5603 = vmatpush3.msra.mxu1 %v7511_v24  ;;  %5524 = vmatprep.subr.mxu0 %v7561_v10  ;;  %v2097_v14 = vsub.f32 %v8241_v9, %v11115_v34  ;;  %v2102_v29 = vsub.f32 %v8259_v25, %v11114_v60  ;;  %v11475_v60 = vand.u32 4294901760, %v7708_v12 }
 0x144   : > { %5027 = vmatmul.mubr.msk.f32.gmra.mxu1 %vm362_vm0, %v11406_v58  ;;  %5604 = vmatprep.subr.mxu1 %v7521_v4 }
 0x145   : > { %2078 = vmatmul.mubr.f32.gmra.mxu0 %v2077_v32  ;;  %5028 = vmatprep.mubr.msk.f32.mxu1 %vm367_vm11, %v11406_v58  ;;  %v2090_v32 = vand.u32 4294901760, %v2089_v48  ;;  %v2110_v48 = vsub.f32 %v8274_v16, %v11116_v20  ;;  %v2103_v34 = vand.u32 4294901760, %v2102_v29  ;;  %v11478_v29 = vld [vmem:[#allocation45_spill] sm:$0xff] }
 0x146   : > { %5525 = vmatpush3.msra.mxu0 %v7579_v2  ;;  %5605 = vmatpush3.msra.mxu1 %v7537_v27 }
 0x147   : > { %2086 = vmatprep.mubr.f32.mxu0 %v2085_v13  ;;  %5606 = vmatprep.subr.mxu1 %v7563_v0  ;;  %v2098_v13 = vand.u32 4294901760, %v2097_v14  ;;  %v11476_v14 = vand.u32 4294901760, %v7721_v63  ;;  %v2111_v20 = vand.u32 4294901760, %v2110_v48  ;;  %v11484_v48 = vld [vmem:[#allocation8_spill] sm:$0xff] }
 0x148   : > { %5607 = vmatpush3.msra.mxu1 %v7575_v52  ;;  %5526 = vmatprep.subr.mxu0 %v7597_v35  ;;  %v11485_v37 = vand.u32 4294901760, %v11484_v48 }
 0x149   : > { %5029 = vmatmul.mubr.msk.f32.gmra.mxu1 %vm366_vm14, %v11406_v58  ;;  %5608 = vmatprep.subr.mxu1 %v7581_v7 }
 0x14a   : > { %2091 = vmatmul.mubr.f32.gmra.mxu0 %v2090_v32  ;;  %5609 = vmatpush3.msra.mxu1 %v7583_v47  ;;  %v2115_v32 = vsub.f32 %v8284_v33, %v11119_v26  ;;  %v11480_v26 = vld [vmem:[#allocation6_spill] sm:$0xff] }
 0x14b   : > { %5527 = vmatpush3.msra.mxu0 %v7610_v36  ;;  %2766 = vmatprep.mubr.f32.mxu1 %v11475_v60  ;;  %v11477_v60 = vand.u32 4294901760, %v7752_v42 }
 0x14c   : > { %2099 = vmatprep.mubr.f32.mxu0 %v2098_v13  ;;  %5610 = vmatprep.subr.mxu1 %v7620_v43  ;;  %v2116_v13 = vand.u32 4294901760, %v2115_v32  ;;  %v11487_v32 = vld [vmem:[#allocation52_spill] sm:$0xff] }
 0x14d   : > { %5611 = vmatpush3.msra.mxu1 %v7628_v54  ;;  %5528 = vmatprep.subr.mxu0 %v7615_v39 }
 0x14e   : > { %2769 = vmatmul.mubr.f32.vlgmr.msra.gmra.mxu1 %v11476_v14  ;;  %2104 = vmatmul.mubr.f32.gmra.mxu0 %v2103_v34  ;;  %v11482_v14 = vld [vmem:[#allocation51_spill] sm:$0xff] }
 0x14f   : > { %5529 = vmatpush3.msra.mxu0 %v7618_v1  ;;  %2775 = vmatprep.mubr.f32.mxu1 %v11477_v60  ;;  %v11483_v34 = vand.u32 4294901760, %v11482_v14  ;;  %v11488_v60 = vand.u32 4294901760, %v11487_v32 }
 0x150   : > { %2112 = vmatprep.mubr.f32.mxu0 %v2111_v20  ;;  %5530 = vmatprep.subr.mxu0 %v11478_v29  ;;  %v11486_v20 = vld [vmem:[#allocation7_spill] sm:$0xff] }
 0x151   : > { %5531 = vmatpush3.msra.mxu0 %v11479_v53  ;;  %5740 = vmatprep.subr.mxu1 %v11480_v26  ;;  %v11489_v26 = vld [vmem:[#allocation54_spill] sm:$0xff] }
 0x152   : > { %2778 = vmatmul.mubr.f32.gmra.mxu1 %v11481_v50  ;;  %2117 = vmatmul.mubr.f32.gmra.mxu0 %v2116_v13  ;;  %v11490_v50 = vand.u32 4294901760, %v11489_v26  ;;  %v11491_v13 = vld [vmem:[#allocation11_spill] sm:$0xff] }
 0x153   : > { %2784 = vmatprep.mubr.f32.mxu1 %v11483_v34  ;;  %2556 = vmatprep.mubr.f32.mxu0 %v7708_v12  ;;  %v11492_v53 = vand.u32 4294901760, %v11491_v13  ;;  %v11493_v12 = vld [vmem:[#allocation12_spill] sm:$0xff]  ;;  %v11504_v13 = vld [vmem:[#allocation18_spill] sm:$0xff] }
 0x154   : > { %5660 = vmatprep.subr.mxu0 %v11485_v37  ;;  %5741 = vmatpush3.msra.mxu1 %v11486_v20  ;;  %v11494_v34 = vand.u32 4294901760, %v11493_v12  ;;  %v11495_v37 = vld [vmem:[#allocation15_spill] sm:$0xff]  ;;  %v11498_v20 = vld [vmem:[#allocation56_spill] sm:$0xff]  ;;  %v11505_v12 = vand.u32 4294901760, %v11504_v13 }
 0x155   : > { %5742 = vmatprep.subr.mxu1 %v7210_v22  ;;  %v11496_v48 = vand.u32 4294901760, %v11495_v37  ;;  %v11497_v22 = vld [vmem:[#allocation9_spill] sm:$0xff] }
 0x156   : > { %2787 = vmatmul.mubr.f32.gmra.mxu1 %v11488_v60  ;;  %2558 = vmatmul.mubr.f32.vlgmr.msra.gmra.mxu0 %v7721_v63  ;;  %v11499_v60 = vand.u32 4294901760, %v11498_v20  ;;  %v11500_v63 = vld [vmem:[#allocation57_spill] sm:$0xff] }
 0x157   : > { %2793 = vmatprep.mubr.f32.mxu1 %v11490_v50  ;;  %5661 = vmatpush3.msra.mxu0 %v11492_v53  ;;  %v11501_v50 = vand.u32 4294901760, %v11500_v63  ;;  %v11502_v53 = vld [vmem:[#allocation16_spill] sm:$0xff] }
 0x158   : > { %2563 = vmatprep.mubr.f32.mxu0 %v7752_v42  ;;  %5662 = vmatprep.subr.mxu0 %v11494_v34  ;;  %v11503_v42 = vand.u32 4294901760, %v11502_v53  ;;  %v11506_v34 = vld [vmem:[#allocation13_spill] sm:$0xff] }
 0x159   : > { %5663 = vmatpush3.msra.mxu0 %v11496_v48  ;;  %5743 = vmatpush3.msra.mxu1 %v11497_v22  ;;  %v11507_v48 = vld [vmem:[#allocation58_spill] sm:$0xff] }
 0x15a   : > { %2796 = vmatmul.mubr.f32.gmra.mxu1 %v11499_v60  ;;  %2565 = vmatmul.mubr.f32.gmra.mxu0 %v7757_v59  ;;  %v11508_v22 = vand.u32 4294901760, %v11507_v48  ;;  %v11509_v59 = vld [vmem:[#allocation60_spill] sm:$0xff] }
 0x15b   : > { %2802 = vmatprep.mubr.f32.mxu1 %v11501_v50  ;;  %2570 = vmatprep.mubr.f32.mxu0 %v11482_v14  ;;  %v11510_v60 = vand.u32 4294901760, %v11509_v59  ;;  %v11511_v50 = vld [vmem:[#allocation19_spill] sm:$0xff] }
 0x15c   : > { %5664 = vmatprep.subr.mxu0 %v11503_v42  ;;  %5744 = vmatprep.subr.mxu1 %v11428_v55  ;;  %v11512_v53 = vand.u32 4294901760, %v11511_v50  ;;  %v11513_v55 = vld [vmem:[#allocation20_spill] sm:$0xff] }
 0x15d   : > { %5665 = vmatpush3.msra.mxu0 %v11505_v12  ;;  %5745 = vmatpush3.msra.mxu1 %v11506_v34  ;;  %v6358_v37 = vpop.f32.mrf.mxu1  ;;  %v11514_v42 = vand.u32 4294901760, %v11513_v55  ;;  %v11515_v12 = vand.u32 4294901760, %v7909_v18  ;;  %v11521_v50 = vld [vmem:[#allocation24_spill] sm:$0xff]  ;;  %v11523_v55 = vld [vmem:[#allocation10_spill] sm:$0xff] }
 0x15e   : > { %2805 = vmatmul.mubr.f32.gmra.mxu1 %v11508_v22  ;;  %2572 = vmatmul.mubr.f32.gmra.mxu0 %v11487_v32  ;;  %v11516_v32 = vld [vmem:[#allocation62_spill] sm:$0xff]  ;;  %v11518_v22 = vld [vmem:[#allocation21_spill] sm:$0xff] }
 0x15f   : > { %2811 = vmatprep.mubr.f32.mxu1 %v11510_v60  ;;  %2577 = vmatprep.mubr.f32.mxu0 %v11489_v26  ;;  %v975_v14 = vpop.f32.mrf.mxu1  ;;  %v11517_v34 = vand.u32 4294901760, %v11516_v32  ;;  %v11519_v60 = vand.u32 4294901760, %v11518_v22  ;;  %v11526_v22 = vand.u32 4294901760, %v11444_v62  ;;  %v11532_v62 = vand.u32 4294901760, %v8009_v3 }
 0x160   : > { %5666 = vmatprep.subr.mxu0 %v11512_v53  ;;  %5746 = vmatprep.subr.mxu1 %v11435_v15  ;;  %v11520_v15 = vld [vmem:[#allocation17_spill] sm:$0xff]  ;;  %v11522_v53 = vand.u32 4294901760, %v11521_v50 }
 0x161   : > { %5667 = vmatpush3.msra.mxu0 %v11514_v42  ;;  %5747 = vmatpush3.msra.mxu1 %v7264_v5  ;;  %v6361_v13 = vpop.f32.mrf.mxu1  ;;  %v11524_v42 = vand.u32 4294901760, %v11523_v55 }
 0x162   : > { %2814 = vmatmul.mubr.f32.gmra.mxu1 %v11515_v12  ;;  %2579 = vmatmul.mubr.f32.gmra.mxu0 %v11498_v20 }
 0x163   : > { %2820 = vmatprep.mubr.f32.mxu1 %v11517_v34  ;;  %2584 = vmatprep.mubr.f32.mxu0 %v11500_v63  ;;  %v987_v26 = vpop.f32.mrf.mxu1  ;;  %v11525_v63 = vand.u32 4294901760, %v7965_v41 }
 0x164   : > { %5668 = vmatprep.subr.mxu0 %v11519_v60  ;;  %5748 = vmatprep.subr.mxu1 %v11520_v15  ;;  %v11527_v60 = vld [vmem:[#allocation22_spill] sm:$0xff]  ;;  %v11528_v15 = vld [vmem:[#allocation27_spill] sm:$0xff] }
 0x165   : > { %5669 = vmatpush3.msra.mxu0 %v11522_v53  ;;  %5749 = vmatpush3.msra.mxu1 %v7293_v21  ;;  %v6364_v5 = vpop.f32.mrf.mxu1  ;;  %v11529_v50 = vand.u32 4294901760, %v11528_v15  ;;  %v11530_v53 = vld [vmem:[#allocation23_spill] sm:$0xff]  ;;  %v11536_v15 = vld [vmem:[#allocation30_spill] sm:$0xff] }
 0x166   : > { %2823 = vmatmul.mubr.f32.gmra.mxu1 %v11524_v42  ;;  %2586 = vmatmul.mubr.f32.gmra.mxu0 %v11507_v48  ;;  %v6318_v20 = vpop.f32.mrf.mxu0 }
 0x167   : > { %2829 = vmatprep.mubr.f32.mxu1 %v11525_v63  ;;  %2591 = vmatprep.mubr.f32.mxu0 %v11509_v59  ;;  %v8397_v12 = vadd.f32 %v6358_v37, %v6318_v20  ;;  %v999_v34 = vpop.f32.mrf.mxu1  ;;  %v11531_v63 = vand.u32 4294901760, %v7992_v8 }
 0x168   : > { %5670 = vmatprep.subr.mxu0 %v11526_v22  ;;  %5750 = vmatprep.subr.mxu1 %v11527_v60  ;;  %v714_v21 = vpop.f32.mrf.mxu0  ;;  %v11533_v22 = vld [vmem:[#allocation28_spill] sm:$0xff] }
 0x169   : > { %5671 = vmatpush3.msra.mxu0 %v11529_v50  ;;  %5751 = vmatpush3.msra.mxu1 %v11530_v53  ;;  %v8405_v48 = vadd.f32 %v975_v14, %v714_v21  ;;  %v6367_v42 = vpop.f32.mrf.mxu1  ;;  %v11534_v60 = vand.u32 4294901760, %v11533_v22  ;;  %v11535_v14 = vld [vmem:[#allocation25_spill] sm:$0xff]  ;;  %v11537_v50 = vand.u32 4294901760, %v11536_v15 }
 0x16a   : > { %2832 = vmatmul.mubr.f32.gmra.mxu1 %v11531_v63  ;;  %2593 = vmatmul.mubr.f32.gmra.mxu0 %v7909_v18  ;;  %v6321_v37 = vpop.f32.mrf.mxu0  ;;  %v11538_v63 = vld [vmem:[#allocation64_spill] sm:$0xff] }
 0x16b   : > { %2838 = vmatprep.mubr.f32.mxu1 %v11532_v62  ;;  %2598 = vmatprep.mubr.f32.mxu0 %v11516_v32  ;;  %v8413_v59 = vadd.f32 %v6361_v13, %v6321_v37  ;;  %v1011_v20 = vpop.f32.mrf.mxu1  ;;  %v11539_v62 = vand.u32 4294901760, %v11538_v63  ;;  %v11540_v32 = vld [vmem:[#allocation26_spill] sm:$0xff] }
 0x16c   : > { %5672 = vmatprep.subr.mxu0 %v11534_v60  ;;  %5752 = vmatprep.subr.mxu1 %v11535_v14  ;;  %v734_v21 = vpop.f32.mrf.mxu0  ;;  %v11541_v37 = vand.u32 4294901760, %v11540_v32  ;;  %v11542_v14 = vld [vmem:[#allocation31_spill] sm:$0xff] }
 0x16d   : > { %5673 = vmatpush3.msra.mxu0 %v11537_v50  ;;  %5753 = vmatpush3.msra.mxu1 %v7357_v56  ;;  %v8421_v18 = vadd.f32 %v987_v26, %v734_v21  ;;  %v6370_v53 = vpop.f32.mrf.mxu1  ;;  %v11543_v15 = vand.u32 4294901760, %v11542_v14  ;;  %v11544_v26 = vld [vmem:[#allocation33_spill] sm:$0xff] }
 0x16e   : > { %2841 = vmatmul.mubr.f32.gmra.mxu1 %v11539_v62  ;;  %2600 = vmatmul.mubr.f32.gmra.mxu0 %v11523_v55  ;;  %v6324_v13 = vpop.f32.mrf.mxu0  ;;  %v11545_v21 = vand.u32 4294901760, %v11544_v26  ;;  %v11546_v62 = vand.u32 4294901760, %v8068_v28  ;;  %v11553_v26 = vld [vmem:[#allocation32_spill] sm:$0xff] }
 0x16f   : > { %2847 = vmatprep.mubr.f32.mxu1 %v11541_v37  ;;  %2605 = vmatprep.mubr.f32.mxu0 %v7965_v41  ;;  %v8429_v22 = vadd.f32 %v6364_v5, %v6324_v13  ;;  %v1023_v60 = vpop.f32.mrf.mxu1  ;;  %v11547_v5 = vand.u32 4294901760, %v8083_v57  ;;  %v11548_v37 = vld [vmem:[#allocation34_spill] sm:$0xff] }
 0x170   : > { %5674 = vmatprep.subr.mxu0 %v11543_v15  ;;  %5754 = vmatprep.subr.mxu1 %v7382_v38  ;;  %v754_v56 = vpop.f32.mrf.mxu0  ;;  %v11549_v14 = vand.u32 4294901760, %v11548_v37  ;;  %v11551_v15 = vld [vmem:[#allocation36_spill] sm:$0xff]  ;;  %v11556_v37 = vand.u32 4294901760, %v11463_v45 }
 0x171   : > { %5675 = vmatpush3.msra.mxu0 %v11545_v21  ;;  %5755 = vmatpush3.msra.mxu1 %v7390_v61  ;;  %v8437_v55 = vadd.f32 %v999_v34, %v754_v56  ;;  %v6373_v50 = vpop.f32.mrf.mxu1  ;;  %v11550_v61 = vld [vmem:[#allocation29_spill] sm:$0xff]  ;;  %v11552_v56 = vand.u32 4294901760, %v11551_v15  ;;  %v577_v45 = vld [vmem:[%s10951_s2 + $0x1f8] sm:$0xff] }
 0x172   : > { %2850 = vmatmul.mubr.f32.gmra.mxu1 %v11546_v62  ;;  %2607 = vmatmul.mubr.f32.gmra.mxu0 %v7992_v8  ;;  %v6327_v41 = vpop.f32.mrf.mxu0  ;;  %v11554_v62 = vand.u32 4294901760, %v8099_v23 }
 0x173   : > { %2856 = vmatprep.mubr.f32.mxu1 %v11547_v5  ;;  %2612 = vmatprep.mubr.f32.mxu0 %v8009_v3  ;;  %v8445_v38 = vadd.f32 %v6367_v42, %v6327_v41  ;;  %v1035_v13 = vpop.f32.mrf.mxu1  ;;  %v11555_v42 = vand.u32 4294901760, %v8123_v30 }
 0x174   : > { %5676 = vmatprep.subr.mxu0 %v11549_v14  ;;  %5756 = vmatprep.subr.mxu1 %v11550_v61  ;;  %v774_v34 = vpop.f32.mrf.mxu0  ;;  %v11557_v14 = vld [vmem:[#allocation39_spill] sm:$0xff] }
 0x175   : > { %5677 = vmatpush3.msra.mxu0 %v11552_v56  ;;  %5757 = vmatpush3.msra.mxu1 %v11553_v26  ;;  %v8453_v8 = vadd.f32 %v1011_v20, %v774_v34  ;;  %v6376_v21 = vpop.f32.mrf.mxu1  ;;  %v11558_v61 = vand.u32 4294901760, %v11557_v14  ;;  %v11559_v34 = vld [vmem:[#allocation35_spill] sm:$0xff]  ;;  %v11560_v56 = vand.u32 4294901760, %v8137_v49  ;;  %v561_v26 = vld [vmem:[%s10951_s2 + $0x178] sm:$0xff] }
 0x176   : > { %2859 = vmatmul.mubr.f32.gmra.mxu1 %v11554_v62  ;;  %2614 = vmatmul.mubr.f32.gmra.mxu0 %v11538_v63  ;;  %v6330_v3 = vpop.f32.mrf.mxu0  ;;  %v11562_v62 = vld [vmem:[#allocation40_spill] sm:$0xff] }
 0x177   : > { %2865 = vmatprep.mubr.f32.mxu1 %v11555_v42  ;;  %2619 = vmatprep.mubr.f32.mxu0 %v11540_v32  ;;  %v8461_v41 = vadd.f32 %v6370_v53, %v6330_v3  ;;  %v1047_v5 = vpop.f32.mrf.mxu1  ;;  %v11563_v3 = vand.u32 4294901760, %v11562_v62  ;;  %v11564_v42 = vld [vmem:[#allocation41_spill] sm:$0xff]  ;;  %v11571_v62 = vld [vmem:[#allocation42_spill] sm:$0xff] }
 0x178   : > { %5678 = vmatprep.subr.mxu0 %v11556_v37  ;;  %5758 = vmatprep.subr.mxu1 %v7441_v19  ;;  %v794_v20 = vpop.f32.mrf.mxu0  ;;  %v11561_v19 = vand.u32 4294901760, %v8152_v31  ;;  %v11565_v37 = vand.u32 4294901760, %v11564_v42 }
 0x179   : > { %5679 = vmatpush3.msra.mxu0 %v11558_v61  ;;  %5759 = vmatpush3.msra.mxu1 %v11559_v34  ;;  %v8469_v63 = vadd.f32 %v1023_v60, %v794_v20  ;;  %v6379_v15 = vpop.f32.mrf.mxu1  ;;  %v11566_v20 = vld [vmem:[#allocation38_spill] sm:$0xff]  ;;  %v11568_v61 = vand.u32 4294901760, %v8177_v6 }
 0x17a   : > { %2868 = vmatmul.mubr.f32.gmra.mxu1 %v11560_v56  ;;  %2621 = vmatmul.mubr.f32.gmra.mxu0 %v8068_v28  ;;  %v6333_v53 = vpop.f32.mrf.mxu0  ;;  %v8501_v56 = vand.u32 4294901760, %v561_v26 }
 0x17b   : > { %2874 = vmatprep.mubr.f32.mxu1 %v11561_v19  ;;  %2626 = vmatprep.mubr.f32.mxu0 %v8083_v57  ;;  %v8480_v32 = vadd.f32 %v6373_v50, %v6333_v53  ;;  %v1059_v60 = vpop.f32.mrf.mxu1  ;;  %v8493_v57 = vand.u32 4294901760, %v577_v45  ;;  %v576_v50 = vld [vmem:[%s10951_s2 + $0x1f0] sm:$0xff]  ;;  %v11570_v53 = vand.u32 4294901760, %v8200_v11 }
 0x17c   : > { %5680 = vmatprep.subr.mxu0 %v11563_v3  ;;  %5760 = vmatprep.subr.mxu1 %v7449_v40  ;;  %v814_v28 = vpop.f32.mrf.mxu0  ;;  %11569 = vst [vmem:[#allocation45_spill] sm:$0xff] %v8501_v56  ;;  %v11572_v3 = vand.u32 4294901760, %v11571_v62  ;;  %v8514_v42 = vand.u32 4294901760, %v576_v50 }
 0x17d   : > { %5681 = vmatpush3.msra.mxu0 %v11565_v37  ;;  %5761 = vmatpush3.msra.mxu1 %v11566_v20  ;;  %v8491_v14 = vadd.f32 %v1035_v13, %v814_v28  ;;  %11567 = vst [vmem:[#allocation43_spill] sm:$0xff] %v8493_v57  ;;  %v560_v13 = vld [vmem:[%s10951_s2 + $0x170] sm:$0xff]  ;;  %v11574_v37 = vand.u32 4294901760, %v11473_v17  ;;  %v8532_v17 = vsub.f32 %v561_v26, %v8501_v56 }
 0x17e   : > { %2877 = vmatmul.mubr.f32.gmra.mxu1 %v11568_v61  ;;  %2628 = vmatmul.mubr.f32.gmra.mxu0 %v8099_v23  ;;  %v6438_v40 = vpop.f32.mrf.mxu1  ;;  %v6336_v34 = vpop.f32.mrf.mxu0  ;;  %11573 = vst [vmem:[#allocation6_spill] sm:$0xff] %v8514_v42  ;;  %v11577_v61 = vand.u32 4294901760, %v8224_v44  ;;  %v8548_v62 = vsub.f32 %v576_v50, %v8514_v42 }
 0x17f   : > { %2883 = vmatprep.mubr.f32.mxu1 %v11570_v53  ;;  %2633 = vmatprep.mubr.f32.mxu0 %v8123_v30  ;;  %v8509_v19 = vadd.f32 %v6376_v21, %v6336_v34  ;;  %v8522_v30 = vsub.f32 %v577_v45, %v8493_v57  ;;  %v8524_v21 = vand.u32 4294901760, %v560_v13  ;;  %11578 = vst [vmem:[#allocation7_spill] sm:$0xff] %v8532_v17  ;;  %v575_v45 = vld [vmem:[%s10951_s2 + $0x1e8] sm:$0xff]  ;;  %v11580_v53 = vand.u32 4294901760, %v7561_v10 }
 0x180   : > { %5682 = vmatprep.subr.mxu0 %v11572_v3  ;;  %5762 = vmatprep.subr.mxu1 %v7492_v46  ;;  %v1339_v23 = vpop.f32.mrf.mxu1  ;;  %v834_v28 = vpop.f32.mrf.mxu0  ;;  %11581 = vst [vmem:[#allocation52_spill] sm:$0xff] %v8548_v62  ;;  %v11582_v3 = vand.u32 4294901760, %v7579_v2 }
 0x181   : > { %5683 = vmatpush3.msra.mxu0 %v11574_v37  ;;  %5763 = vmatpush3.msra.mxu1 %v7511_v24  ;;  %v8519_v20 = vadd.f32 %v1047_v5, %v834_v28  ;;  %11575 = vst [vmem:[#allocation51_spill] sm:$0xff] %v8522_v30  ;;  %11576 = vst [vmem:[#allocation8_spill] sm:$0xff] %v8524_v21  ;;  %v11579_v24 = vand.u32 4294901760, %v8241_v9  ;;  %v8557_v10 = vsub.f32 %v560_v13, %v8524_v21 }
 0x182   : > { %2886 = vmatmul.mubr.f32.gmra.mxu1 %v11577_v61  ;;  %2635 = vmatmul.mubr.f32.gmra.mxu0 %v8137_v49  ;;  %v8529_v46 = vpop.f32.mrf.mxu1  ;;  %v6339_v34 = vpop.f32.mrf.mxu0  ;;  %v11584_v28 = vand.u32 4294901760, %v8259_v25  ;;  %v11586_v37 = vand.u32 4294901760, %v8274_v16  ;;  %v574_v61 = vld [vmem:[%s10951_s2 + $0x1e0] sm:$0xff] }
 0x183   : > { %2892 = vmatprep.mubr.f32.mxu1 %v11579_v24  ;;  %2640 = vmatprep.mubr.f32.mxu0 %v8152_v31  ;;  %v8537_v5 = vadd.f32 %v6379_v15, %v6339_v34  ;;  %v11126_v15 = vand.u32 4294901760, %v8522_v30  ;;  %11583 = vst [vmem:[#allocation54_spill] sm:$0xff] %v8557_v10 }
 0x184   : > { %5684 = vmatprep.subr.mxu0 %v11580_v53  ;;  %5764 = vmatprep.subr.mxu1 %v7521_v4  ;;  %v8545_v49 = vpop.f32.mrf.mxu1  ;;  %v854_v26 = vpop.f32.mrf.mxu0  ;;  %v559_v4 = vld [vmem:[%s10951_s2 + $0x168] sm:$0xff]  ;;  %v11124_v53 = vand.u32 4294901760, %v8548_v62 }
 0x185   : > { %5685 = vmatpush3.msra.mxu0 %v11582_v3  ;;  %5765 = vmatpush3.msra.mxu1 %v7537_v27  ;;  %v8553_v31 = vadd.f32 %v1059_v60, %v854_v26  ;;  %v11125_v27 = vand.u32 4294901760, %v8532_v17  ;;  %v8568_v60 = vand.u32 4294901760, %v575_v45  ;;  %v8583_v26 = vand.u32 4294901760, %v559_v4  ;;  %v558_v3 = vld [vmem:[%s10951_s2 + $0x160] sm:$0xff] }
 0x186   : > { %2895 = vmatmul.mubr.f32.gmra.mxu1 %v11584_v28  ;;  %2642 = vmatmul.mubr.f32.gmra.mxu0 %v8177_v6  ;;  %v8565_v2 = vpop.f32.mrf.mxu1  ;;  %v6398_v50 = vpop.f32.mrf.mxu0  ;;  %v11587_v6 = vand.u32 4294901760, %v7597_v35  ;;  %v11123_v35 = vand.u32 4294901760, %v8557_v10 }
 0x187   : > { %11585 = vst [vmem:[#allocation11_spill] sm:$0xff] %v8568_v60  ;;  %2901 = vmatprep.mubr.f32.mxu1 %v11586_v37  ;;  %2647 = vmatprep.mubr.f32.mxu0 %v8200_v11  ;;  %v1161_v13 = vadd.f32 %v6398_v50, %v8397_v12  ;;  %11588 = vst [vmem:[#allocation12_spill] sm:$0xff] %v8583_v26  ;;  %v11589_v11 = vand.u32 4294901760, %v7610_v36  ;;  %v3748_v12 = vsub.f32 %v8522_v30, %v11126_v15 }
 0x188   : > { %5766 = vmatprep.subr.mxu1 %v7563_v0  ;;  %5686 = vmatprep.subr.mxu0 %v11587_v6  ;;  %v8580_v34 = vpop.f32.mrf.mxu1  ;;  %v1153_v24 = vpop.f32.mrf.mxu0  ;;  %v11590_v50 = vand.u32 4294901760, %v8284_v33  ;;  %v8607_v37 = vsub.f32 %v575_v45, %v8568_v60  ;;  %v8609_v6 = vand.u32 4294901760, %v574_v61 }
 0x189   : > { %5767 = vmatpush3.msra.mxu1 %v7575_v52  ;;  %5687 = vmatpush3.msra.mxu0 %v11589_v11  ;;  %v1154_v0 = vadd.f32 %v1153_v24, %v8405_v48  ;;  %v8596_v28 = vadd.f32 %v6438_v40, %v1161_v13  ;;  %v3636_v52 = vsub.f32 %v8532_v17, %v11125_v27  ;;  %v11593_v24 = vld [vmem:[#allocation44_spill] sm:$0xff]  ;;  %v8632_v11 = vand.u32 4294901760, %v558_v3 }
 0x18a   : > { %2904 = vmatmul.mubr.f32.gmra.mxu1 %v11590_v50  ;;  %5768 = vmatprep.subr.mxu1 %v7581_v7  ;;  %v8604_v36 = vpop.f32.mrf.mxu1  ;;  %v6401_v48 = vpop.f32.mrf.mxu0  ;;  %11591 = vst [vmem:[#allocation15_spill] sm:$0xff] %v8607_v37  ;;  %11592 = vst [vmem:[#allocation9_spill] sm:$0xff] %v8609_v6  ;;  %v573_v7 = vld [vmem:[%s10951_s2 + $0x1d8] sm:$0xff]  ;;  %v3643_v50 = vsub.f32 %v8557_v10, %v11123_v35 }
 0x18b   : > { %2649 = vmatmul.mubr.f32.gmra.mxu0 %v8224_v44  ;;  %5769 = vmatpush3.msra.mxu1 %v7583_v47  ;;  %v1175_v40 = vadd.f32 %v6401_v48, %v8413_v59  ;;  %v8617_v13 = vadd.f32 %v1339_v23, %v1154_v0  ;;  %v3755_v47 = vsub.f32 %v8548_v62, %v11124_v53  ;;  %v11596_v23 = vand.u32 4294901760, %v7615_v39  ;;  %v557_v48 = vld [vmem:[%s10951_s2 + $0x158] sm:$0xff] }
 0x18c   : > { %5062 = vmatprep.mubr.msk.f32.mxu1 %vm307_vm2, %v11406_v58  ;;  %2654 = vmatprep.mubr.f32.mxu0 %v8241_v9  ;;  %v8624_v45 = vpop.f32.mrf.mxu1  ;;  %v1167_v44 = vpop.f32.mrf.mxu0  ;;  %v8630_v59 = vsub.f32 %v559_v4, %v8583_v26  ;;  %11595 = vst [vmem:[#allocation57_spill] sm:$0xff] %v8632_v11  ;;  %v3749_v0 = vand.u32 4294901760, %v3748_v12  ;;  %v3637_v39 = vand.u32 4294901760, %v3636_v52  ;;  %v8656_v35 = vand.u32 4294901760, %v573_v7 }
 0x18d   : > { %5770 = vmatprep.subr.mxu1 %v7620_v43  ;;  %5688 = vmatprep.subr.mxu0 %v11596_v23  ;;  %v1168_v9 = vadd.f32 %v1167_v44, %v8421_v18  ;;  %v8645_v4 = vadd.f32 %v8529_v46, %v1175_v40  ;;  %v11597_v43 = vand.u32 4294901760, %v7618_v1  ;;  %v11131_v44 = vand.u32 4294901760, %v8607_v37  ;;  %v11600_v46 = vld [vmem:[#allocation5_spill] sm:$0xff] }
 0x18e   : > { %11594 = vst [vmem:[#allocation56_spill] sm:$0xff] %v8630_v59  ;;  %5771 = vmatpush3.msra.mxu1 %v7628_v54  ;;  %v8650_v12 = vpop.f32.mrf.mxu1  ;;  %v6404_v18 = vpop.f32.mrf.mxu0  ;;  %v8654_v23 = vsub.f32 %v574_v61, %v8609_v6  ;;  %11599 = vst [vmem:[#allocation18_spill] sm:$0xff] %v8656_v35  ;;  %v572_v54 = vld [vmem:[%s10951_s2 + $0x1d0] sm:$0xff]  ;;  %v3756_v53 = vand.u32 4294901760, %v3755_v47  ;;  %v8701_v47 = vsub.f32 %v573_v7, %v8656_v35 }
 0x18f   : > { %5689 = vmatpush3.msra.mxu0 %v11597_v43  ;;  %5063 = vmatmul.mubr.msk.f32.vlgmr.msra.gmra.mxu1 %vm306_vm3, %v11406_v58  ;;  %v1189_v1 = vadd.f32 %v6404_v18, %v8429_v22  ;;  %v8668_v52 = vadd.f32 %v8545_v49, %v1168_v9  ;;  %v11601_v61 = vld [vmem:[#allocation47_spill] sm:$0xff]  ;;  %v8679_v22 = vsub.f32 %v558_v3, %v8632_v11  ;;  %v8681_v18 = vand.u32 4294901760, %v557_v48 }
 0x190   : > { %11598 = vst [vmem:[#allocation16_spill] sm:$0xff] %v8654_v23  ;;  %2656 = vmatmul.mubr.f32.gmra.mxu0 %v8259_v25  ;;  %5064 = vmatprep.mubr.msk.f32.mxu1 %vm311_vm4, %v11406_v58  ;;  %v8675_v40 = vpop.f32.mrf.mxu1  ;;  %v1181_v43 = vpop.f32.mrf.mxu0  ;;  %v556_v49 = vld [vmem:[%s10951_s2 + $0x150] sm:$0xff]  ;;  %v11604_v9 = vand.u32 4294901760, %v11478_v29  ;;  %v11605_v25 = vld [vmem:[#allocation46_spill] sm:$0xff]  ;;  %v3762_v10 = vsub.f32 %v8607_v37, %v11131_v44  ;;  %11607 = vst [vmem:[#allocation60_spill] sm:$0xff] %v8701_v47  ;;  %v11621_v37 = vand.u32 4294901760, %v8701_v47 }
 0x191   : > { %2661 = vmatprep.mubr.f32.mxu0 %v8274_v16  ;;  %11602 = vst [vmem:[#allocation13_spill] sm:$0xff] %v8679_v22  ;;  %11603 = vst [vmem:[#allocation58_spill] sm:$0xff] %v8681_v18  ;;  %5900 = vmatprep.subr.mxu1 %v3749_v0  ;;  %v3644_v16 = vand.u32 4294901760, %v3643_v50  ;;  %v1182_v27 = vadd.f32 %v1181_v43, %v8437_v55  ;;  %v8690_v15 = vadd.f32 %v8565_v2, %v1189_v1  ;;  %v571_v2 = vld [vmem:[%s10951_s2 + $0x1c8] sm:$0xff]  ;;  %v11610_v1 = vld [vmem:[#allocation48_spill] sm:$0xff] }
 0x192   : > { %5690 = vmatprep.subr.mxu0 %v11604_v9  ;;  %v11606_v3 = vand.u32 4294901760, %v11605_v25  ;;  %5901 = vmatpush3.msra.mxu1 %v3637_v39  ;;  %v8697_v62 = vpop.f32.mrf.mxu1  ;;  %v6407_v29 = vpop.f32.mrf.mxu0  ;;  %v11134_v0 = vand.u32 4294901760, %v8654_v23  ;;  %v8703_v55 = vand.u32 4294901760, %v572_v54  ;;  %v8714_v39 = vand.u32 4294901760, %v556_v49 }
 0x193   : > { %5065 = vmatmul.mubr.msk.f32.gmra.mxu1 %vm310_vm5, %v11406_v58  ;;  %v1203_v50 = vadd.f32 %v6407_v29, %v8445_v38  ;;  %v8717_v7 = vadd.f32 %v8580_v34, %v1182_v27  ;;  %v11611_v43 = vand.u32 4294901760, %v8630_v59  ;;  %v8734_v34 = vsub.f32 %v557_v48, %v8681_v18  ;;  %5902 = vmatprep.subr.mxu1 %v3756_v53  ;;  %v555_v29 = vld [vmem:[%s10951_s2 + $0x148] sm:$0xff] }
 0x194   : > { %5691 = vmatpush3.msra.mxu0 %v11606_v3  ;;  %11608 = vst [vmem:[#allocation19_spill] sm:$0xff] %v8703_v55  ;;  %11609 = vst [vmem:[#allocation20_spill] sm:$0xff] %v8714_v39  ;;  %5066 = vmatprep.mubr.msk.f32.mxu1 %vm315_vm6, %v11406_v58  ;;  %v8730_v38 = vpop.f32.mrf.mxu1  ;;  %v1195_v25 = vpop.f32.mrf.mxu0  ;;  %v8738_v3 = vand.u32 4294901760, %v571_v2  ;;  %v3763_v44 = vand.u32 4294901760, %v3762_v10  ;;  %v3769_v48 = vsub.f32 %v8654_v23, %v11134_v0  ;;  %v11617_v0 = vand.u32 4294901760, %v8679_v22 }
 0x195   : > { %2663 = vmatmul.mubr.f32.gmra.mxu0 %v8284_v33  ;;  %v3650_v33 = vsub.f32 %v8630_v59, %v11611_v43  ;;  %11612 = vst [vmem:[#allocation62_spill] sm:$0xff] %v8734_v34  ;;  %5820 = vmatprep.subr.mxu0 %v8493_v57  ;;  %v1196_v9 = vadd.f32 %v1195_v25, %v8453_v8  ;;  %v570_v59 = vld [vmem:[%s10951_s2 + $0x1c0] sm:$0xff] }
 0x196   : > { %5030 = vmatprep.mubr.msk.f32.mxu0 %vm307_vm2, %v11406_v58  ;;  %11613 = vst [vmem:[#allocation21_spill] sm:$0xff] %v8738_v3  ;;  %v8744_v43 = vadd.f32 %v8604_v36, %v1203_v50  ;;  %5903 = vmatpush3.msra.mxu1 %v3644_v16  ;;  %v8749_v27 = vpop.f32.mrf.mxu1  ;;  %v6410_v53 = vpop.f32.mrf.mxu0  ;;  %v8753_v25 = vsub.f32 %v572_v54, %v8703_v55  ;;  %v11616_v16 = vld [vmem:[#allocation49_spill] sm:$0xff] }
 0x197   : > { %5067 = vmatmul.mubr.msk.f32.gmra.mxu1 %vm314_vm7, %v11406_v58  ;;  %v1217_v10 = vadd.f32 %v6410_v53, %v8461_v41  ;;  %v8768_v36 = vsub.f32 %v556_v49, %v8714_v39  ;;  %v8771_v54 = vadd.f32 %v8624_v45, %v1196_v9  ;;  %v3651_v50 = vand.u32 4294901760, %v3650_v33  ;;  %v554_v9 = vld [vmem:[%s10951_s2 + $0x140] sm:$0xff]  ;;  %5904 = vmatprep.subr.mxu1 %v3763_v44 }
 0x198   : > { %11614 = vst [vmem:[#allocation17_spill] sm:$0xff] %v8753_v25  ;;  %5068 = vmatprep.mubr.msk.f32.mxu1 %vm319_vm8, %v11406_v58  ;;  %v3657_v8 = vsub.f32 %v8679_v22, %v11617_v0  ;;  %v8781_v23 = vpop.f32.mrf.mxu1  ;;  %v1209_v41 = vpop.f32.mrf.mxu0  ;;  %v8784_v53 = vand.u32 4294901760, %v555_v29  ;;  %v8793_v33 = vsub.f32 %v571_v2, %v8738_v3  ;;  %v8795_v0 = vand.u32 4294901760, %v570_v59 }
 0x199   : > { %5031 = vmatmul.mubr.msk.f32.vlgmr.msra.gmra.mxu0 %vm306_vm3, %v11406_v58  ;;  %11615 = vst [vmem:[#allocation24_spill] sm:$0xff] %v8768_v36  ;;  %v1210_v45 = vadd.f32 %v1209_v41, %v8469_v63  ;;  %v8801_v49 = vadd.f32 %v8650_v12, %v1217_v10  ;;  %v3770_v22 = vand.u32 4294901760, %v3769_v48  ;;  %v3776_v63 = vsub.f32 %v8701_v47, %v11621_v37  ;;  %v569_v37 = vld [vmem:[%s10951_s2 + $0x1b8] sm:$0xff]  ;;  %v11622_v10 = vld [vmem:[#allocation50_spill] sm:$0xff] }
 0x19a   : > { %5821 = vmatpush3.msra.mxu0 %v8501_v56  ;;  %11618 = vst [vmem:[#allocation10_spill] sm:$0xff] %v8784_v53  ;;  %5032 = vmatprep.mubr.msk.f32.mxu0 %vm311_vm4, %v11406_v58  ;;  %11619 = vst [vmem:[#allocation22_spill] sm:$0xff] %v8793_v33  ;;  %v8807_v41 = vpop.f32.mrf.mxu1  ;;  %v6413_v2 = vpop.f32.mrf.mxu0  ;;  %vm11629_vm2 = vcmp.eq.s32.totalorder %v11622_v10, %v11600_v46 }
 0x19b   : > { %5822 = vmatprep.subr.mxu0 %v8514_v42  ;;  %11620 = vst [vmem:[#allocation27_spill] sm:$0xff] %v8795_v0  ;;  %5069 = vmatmul.mubr.msk.f32.gmra.mxu1 %vm318_vm9, %v11406_v58  ;;  %v1231_v12 = vadd.f32 %v6413_v2, %v8480_v32  ;;  %v8824_v48 = vadd.f32 %v8675_v40, %v1210_v45  ;;  %v3658_v32 = vand.u32 4294901760, %v3657_v8  ;;  %v11623_v2 = vand.u32 4294901760, %v8734_v34 }
 0x19c   : > { %5823 = vmatpush3.msra.mxu0 %v8524_v21  ;;  %5070 = vmatprep.mubr.msk.f32.mxu1 %vm323_vm10, %v11406_v58  ;;  %v8837_v17 = vpop.f32.mrf.mxu1  ;;  %v1223_v47 = vpop.f32.mrf.mxu0  ;;  %v8840_v40 = vsub.f32 %v555_v29, %v8784_v53  ;;  %v8842_v45 = vand.u32 4294901760, %v554_v9  ;;  %v8848_v8 = vsub.f32 %v570_v59, %v8795_v0  ;;  %v3777_v29 = vand.u32 4294901760, %v3776_v63  ;;  %v568_v59 = vld [vmem:[%s10951_s2 + $0x1b0] sm:$0xff] }
 0x19d   : > { %5033 = vmatmul.mubr.msk.f32.gmra.mxu0 %vm310_vm5, %v11406_v58  ;;  %v3664_v44 = vsub.f32 %v8734_v34, %v11623_v2  ;;  %5824 = vmatprep.subr.mxu0 %v8568_v60  ;;  %v1224_v21 = vadd.f32 %v1223_v47, %v8491_v14  ;;  %v553_v2 = vld [vmem:[%s10951_s2 + $0x138] sm:$0xff]  ;;  %v8854_v34 = vadd.f32 %v8697_v62, %v1231_v12  ;;  %v8862_v42 = vand.u32 4294901760, %v569_v37 }
 0x19e   : > { %5034 = vmatprep.mubr.msk.f32.mxu0 %vm315_vm6, %v11406_v58  ;;  %11624 = vst [vmem:[#allocation23_spill] sm:$0xff] %v8840_v40  ;;  %11625 = vst [vmem:[#allocation28_spill] sm:$0xff] %v8842_v45  ;;  %5905 = vmatpush3.msra.mxu1 %v3651_v50  ;;  %v11627_v50 = vand.u32 4294901760, %v8753_v25  ;;  %v8860_v47 = vpop.f32.mrf.mxu1  ;;  %v11630_v62 = vand.u32 4294901760, %v8768_v36  ;;  %v11635_v60 = vand.u32 4294901760, %v8793_v33 }
 0x19f   : > { %11626 = vst [vmem:[#allocation25_spill] sm:$0xff] %v8848_v8  ;;  %5825 = vmatpush3.msra.mxu0 %v8583_v26  ;;  %5906 = vmatprep.subr.mxu1 %v3770_v22  ;;  %11628 = vst [vmem:[#allocation30_spill] sm:$0xff] %v8862_v42  ;;  %v6416_v63 = vpop.f32.mrf.mxu0  ;;  %v8881_v12 = vadd.f32 %v8730_v38, %v1224_v21  ;;  %v8898_v21 = vand.u32 4294901760, %v553_v2  ;;  %v3665_v38 = vand.u32 4294901760, %v3664_v44  ;;  %v552_v44 = vld [vmem:[%s10951_s2 + $0x130] sm:$0xff] }
 0x1a0   : > { %v3783_v14 = vsub.f32 %v8753_v25, %v11627_v50  ;;  %5071 = vmatmul.mubr.msk.f32.gmra.mxu1 %vm11629_vm2, %v11406_v58  ;;  %v8878_v22 = vsub.f32 %v8768_v36, %v11630_v62  ;;  %v11631_v50 = vld [vmem:[#allocation53_spill] sm:$0xff]  ;;  %v1245_v25 = vadd.f32 %v6416_v63, %v8509_v19  ;;  %v8892_v26 = vpop.f32.mrf.mxu1  ;;  %v8896_v36 = vsub.f32 %v554_v9, %v8842_v45  ;;  %v551_v19 = vld [vmem:[%s10951_s2 + $0x128] sm:$0xff] }
 0x1a1   : > { %5035 = vmatmul.mubr.msk.f32.gmra.mxu0 %vm314_vm7, %v11406_v58  ;;  %vm11632_vm3 = vcmp.eq.s32.totalorder %v11631_v50, %v7638_v51  ;;  %11634 = vst [vmem:[#allocation26_spill] sm:$0xff] %v8898_v21  ;;  %5826 = vmatprep.subr.mxu0 %v8609_v6  ;;  %v3790_v56 = vsub.f32 %v8793_v33, %v11635_v60  ;;  %v1237_v30 = vpop.f32.mrf.mxu0  ;;  %v8905_v63 = vand.u32 4294901760, %v568_v59  ;;  %vm11649_vm7 = vmmov %vm11629_vm2 }
 0x1a2   : > { %5072 = vmatprep.mubr.msk.f32.mxu1 %vm11632_vm3, %v11406_v58  ;;  %5036 = vmatprep.mubr.msk.f32.mxu0 %vm319_vm8, %v11406_v58  ;;  %11633 = vst [vmem:[#allocation64_spill] sm:$0xff] %v8896_v36  ;;  %v3784_v9 = vand.u32 4294901760, %v3783_v14  ;;  %v1238_v62 = vadd.f32 %v1237_v30, %v8519_v20  ;;  %v8910_v57 = vsub.f32 %v569_v37, %v8862_v42  ;;  %v3672_v20 = vand.u32 4294901760, %v8878_v22  ;;  %v567_v37 = vld [vmem:[%s10951_s2 + $0x1a8] sm:$0xff] }
 0x1a3   : > { %5907 = vmatpush3.msra.mxu1 %v3658_v32  ;;  %11636 = vst [vmem:[#allocation31_spill] sm:$0xff] %v8905_v63  ;;  %5827 = vmatpush3.msra.mxu0 %v8632_v11  ;;  %v8916_v60 = vadd.f32 %v8749_v27, %v1245_v25  ;;  %vm11638_vm4 = vcmp.eq.s32.totalorder %v11631_v50, %v11600_v46  ;;  %v8927_v30 = vpop.f32.mrf.mxu1  ;;  %v11639_v27 = vld [vmem:[#allocation55_spill] sm:$0xff]  ;;  %v11641_v25 = vand.u32 4294901760, %v8840_v40 }
 0x1a4   : > { %5908 = vmatprep.subr.mxu1 %v3777_v29  ;;  %11637 = vst [vmem:[#allocation33_spill] sm:$0xff] %v8910_v57  ;;  %5073 = vmatmul.mubr.msk.f32.gmra.mxu1 %vm11638_vm4, %v11406_v58  ;;  %vm11640_vm5 = vcmp.eq.s32.totalorder %v11639_v27, %v7638_v51  ;;  %v6419_v29 = vpop.f32.mrf.mxu0  ;;  %v8945_v22 = vsub.f32 %v553_v2, %v8898_v21  ;;  %v8960_v2 = vand.u32 4294901760, %v552_v44  ;;  %vm11660_vm2 = vmmov %vm11638_vm4 }
 0x1a5   : > { %5037 = vmatmul.mubr.msk.f32.gmra.mxu0 %vm318_vm9, %v11406_v58  ;;  %5074 = vmatprep.mubr.msk.f32.mxu1 %vm11640_vm5, %v11406_v58  ;;  %v3678_v32 = vsub.f32 %v8840_v40, %v11641_v25  ;;  %v8951_v33 = vadd.f32 %v8781_v23, %v1238_v62  ;;  %v1259_v11 = vadd.f32 %v6419_v29, %v8537_v5  ;;  %v8955_v6 = vpop.f32.mrf.mxu1  ;;  %v11644_v25 = vand.u32 4294901760, %v8848_v8  ;;  %v11651_v29 = vld [vmem:[#allocation59_spill] sm:$0xff]  ;;  %vm11653_vm9 = vmmov %vm11632_vm3 }
 0x1a6   : > { %5038 = vmatprep.mubr.msk.f32.mxu0 %vm323_vm10, %v11406_v58  ;;  %11642 = vst [vmem:[#allocation34_spill] sm:$0xff] %v8945_v22  ;;  %5828 = vmatprep.subr.mxu0 %v8656_v35  ;;  %11645 = vst [vmem:[#allocation36_spill] sm:$0xff] %v8960_v2  ;;  %v8963_v40 = vsub.f32 %v568_v59, %v8905_v63  ;;  %v3791_v23 = vand.u32 4294901760, %v3790_v56  ;;  %v1251_v62 = vpop.f32.mrf.mxu0  ;;  %v8967_v35 = vand.u32 4294901760, %v567_v37  ;;  %v8978_v59 = vand.u32 4294901760, %v551_v19  ;;  %v566_v56 = vld [vmem:[%s10951_s2 + $0x1a0] sm:$0xff] }
 0x1a7   : > { %11643 = vst [vmem:[#allocation29_spill] sm:$0xff] %v8951_v33  ;;  %5909 = vmatpush3.msra.mxu1 %v3665_v38  ;;  %v3797_v14 = vsub.f32 %v8848_v8, %v11644_v25  ;;  %5829 = vmatpush3.msra.mxu0 %v8681_v18  ;;  %vm11648_vm6 = vcmp.eq.s32.totalorder %v11639_v27, %v11600_v46  ;;  %v11654_v25 = vand.u32 4294901760, %v8896_v36  ;;  %vm11664_vm4 = vmmov %vm11640_vm5 }
 0x1a8   : > { %11646 = vst [vmem:[#allocation32_spill] sm:$0xff] %v8963_v40  ;;  %5910 = vmatprep.subr.mxu1 %v3784_v9  ;;  %11647 = vst [vmem:[#allocation39_spill] sm:$0xff] %v8967_v35  ;;  %5075 = vmatmul.mubr.msk.f32.gmra.mxu1 %vm11648_vm6, %v11406_v58  ;;  %v1252_v5 = vadd.f32 %v1251_v62, %v8553_v31  ;;  %v8984_v9 = vadd.f32 %v8807_v41, %v1259_v11  ;;  %v3679_v31 = vand.u32 4294901760, %v3678_v32  ;;  %v8997_v38 = vpop.f32.mrf.mxu1  ;;  %v550_v41 = vld [vmem:[%s10951_s2 + $0x120] sm:$0xff] }
 0x1a9   : > { %5039 = vmatmul.mubr.msk.f32.gmra.mxu0 %vm11649_vm7, %v11406_v58  ;;  %vm11652_vm8 = vcmp.eq.s32.totalorder %v11651_v29, %v7638_v51  ;;  %v3685_v62 = vsub.f32 %v8896_v36, %v11654_v25  ;;  %5830 = vmatprep.subr.mxu0 %v8703_v55  ;;  %v3798_v8 = vand.u32 4294901760, %v3797_v14  ;;  %v6478_v18 = vpop.f32.mrf.mxu0  ;;  %v11657_v55 = vand.u32 4294901760, %v8910_v57 }
 0x1aa   : > { %11650 = vst [vmem:[#allocation35_spill] sm:$0xff] %v8984_v9  ;;  %5076 = vmatprep.mubr.msk.f32.mxu1 %vm11652_vm8, %v11406_v58  ;;  %5040 = vmatprep.mubr.msk.f32.mxu0 %vm11653_vm9, %v11406_v58  ;;  %v9005_v9 = vsub.f32 %v552_v44, %v8960_v2  ;;  %v9009_v25 = vadd.f32 %v8837_v17, %v1252_v5  ;;  %v9013_v36 = vpop.f32.mrf.mxu1  ;;  %v9021_v44 = vand.u32 4294901760, %v566_v56  ;;  %v565_v17 = vld [vmem:[%s10951_s2 + $0x198] sm:$0xff]  ;;  %vm11672_vm7 = vmmov %vm11652_vm8 }
 0x1ab   : > { %5911 = vmatpush3.msra.mxu1 %v3672_v20  ;;  %5831 = vmatpush3.msra.mxu0 %v8714_v39  ;;  %v1561_v11 = vadd.f32 %v6478_v18, %v8596_v28  ;;  %v3804_v20 = vsub.f32 %v8910_v57, %v11657_v55  ;;  %v9019_v14 = vsub.f32 %v567_v37, %v8967_v35  ;;  %v1554_v28 = vpop.f32.mrf.mxu0  ;;  %v9037_v55 = vand.u32 4294901760, %v550_v41  ;;  %v11662_v37 = vld [vmem:[#allocation61_spill] sm:$0xff] }
 0x1ac   : > { %11655 = vst [vmem:[#allocation40_spill] sm:$0xff] %v9005_v9  ;;  %11656 = vst [vmem:[#allocation41_spill] sm:$0xff] %v9009_v25  ;;  %5912 = vmatprep.subr.mxu1 %v3791_v23  ;;  %vm11659_vm10 = vcmp.eq.s32.totalorder %v11651_v29, %v11600_v46  ;;  %v9035_v18 = vsub.f32 %v551_v19, %v8978_v59  ;;  %vm11663_vm3 = vcmp.eq.s32.totalorder %v11662_v37, %v7638_v51 }
 0x1ad   : > { %11658 = vst [vmem:[#allocation38_spill] sm:$0xff] %v9019_v14  ;;  %5077 = vmatmul.mubr.msk.f32.gmra.mxu1 %vm11659_vm10, %v11406_v58  ;;  %5041 = vmatmul.mubr.msk.f32.gmra.mxu0 %vm11660_vm2, %v11406_v58  ;;  %v9048_v23 = vadd.f32 %v8860_v47, %v1561_v11  ;;  %v1555_v5 = vadd.f32 %v1554_v28, %v8617_v13  ;;  %v11666_v19 = vand.u32 4294901760, %v8945_v22  ;;  %v3686_v57 = vand.u32 4294901760, %v3685_v62  ;;  %v549_v13 = vld [vmem:[%s10951_s2 + $0x118] sm:$0xff]  ;;  %v564_v28 = vld [vmem:[%s10951_s2 + $0x190] sm:$0xff]  ;;  %vm11678_vm9 = vmmov %vm11659_vm10 }
 0x1ae   : > { %11661 = vst [vmem:[#allocation42_spill] sm:$0xff] %v9035_v18  ;;  %5078 = vmatprep.mubr.msk.f32.mxu1 %vm11663_vm3, %v11406_v58  ;;  %5042 = vmatprep.mubr.msk.f32.mxu0 %vm11664_vm4, %v11406_v58  ;;  %v11667_v39 = vand.u32 4294901760, %v8963_v40  ;;  %v9059_v33 = vand.u32 4294901760, %v565_v17  ;;  %v3805_v47 = vand.u32 4294901760, %v3804_v20  ;;  %vm11669_vm5 = vcmp.eq.s32.totalorder %v11662_v37, %v11600_v46  ;;  %v11671_v20 = vld [vmem:[#allocation63_spill] sm:$0xff]  ;;  %vm11682_vm2 = vmmov %vm11663_vm3 }
 0x1af   : > { %11665 = vst [vmem:[#allocation5_spill] sm:$0xff] %v9048_v23  ;;  %v3692_v32 = vsub.f32 %v8945_v22, %v11666_v19  ;;  %5832 = vmatprep.subr.mxu0 %v8738_v3  ;;  %5913 = vmatpush3.msra.mxu1 %v3679_v31  ;;  %v9066_v11 = vadd.f32 %v8892_v26, %v1555_v5  ;;  %v9068_v31 = vpop.f32.mrf.mxu1  ;;  %v6481_v26 = vpop.f32.mrf.mxu0  ;;  %v9100_v50 = vand.u32 4294901760, %v549_v13  ;;  %v9109_v3 = vand.u32 4294901760, %v564_v28  ;;  %vm11690_vm4 = vmmov %vm11669_vm5 }
 0x1b0   : > { %v3811_v25 = vsub.f32 %v8963_v40, %v11667_v39  ;;  %5833 = vmatpush3.msra.mxu0 %v8784_v53  ;;  %5914 = vmatprep.subr.mxu1 %v3798_v8  ;;  %v9072_v39 = vsub.f32 %v566_v56, %v9021_v44  ;;  %v9087_v56 = vsub.f32 %v550_v41, %v9037_v55  ;;  %v11673_v40 = vand.u32 4294901760, %v9005_v9 }
 0x1b1   : > { %5079 = vmatmul.mubr.msk.f32.gmra.mxu1 %vm11669_vm5, %v11406_v58  ;;  %5043 = vmatmul.mubr.msk.f32.gmra.mxu0 %vm11648_vm6, %v11406_v58  ;;  %v3693_v5 = vand.u32 4294901760, %v3692_v32  ;;  %v1573_v19 = vadd.f32 %v6481_v26, %v8645_v4  ;;  %v9098_v62 = vpop.f32.mrf.mxu1  ;;  %v1566_v8 = vpop.f32.mrf.mxu0  ;;  %v9107_v53 = vsub.f32 %v565_v17, %v9059_v33  ;;  %vm11677_vm8 = vcmp.eq.s32.totalorder %v11671_v20, %v11600_v46 }
 0x1b2   : > { %11668 = vst [vmem:[#allocation46_spill] sm:$0xff] %v9072_v39  ;;  %11670 = vst [vmem:[#allocation69_spill] sm:$0xff] %v9087_v56  ;;  %5080 = vmatprep.mubr.msk.f32.mxu1 %vm343_vm12, %v11406_v58  ;;  %5044 = vmatprep.mubr.msk.f32.mxu0 %vm11672_vm7, %v11406_v58  ;;  %v3812_v41 = vand.u32 4294901760, %v3811_v25  ;;  %v3699_v22 = vsub.f32 %v9005_v9, %v11673_v40  ;;  %v1567_v32 = vadd.f32 %v1566_v8, %v8668_v52  ;;  %v548_v40 = vld [vmem:[%s10951_s2 + $0x110] sm:$0xff]  ;;  %v11680_v8 = vld [vmem:[#allocation14_spill] sm:$0xff] }
 0x1b3   : > { %5834 = vmatprep.subr.mxu0 %v8795_v0  ;;  %5915 = vmatpush3.msra.mxu1 %v3686_v57  ;;  %11674 = vst [vmem:[#allocation70_spill] sm:$0xff] %v9107_v53  ;;  %v9113_v4 = vadd.f32 %v8927_v30, %v1573_v19  ;;  %v11676_v57 = vand.u32 4294901760, %v9019_v14  ;;  %v11679_v52 = vand.u32 4294901760, %v9035_v18  ;;  %vm11681_vm10 = vcmp.eq.s32.totalorder %v11680_v8, %v7638_v51  ;;  %vm11703_vm7 = vmmov %vm11677_vm8 }
 0x1b4   : > { %5835 = vmatpush3.msra.mxu0 %v8842_v45  ;;  %5916 = vmatprep.subr.mxu1 %v3805_v47  ;;  %v563_v47 = vld [vmem:[%s10951_s2 + $0x188] sm:$0xff]  ;;  %v9149_v19 = vadd.f32 %v8955_v6, %v1567_v32  ;;  %v3700_v17 = vand.u32 4294901760, %v3699_v22  ;;  %v9161_v9 = vand.u32 4294901760, %v548_v40  ;;  %v9179_v45 = vadd.s32 256, %v11600_v46 }
 0x1b5   : > { %11675 = vst [vmem:[#allocation71_spill] sm:$0xff] %v9113_v4  ;;  %v3818_v25 = vsub.f32 %v9019_v14, %v11676_v57  ;;  %5081 = vmatmul.mubr.msk.f32.gmra.mxu1 %vm11677_vm8, %v11406_v58  ;;  %5045 = vmatmul.mubr.msk.f32.gmra.mxu0 %vm11678_vm9, %v11406_v58  ;;  %v9134_v30 = vsub.f32 %v9035_v18, %v11679_v52  ;;  %v9151_v57 = vpop.f32.mrf.mxu1  ;;  %v6484_v26 = vpop.f32.mrf.mxu0  ;;  %v547_v6 = vld [vmem:[%s10951_s2 + $0x108] sm:$0xff]  ;;  %v11697_v4 = vand.u32 4294901760, %v9107_v53 }
 0x1b6   : > { %5082 = vmatprep.mubr.msk.f32.mxu1 %vm11681_vm10, %v11406_v58  ;;  %5046 = vmatprep.mubr.msk.f32.mxu0 %vm11682_vm2, %v11406_v58  ;;  %11683 = vst [vmem:[#allocation72_spill] sm:$0xff] %v9149_v19  ;;  %v9154_v52 = vsub.f32 %v549_v13, %v9100_v50  ;;  %v9159_v14 = vsub.f32 %v564_v28, %v9109_v3  ;;  %v9173_v28 = vand.u32 4294901760, %v563_v47  ;;  %11688 = vst [vmem:[#allocation76_spill] sm:$0xff] %v9179_v45 }
 0x1b7   : > { %5836 = vmatprep.subr.mxu0 %v8862_v42  ;;  %5917 = vmatpush3.msra.mxu1 %v3693_v5  ;;  %v1585_v13 = vadd.f32 %v6484_v26, %v8690_v15  ;;  %v9168_v32 = vpop.f32.mrf.mxu1  ;;  %v3819_v22 = vand.u32 4294901760, %v3818_v25  ;;  %v11686_v5 = vand.u32 4294901760, %v9072_v39  ;;  %v562_v42 = vld [vmem:[%s10951_s2 + $0x180] sm:$0xff]  ;;  %vm11689_vm3 = vcmp.eq.s32.totalorder %v11680_v8, %v11600_v46  ;;  %v1578_v15 = vpop.f32.mrf.mxu0 }
 0x1b8   : > { %11684 = vst [vmem:[#allocation73_spill] sm:$0xff] %v9154_v52  ;;  %11685 = vst [vmem:[#allocation74_spill] sm:$0xff] %v9159_v14  ;;  %5837 = vmatpush3.msra.mxu0 %v8898_v21  ;;  %5918 = vmatprep.subr.mxu1 %v3812_v41  ;;  %v3707_v41 = vand.u32 4294901760, %v9134_v30  ;;  %v11691_v25 = vand.u32 4294901760, %v9087_v56  ;;  %v11693_v21 = vld [vmem:[#allocation65_spill] sm:$0xff]  ;;  %v9212_v0 = vand.u32 4294901760, %v547_v6  ;;  %v3832_v19 = vsub.f32 %v9107_v53, %v11697_v4 }
 0x1b9   : > { %v3825_v18 = vsub.f32 %v9072_v39, %v11686_v5  ;;  %11687 = vst [vmem:[#allocation75_spill] sm:$0xff] %v9173_v28  ;;  %5083 = vmatmul.mubr.msk.f32.gmra.mxu1 %vm11689_vm3, %v11406_v58  ;;  %5047 = vmatmul.mubr.msk.f32.gmra.mxu0 %vm11690_vm4, %v11406_v58  ;;  %v9194_v5 = vadd.s32 384, %v11600_v46  ;;  %v546_v39 = vld [vmem:[%s10951_s2 + $0x100] sm:$0xff]  ;;  %vm11694_vm5 = vcmp.eq.s32.totalorder %v11693_v21, %v7638_v51 }
 0x1ba   : > { %v3713_v26 = vsub.f32 %v9087_v56, %v11691_v25  ;;  %5084 = vmatprep.mubr.msk.f32.mxu1 %vm11694_vm5, %v11406_v58  ;;  %5048 = vmatprep.mubr.msk.f32.mxu0 %vm343_vm12, %v11406_v58  ;;  %v9208_v30 = vadd.f32 %v8997_v38, %v1585_v13  ;;  %v1579_v25 = vadd.f32 %v1578_v15, %v8717_v7  ;;  %v11221_v56 = vand.u32 4294901760, %v9154_v52  ;;  %v9228_v13 = vpop.f32.mrf.mxu1  ;;  %vm11713_vm4 = vmmov %vm11694_vm5 }
 0x1bb   : > { %11692 = vst [vmem:[#allocation77_spill] sm:$0xff] %v9194_v5  ;;  %11696 = vst [vmem:[#allocation79_spill] sm:$0xff] %v9212_v0  ;;  %5838 = vmatprep.subr.mxu0 %v8905_v63  ;;  %5919 = vmatpush3.msra.mxu1 %v3700_v17  ;;  %v9220_v23 = vsub.f32 %v548_v40, %v9161_v9  ;;  %v9222_v38 = vand.u32 4294901760, %v562_v42  ;;  %v3826_v17 = vand.u32 4294901760, %v3825_v18  ;;  %v9233_v4 = vand.u32 4294901760, %v546_v39  ;;  %v11704_v18 = vld [vmem:[#allocation66_spill] sm:$0xff] }
 0x1bc   : > { %11695 = vst [vmem:[#allocation78_spill] sm:$0xff] %v9208_v30  ;;  %5839 = vmatpush3.msra.mxu0 %v8960_v2  ;;  %5920 = vmatprep.subr.mxu1 %v3819_v22  ;;  %v9226_v7 = vadd.f32 %v9013_v36, %v1579_v25  ;;  %v9231_v15 = vsub.f32 %v563_v47, %v9173_v28  ;;  %v6487_v36 = vpop.f32.mrf.mxu0  ;;  %v9256_v47 = vpop.f32.mrf.mxu1  ;;  %v3714_v22 = vand.u32 4294901760, %v3713_v26  ;;  %v3833_v2 = vand.u32 4294901760, %v3832_v19 }
 0x1bd   : > { %11698 = vst [vmem:[#allocation80_spill] sm:$0xff] %v9220_v23  ;;  %11699 = vst [vmem:[#allocation81_spill] sm:$0xff] %v9222_v38  ;;  %vm308_vm12 = vcmp.eq.s32.totalorder %v11593_v24, %v9179_v45  ;;  %vm11702_vm6 = vcmp.eq.s32.totalorder %v11693_v21, %v11600_v46  ;;  %5049 = vmatmul.mubr.msk.f32.gmra.mxu0 %vm11703_vm7, %v11406_v58  ;;  %vm309_vm8 = vcmp.eq.s32.totalorder %v11593_v24, %v9194_v5 }
 0x1be   : > { %11700 = vst [vmem:[#allocation82_spill] sm:$0xff] %v9231_v15  ;;  %11701 = vst [vmem:[#allocation83_spill] sm:$0xff] %v9233_v4  ;;  %5085 = vmatmul.mubr.msk.f32.gmra.mxu1 %vm11702_vm6, %v11406_v58  ;;  %vm11705_vm9 = vcmp.eq.s32.totalorder %v11704_v18, %v7638_v51  ;;  %5050 = vmatprep.mubr.msk.f32.mxu0 %vm11681_vm10, %v11406_v58  ;;  %v1597_v40 = vadd.f32 %v6487_v36, %v8744_v43  ;;  %v1590_v53 = vpop.f32.mrf.mxu0  ;;  %v11707_v63 = vand.u32 4294901760, %v9159_v14 }
 0x1bf   : > { %5086 = vmatprep.mubr.msk.f32.mxu1 %vm11705_vm9, %v11406_v58  ;;  %v3720_v25 = vsub.f32 %v9154_v52, %v11221_v56  ;;  %v9262_v37 = vsub.f32 %v547_v6, %v9212_v0  ;;  %5840 = vmatprep.subr.mxu0 %v8967_v35  ;;  %v11226_v43 = vand.u32 4294901760, %v9220_v23  ;;  %v9270_v26 = vsub.f32 %v562_v42, %v9222_v38  ;;  %vm11718_vm7 = vmmov %vm11705_vm9 }
 0x1c0   : > { %5921 = vmatpush3.msra.mxu1 %v3707_v41  ;;  %v3839_v30 = vsub.f32 %v9159_v14, %v11707_v63  ;;  %5841 = vmatpush3.msra.mxu0 %v8978_v59  ;;  %v9274_v36 = vadd.f32 %v9068_v31, %v1597_v40  ;;  %v1591_v6 = vadd.f32 %v1590_v53, %v8771_v54  ;;  %v11711_v42 = vmov 0.0   ;;  %v11712_v53 = vld [vmem:[#allocation67_spill] sm:$0xff]  ;;  %v9304_v31 = vpop.f32.mrf.mxu1 }
 0x1c1   : > { %11706 = vst [vmem:[#allocation84_spill] sm:$0xff] %v9262_v37  ;;  %11708 = vst [vmem:[#allocation85_spill] sm:$0xff] %v9270_v26  ;;  %5922 = vmatprep.subr.mxu1 %v3826_v17  ;;  %v9279_v19 = vsub.f32 %v546_v39, %v9233_v4  ;;  %vm11710_vm2 = vcmp.eq.s32.totalorder %v11704_v18, %v11600_v46  ;;  %5051 = vmatmul.mubr.msk.f32.gmra.mxu0 %vm11689_vm3, %v11406_v58  ;;  %v372_v54 = vsel %vm308_vm12, 1.0, %v11711_v42  ;;  %v6490_v40 = vpop.f32.mrf.mxu0  ;;  %v11738_v46 = vld [vmem:[#allocation41_spill] sm:$0xff] }
 0x1c2   : > { %5087 = vmatmul.mubr.msk.f32.gmra.mxu1 %vm11710_vm2, %v11406_v58  ;;  %5052 = vmatprep.mubr.msk.f32.mxu0 %vm11713_vm4, %v11406_v58  ;;  %v9302_v63 = vadd.f32 %v9098_v62, %v1591_v6  ;;  %v373_v17 = vsel %vm309_vm8, 1.0, %v11711_v42  ;;  %v3721_v56 = vand.u32 4294901760, %v3720_v25  ;;  %v3727_v41 = vsub.f32 %v9220_v23, %v11226_v43  ;;  %v9320_v39 = vpop.f32.mrf.mxu1 }
 0x1c3   : > { %11709 = vst [vmem:[#allocation86_spill] sm:$0xff] %v9279_v19  ;;  %5088 = vmatprep.mubr.msk.f32.mxu1 %vm359_vm13, %v11406_v58  ;;  %5842 = vmatprep.subr.mxu0 %v9021_v44  ;;  %v11229_v62 = vand.u32 4294901760, %v9270_v26  ;;  %vm313_vm5 = vcmp.eq.s32.totalorder %v11601_v61, %v9194_v5  ;;  %v1609_v6 = vadd.f32 %v6490_v40, %v8801_v49  ;;  %v3840_v14 = vand.u32 4294901760, %v3839_v30  ;;  %v1602_v49 = vpop.f32.mrf.mxu0  ;;  %v11717_v30 = vld [vmem:[#allocation68_spill] sm:$0xff] }
 0x1c4   : > { %5923 = vmatpush3.msra.mxu1 %v3714_v22  ;;  %5843 = vmatpush3.msra.mxu0 %v9037_v55  ;;  %v11714_v22 = vand.u32 4294901760, %v9231_v15  ;;  %v9326_v43 = vsub.f32 %v372_v54, %v372_v54  ;;  %v1603_v40 = vadd.f32 %v1602_v49, %v8824_v48  ;;  %v3728_v52 = vand.u32 4294901760, %v3727_v41 }
 0x1c5   : > { %5924 = vmatprep.subr.mxu1 %v3833_v2  ;;  %5053 = vmatmul.mubr.msk.f32.gmra.mxu0 %vm11702_vm6, %v11406_v58  ;;  %v9336_v2 = vsub.f32 %v373_v17, %v373_v17  ;;  %v9347_v54 = vadd.f32 %v9151_v57, %v1609_v6  ;;  %v377_v57 = vsel %vm313_vm5, 1.0, %v11711_v42  ;;  %vm312_vm9 = vcmp.eq.s32.totalorder %v11601_v61, %v9179_v45 }
 0x1c6   : > { %v3846_v25 = vsub.f32 %v9231_v15, %v11714_v22  ;;  %11715 = vst [vmem:[#allocation87_spill] sm:$0xff] %v9326_v43  ;;  %5089 = vmatmul.mubr.msk.f32.gmra.mxu1 %vm358_vm15, %v11406_v58  ;;  %5054 = vmatprep.mubr.msk.f32.mxu0 %vm11718_vm7, %v11406_v58  ;;  %v11719_v22 = vand.u32 4294901760, %v9262_v37  ;;  %v3853_v15 = vsub.f32 %v9270_v26, %v11229_v62  ;;  %v11720_v6 = vand.u32 4294901760, %v9279_v19 }
 0x1c7   : > { %11716 = vst [vmem:[#allocation88_spill] sm:$0xff] %v9336_v2  ;;  %5090 = vmatprep.mubr.msk.f32.mxu1 %vm363_vm1, %v11406_v58  ;;  %5844 = vmatprep.subr.mxu0 %v9059_v33  ;;  %v9365_v48 = vadd.f32 %v9168_v32, %v1603_v40  ;;  %vm317_vm10 = vcmp.eq.s32.totalorder %v11610_v1, %v9194_v5  ;;  %v11721_v32 = vld [vmem:[#allocation37_spill] sm:$0xff] }
 0x1c8   : > { %v3734_v17 = vsub.f32 %v9262_v37, %v11719_v22  ;;  %5925 = vmatpush3.msra.mxu1 %v3721_v56  ;;  %5845 = vmatpush3.msra.mxu0 %v9100_v50  ;;  %v9367_v56 = vpop.f32.mrf.mxu1  ;;  %v3847_v41 = vand.u32 4294901760, %v3846_v25  ;;  %v3741_v49 = vsub.f32 %v9279_v19, %v11720_v6  ;;  %v9394_v62 = vsub.f32 %v377_v57, %v377_v57 }
 0x1c9   : > { %5926 = vmatprep.subr.mxu1 %v3840_v14  ;;  %5055 = vmatmul.mubr.msk.f32.gmra.mxu0 %vm11710_vm2, %v11406_v58  ;;  %v6493_v14 = vpop.f32.mrf.mxu0  ;;  %v376_v22 = vsel %vm312_vm9, 1.0, %v11711_v42  ;;  %v3854_v19 = vand.u32 4294901760, %v3853_v15  ;;  %vm321_vm3 = vcmp.eq.s32.totalorder %v11616_v16, %v9194_v5  ;;  %vm11292_vm4 = vcmp.eq.s32.totalorder %v11616_v16, %v9179_v45 }
 0x1ca   : > { %5091 = vmatmul.mubr.msk.f32.gmra.mxu1 %vm362_vm0, %v11406_v58  ;;  %5056 = vmatprep.mubr.msk.f32.mxu0 %vm359_vm13, %v11406_v58  ;;  %v1621_v25 = vadd.f32 %v6493_v14, %v8854_v34  ;;  %v3735_v40 = vand.u32 4294901760, %v3734_v17  ;;  %v9392_v6 = vpop.f32.mrf.mxu1  ;;  %11722 = vst [vmem:[#allocation89_spill] sm:$0xff] %v9394_v62  ;;  %v381_v34 = vsel %vm317_vm10, 1.0, %v11711_v42  ;;  %v11234_v17 = vand.u32 4294901760, %v9336_v2 }
 0x1cb   : > { %5092 = vmatprep.mubr.msk.f32.mxu1 %vm367_vm11, %v11406_v58  ;;  %5927 = vmatpush3.msra.mxu1 %v3728_v52  ;;  %v1614_v26 = vpop.f32.mrf.mxu0  ;;  %vm316_vm13 = vcmp.eq.s32.totalorder %v11610_v1, %v9179_v45  ;;  %v3742_v15 = vand.u32 4294901760, %v3741_v49  ;;  %v9434_v49 = vsub.f32 %v381_v34, %v381_v34  ;;  %vm11274_vm6 = vcmp.eq.s32.totalorder %v11639_v27, %v9179_v45 }
 0x1cc   : > { %5846 = vmatprep.subr.mxu0 %v9109_v3  ;;  %5928 = vmatprep.subr.mxu1 %v3847_v41  ;;  %v9409_v57 = vadd.f32 %v9228_v13, %v1621_v25  ;;  %v1615_v52 = vadd.f32 %v1614_v26, %v8881_v12  ;;  %v9423_v13 = vsub.f32 %v376_v22, %v376_v22  ;;  %v5452_v26 = vpop.f32.mrf.mxu1  ;;  %v380_v22 = vsel %vm316_vm13, 1.0, %v11711_v42 }
 0x1cd   : > { %5847 = vmatpush3.msra.mxu0 %v9161_v9  ;;  %5929 = vmatpush3.msra.mxu1 %v3735_v40  ;;  %v6496_v41 = vpop.f32.mrf.mxu0  ;;  %11724 = vst [vmem:[#allocation91_spill] sm:$0xff] %v9434_v49  ;;  %v11725_v40 = vand.u32 4294901760, %v9326_v43  ;;  %vm11287_vm7 = vcmp.eq.s32.totalorder %v11651_v29, %v9194_v5  ;;  %vm11278_vm2 = vcmp.eq.s32.totalorder %v11651_v29, %v9179_v45 }
 0x1ce   : > { %5093 = vmatmul.mubr.msk.f32.gmra.mxu1 %vm366_vm14, %v11406_v58  ;;  %5057 = vmatmul.mubr.msk.f32.gmra.mxu0 %vm358_vm15, %v11406_v58  ;;  %11723 = vst [vmem:[#allocation90_spill] sm:$0xff] %v9423_v13  ;;  %v9432_v12 = vadd.f32 %v9256_v47, %v1615_v52  ;;  %v1633_v14 = vadd.f32 %v6496_v41, %v8916_v60  ;;  %v385_v47 = vsel %vm321_vm3, 1.0, %v11711_v42  ;;  %v384_v41 = vsel %vm11292_vm4, 1.0, %v11711_v42 }
 0x1cf   : > { %5094 = vmatprep.mubr.msk.f32.mxu1 %vm309_vm8, %v11406_v58  ;;  %5058 = vmatprep.mubr.msk.f32.mxu0 %vm363_vm1, %v11406_v58  ;;  %vm11259_vm15 = vcmp.eq.s32.totalorder %v11622_v10, %v9194_v5  ;;  %v3430_v34 = vsub.f32 %v9326_v43, %v11725_v40  ;;  %v1626_v52 = vpop.f32.mrf.mxu0  ;;  %v3425_v60 = vsub.f32 %v9336_v2, %v11234_v17  ;;  %v11727_v17 = vld [vmem:[#allocation29_spill] sm:$0xff]  ;;  %v11731_v43 = vld [vmem:[#allocation35_spill] sm:$0xff] }
 0x1d0   : > { %5930 = vmatprep.subr.mxu1 %v3854_v19  ;;  %5848 = vmatprep.subr.mxu0 %v9173_v28  ;;  %v5453_v19 = vpop.f32.mrf.mxu1  ;;  %v1627_v25 = vadd.f32 %v1626_v52, %v11727_v17  ;;  %v9485_v24 = vsub.f32 %v385_v47, %v385_v47  ;;  %vm11272_vm1 = vcmp.eq.s32.totalorder %v11639_v27, %v9194_v5  ;;  %v11782_v27 = vld [vmem:[#allocation19_spill] sm:$0xff] }
 0x1d1   : > { %5931 = vmatpush3.msra.mxu1 %v3742_v15  ;;  %v9468_v15 = vadd.f32 %v9304_v31, %v1633_v14  ;;  %v9474_v40 = vadd.f32 %v5453_v19, %v5452_v26  ;;  %5849 = vmatpush3.msra.mxu0 %v9212_v0  ;;  %v9483_v14 = vsub.f32 %v380_v22, %v380_v22  ;;  %v389_v26 = vsel %vm11259_vm15, 1.0, %v11711_v42  ;;  %v6499_v19 = vpop.f32.mrf.mxu0 }
 0x1d2   : > { %5095 = vmatmul.mubr.msk.f32.vlgmr.msra.gmra.mxu1 %vm308_vm12, %v11406_v58  ;;  %5059 = vmatmul.mubr.msk.f32.gmra.mxu0 %vm362_vm0, %v11406_v58  ;;  %v5455_v31 = vpop.f32.mrf.mxu1  ;;  %11729 = vst [vmem:[#allocation93_spill] sm:$0xff] %v9485_v24  ;;  %v9496_v17 = vadd.f32 %v9320_v39, %v1627_v25  ;;  %v11730_v22 = vand.u32 4294901760, %v9394_v62  ;;  %vm11268_vm0 = vcmp.eq.s32.totalorder %v11622_v10, %v9179_v45  ;;  %v11732_v39 = vld [vmem:[#allocation43_spill] sm:$0xff]  ;;  %v3431_v2 = vand.u32 4294901760, %v3430_v34 }
 0x1d3   : > { %11726 = vst [vmem:[#allocation92_spill] sm:$0xff] %v9468_v15  ;;  %5096 = vmatprep.mubr.msk.f32.mxu1 %vm313_vm5, %v11406_v58  ;;  %11728 = vst [vmem:[#allocation29_spill] sm:$0xff] %v9483_v14  ;;  %5060 = vmatprep.mubr.msk.f32.mxu0 %vm367_vm11, %v11406_v58  ;;  %v1645_v37 = vadd.f32 %v6499_v19, %v11731_v43  ;;  %v3426_v15 = vand.u32 4294901760, %v3425_v60  ;;  %v9508_v25 = vsub.f32 %v384_v41, %v384_v41  ;;  %v1638_v60 = vpop.f32.mrf.mxu0 }
 0x1d4   : > { %5850 = vmatprep.subr.mxu0 %v9222_v38  ;;  %v3438_v47 = vsub.f32 %v9394_v62, %v11730_v22  ;;  %v5456_v51 = vpop.f32.mrf.mxu1  ;;  %6060 = vmatprep.subr.mxu1 %v11732_v39  ;;  %v11734_v38 = vld [vmem:[#allocation53_spill] sm:$0xff]  ;;  %v11735_v41 = vand.u32 4294901760, %v9423_v13  ;;  %v9525_v22 = vsub.f32 %v389_v26, %v389_v26  ;;  %v1639_v52 = vadd.f32 %v1638_v60, %v11738_v46  ;;  %v11739_v26 = vld [vmem:[#allocation51_spill] sm:$0xff]  ;;  %v11743_v39 = vld [vmem:[#allocation6_spill] sm:$0xff] }
 0x1d5   : > { %5851 = vmatpush3.msra.mxu0 %v9233_v4  ;;  %11733 = vst [vmem:[#allocation35_spill] sm:$0xff] %v9508_v25  ;;  %vm11267_vm11 = vcmp.eq.s32.totalorder %v11734_v38, %v9194_v5  ;;  %v9520_v43 = vadd.f32 %v5456_v51, %v5455_v31  ;;  %v9528_v34 = vadd.f32 %v9367_v56, %v1645_v37  ;;  %v388_v51 = vsel %vm11268_vm0, 1.0, %v11711_v42  ;;  %v5372_v37 = vpop.f32.mrf.mxu0  ;;  %v11740_v56 = vld [vmem:[#allocation45_spill] sm:$0xff] }
 0x1d6   : > { %5097 = vmatmul.mubr.msk.f32.gmra.mxu1 %vm312_vm9, %v11406_v58  ;;  %5061 = vmatmul.mubr.msk.f32.gmra.mxu0 %vm366_vm14, %v11406_v58  ;;  %v3443_v19 = vsub.f32 %v9423_v13, %v11735_v41  ;;  %11736 = vst [vmem:[#allocation94_spill] sm:$0xff] %v9525_v22  ;;  %v5458_v31 = vpop.f32.mrf.mxu1  ;;  %vm11273_vm14 = vcmp.eq.s32.totalorder %v11734_v38, %v9179_v45  ;;  %v11741_v41 = vand.u32 4294901760, %v9434_v49  ;;  %v393_v46 = vsel %vm11267_vm11, 1.0, %v11711_v42  ;;  %v11775_v38 = vld [vmem:[#allocation18_spill] sm:$0xff] }
 0x1d7   : > { %11737 = vst [vmem:[#allocation95_spill] sm:$0xff] %v9528_v34  ;;  %5098 = vmatprep.mubr.msk.f32.mxu1 %vm317_vm10, %v11406_v58  ;;  %3427 = vmatprep.mubr.f32.mxu0 %v3426_v15  ;;  %v9553_v34 = vadd.f32 %v9392_v6, %v1639_v52  ;;  %v3439_v13 = vand.u32 4294901760, %v3438_v47  ;;  %v5373_v60 = vpop.f32.mrf.mxu0  ;;  %v392_v6 = vsel %vm11273_vm14, 1.0, %v11711_v42  ;;  %v11745_v47 = vld [vmem:[#allocation7_spill] sm:$0xff]  ;;  %v11748_v1 = vand.u32 4294901760, %v9483_v14 }
 0x1d8   : > { %5980 = vmatprep.subr.mxu0 %v11739_v26  ;;  %6061 = vmatpush3.msra.mxu1 %v11740_v56  ;;  %v3451_v15 = vsub.f32 %v9434_v49, %v11741_v41  ;;  %v5459_v26 = vpop.f32.mrf.mxu1  ;;  %v9563_v49 = vsub.f32 %v388_v51, %v388_v51  ;;  %v9576_v51 = vsub.f32 %v393_v46, %v393_v46 }
 0x1d9   : > { %11742 = vst [vmem:[#allocation41_spill] sm:$0xff] %v9553_v34  ;;  %6062 = vmatprep.subr.mxu1 %v11743_v39  ;;  %v9561_v41 = vadd.f32 %v5459_v26, %v5458_v31  ;;  %v3444_v31 = vand.u32 4294901760, %v3443_v19  ;;  %v11747_v26 = vld [vmem:[#allocation52_spill] sm:$0xff]  ;;  %v5375_v56 = vpop.f32.mrf.mxu0  ;;  %v3456_v39 = vsub.f32 %v9483_v14, %v11748_v1  ;;  %v11749_v34 = vand.u32 4294901760, %v9485_v24  ;;  %v11750_v19 = vld [vmem:[#allocation54_spill] sm:$0xff] }
 0x1da   : > { %5099 = vmatmul.mubr.msk.f32.gmra.mxu1 %vm316_vm13, %v11406_v58  ;;  %3432 = vmatmul.mubr.f32.vlgmr.msra.gmra.mxu0 %v3431_v2  ;;  %11744 = vst [vmem:[#allocation96_spill] sm:$0xff] %v9563_v49  ;;  %v5374_v2 = vadd.f32 %v5373_v60, %v5372_v37  ;;  %v5461_v52 = vpop.f32.mrf.mxu1  ;;  %11746 = vst [vmem:[#allocation97_spill] sm:$0xff] %v9576_v51  ;;  %v3452_v61 = vand.u32 4294901760, %v3451_v15  ;;  %v9589_v46 = vsub.f32 %v392_v6, %v392_v6 }
 0x1db   : > { %5100 = vmatprep.mubr.msk.f32.mxu1 %vm321_vm3, %v11406_v58  ;;  %5981 = vmatpush3.msra.mxu0 %v11745_v47  ;;  %v3464_v62 = vsub.f32 %v9485_v24, %v11749_v34  ;;  %v11753_v15 = vand.u32 4294901760, %v9508_v25  ;;  %v397_v1 = vsel %vm11272_vm1, 1.0, %v11711_v42  ;;  %v5376_v34 = vpop.f32.mrf.mxu0  ;;  %v3457_v47 = vand.u32 4294901760, %v3456_v39  ;;  %v11760_v24 = vld [vmem:[#allocation56_spill] sm:$0xff] }
 0x1dc   : > { %3440 = vmatprep.mubr.f32.mxu0 %v3439_v13  ;;  %5982 = vmatprep.subr.mxu0 %v11747_v26  ;;  %v1924_v37 = vadd.f32 %v5374_v2, %v9066_v11  ;;  %v5462_v60 = vpop.f32.mrf.mxu1  ;;  %v11751_v13 = vld [vmem:[#allocation8_spill] sm:$0xff]  ;;  %11752 = vst [vmem:[#allocation98_spill] sm:$0xff] %v9589_v46  ;;  %v5377_v2 = vadd.f32 %v5376_v34, %v5375_v56  ;;  %v11759_v34 = vld [vmem:[#allocation5_spill] sm:$0xff]  ;;  %v401_v39 = vsel %vm11287_vm7, 1.0, %v11711_v42  ;;  %v11764_v10 = vand.u32 4294901760, %v9576_v51 }
 0x1dd   : > { %5983 = vmatpush3.msra.mxu0 %v11750_v19  ;;  %6063 = vmatpush3.msra.mxu1 %v11751_v13  ;;  %v3469_v26 = vsub.f32 %v9508_v25, %v11753_v15  ;;  %v9602_v11 = vadd.f32 %v5462_v60, %v5461_v52  ;;  %v11755_v60 = vld [vmem:[#allocation15_spill] sm:$0xff]  ;;  %v5378_v6 = vpop.f32.mrf.mxu0  ;;  %v3465_v16 = vand.u32 4294901760, %v3464_v62  ;;  %v9621_v19 = vsub.f32 %v397_v1, %v397_v1 }
 0x1de   : > { %5101 = vmatmul.mubr.msk.f32.gmra.mxu1 %vm11292_vm4, %v11406_v58  ;;  %3445 = vmatmul.mubr.f32.gmra.mxu0 %v3444_v31  ;;  %v5464_v15 = vpop.f32.mrf.mxu1  ;;  %v9617_v31 = vadd.f32 %v9474_v40, %v1924_v37  ;;  %v11756_v25 = vld [vmem:[#allocation11_spill] sm:$0xff]  ;;  %v1937_v52 = vadd.f32 %v5377_v2, %v11759_v34  ;;  %v11761_v40 = vld [vmem:[#allocation12_spill] sm:$0xff]  ;;  %v396_v62 = vsel %vm11274_vm6, 1.0, %v11711_v42  ;;  %v11763_v37 = vld [vmem:[#allocation61_spill] sm:$0xff]  ;;  %v9667_v13 = vsub.f32 %v401_v39, %v401_v39 }
 0x1df   : > { %5102 = vmatprep.mubr.msk.f32.mxu1 %vm11259_vm15, %v11406_v58  ;;  %3453 = vmatprep.mubr.f32.mxu0 %v3452_v61  ;;  %11757 = vst [vmem:[#allocation100_spill] sm:$0xff] %v9621_v19  ;;  %v11758_v61 = vand.u32 4294901760, %v9525_v22  ;;  %v5379_v2 = vpop.f32.mrf.mxu0  ;;  %vm11286_vm15 = vcmp.eq.s32.totalorder %v11763_v37, %v9194_v5  ;;  %vm361_vm4 = vcmp.eq.s32.totalorder %v11712_v53, %v9194_v5 }
 0x1e0   : > { %11754 = vst [vmem:[#allocation99_spill] sm:$0xff] %v9617_v31  ;;  %5984 = vmatprep.subr.mxu0 %v11755_v60  ;;  %6064 = vmatprep.subr.mxu1 %v11756_v25  ;;  %v5465_v14 = vpop.f32.mrf.mxu1  ;;  %v11766_v25 = vld [vmem:[#allocation9_spill] sm:$0xff]  ;;  %v9665_v31 = vsub.f32 %v396_v62, %v396_v62  ;;  %v405_v62 = vsel %vm11286_vm15, 1.0, %v11711_v42 }
 0x1e1   : > { %v3477_v56 = vsub.f32 %v9525_v22, %v11758_v61  ;;  %5985 = vmatpush3.msra.mxu0 %v11760_v24  ;;  %6065 = vmatpush3.msra.mxu1 %v11761_v40  ;;  %v9642_v1 = vadd.f32 %v5465_v14, %v5464_v15  ;;  %v11762_v61 = vand.u32 4294901760, %v9563_v49  ;;  %v400_v24 = vsel %vm11278_vm2, 1.0, %v11711_v42  ;;  %v11765_v40 = vld [vmem:[#allocation16_spill] sm:$0xff]  ;;  %v5381_v60 = vpop.f32.mrf.mxu0 }
 0x1e2   : > { %5103 = vmatmul.mubr.msk.f32.gmra.mxu1 %vm11268_vm0, %v11406_v58  ;;  %3458 = vmatmul.mubr.f32.gmra.mxu0 %v3457_v47  ;;  %v5380_v14 = vadd.f32 %v5379_v2, %v5378_v6  ;;  %v5467_v47 = vpop.f32.mrf.mxu1  ;;  %v3470_v15 = vand.u32 4294901760, %v3469_v26  ;;  %11767 = vst [vmem:[#allocation5_spill] sm:$0xff] %v9665_v31  ;;  %11768 = vst [vmem:[#allocation16_spill] sm:$0xff] %v9667_v13  ;;  %v11769_v26 = vld [vmem:[#allocation72_spill] sm:$0xff]  ;;  %v11770_v2 = vld [vmem:[#allocation13_spill] sm:$0xff]  ;;  %vm11290_vm0 = vcmp.eq.s32.totalorder %v11671_v20, %v9194_v5 }
 0x1e3   : > { %v3482_v34 = vsub.f32 %v9563_v49, %v11762_v61  ;;  %5104 = vmatprep.mubr.msk.f32.mxu1 %vm11267_vm11, %v11406_v58  ;;  %3466 = vmatprep.mubr.f32.mxu0 %v3465_v16  ;;  %v3490_v61 = vsub.f32 %v9576_v51, %v11764_v10  ;;  %v9661_v49 = vadd.f32 %v9520_v43, %v1937_v52  ;;  %v3478_v22 = vand.u32 4294901760, %v3477_v56  ;;  %v11771_v51 = vld [vmem:[#allocation57_spill] sm:$0xff] }
 0x1e4   : > { %5986 = vmatprep.subr.mxu0 %v11765_v40  ;;  %6066 = vmatprep.subr.mxu1 %v11766_v25  ;;  %v1950_v6 = vadd.f32 %v5380_v14, %v11769_v26  ;;  %v5468_v10 = vpop.f32.mrf.mxu1  ;;  %v9673_v43 = vsub.f32 %v400_v24, %v400_v24  ;;  %v11773_v52 = vand.u32 4294901760, %v9589_v46  ;;  %v5382_v14 = vpop.f32.mrf.mxu0  ;;  %vm11288_vm11 = vcmp.eq.s32.totalorder %v11763_v37, %v9179_v45 }
 0x1e5   : > { %5987 = vmatpush3.msra.mxu0 %v11770_v2  ;;  %6067 = vmatpush3.msra.mxu1 %v11771_v51  ;;  %v9686_v39 = vadd.f32 %v5468_v10, %v5467_v47  ;;  %v5383_v24 = vadd.f32 %v5382_v14, %v5381_v60  ;;  %v3491_v16 = vand.u32 4294901760, %v3490_v61  ;;  %v11776_v2 = vand.u32 4294901760, %v9621_v19  ;;  %v11777_v60 = vld [vmem:[#allocation71_spill] sm:$0xff] }
 0x1e6   : > { %11772 = vst [vmem:[#allocation9_spill] sm:$0xff] %v9673_v43  ;;  %v3495_v56 = vsub.f32 %v9589_v46, %v11773_v52  ;;  %5105 = vmatmul.mubr.msk.f32.gmra.mxu1 %vm11273_vm14, %v11406_v58  ;;  %3471 = vmatmul.mubr.f32.gmra.mxu0 %v3470_v15  ;;  %v5470_v26 = vpop.f32.mrf.mxu1  ;;  %v3483_v52 = vand.u32 4294901760, %v3482_v34  ;;  %v9697_v47 = vadd.f32 %v9561_v41, %v1950_v6  ;;  %v11774_v15 = vld [vmem:[#allocation60_spill] sm:$0xff]  ;;  %v5384_v10 = vpop.f32.mrf.mxu0  ;;  %v11778_v41 = vld [vmem:[#allocation62_spill] sm:$0xff] }
 0x1e7   : > { %5106 = vmatprep.mubr.msk.f32.mxu1 %vm11272_vm1, %v11406_v58  ;;  %3479 = vmatprep.mubr.f32.mxu0 %v3478_v22  ;;  %v9701_v46 = vsub.f32 %v405_v62, %v405_v62  ;;  %v3503_v51 = vsub.f32 %v9621_v19, %v11776_v2  ;;  %vm344_vm1 = vcmp.eq.s32.totalorder %v11671_v20, %v9179_v45  ;;  %v11779_v6 = vld [vmem:[#allocation58_spill] sm:$0xff]  ;;  %v404_v62 = vsel %vm11288_vm11, 1.0, %v11711_v42  ;;  %v11804_v20 = vld [vmem:[#allocation33_spill] sm:$0xff] }
 0x1e8   : > { %5988 = vmatprep.subr.mxu0 %v11774_v15  ;;  %6068 = vmatprep.subr.mxu1 %v11775_v38  ;;  %v1963_v34 = vadd.f32 %v5383_v24, %v11777_v60  ;;  %v5471_v61 = vpop.f32.mrf.mxu1  ;;  %v409_v2 = vsel %vm11290_vm0, 1.0, %v11711_v42  ;;  %v5385_v60 = vpop.f32.mrf.mxu0  ;;  %v3496_v22 = vand.u32 4294901760, %v3495_v56  ;;  %vm11300_vm14 = vcmp.eq.s32.totalorder %v11680_v8, %v9194_v5  ;;  %v11786_v38 = vld [vmem:[#allocation24_spill] sm:$0xff] }
 0x1e9   : > { %5989 = vmatpush3.msra.mxu0 %v11778_v41  ;;  %6069 = vmatpush3.msra.mxu1 %v11779_v6  ;;  %v9725_v24 = vadd.f32 %v5471_v61, %v5470_v26  ;;  %v5386_v14 = vadd.f32 %v5385_v60, %v5384_v10  ;;  %v408_v26 = vsel %vm344_vm1, 1.0, %v11711_v42  ;;  %v3504_v41 = vand.u32 4294901760, %v3503_v51 }
 0x1ea   : > { %5107 = vmatmul.mubr.msk.f32.gmra.mxu1 %vm11274_vm6, %v11406_v58  ;;  %3484 = vmatmul.mubr.f32.gmra.mxu0 %v3483_v52  ;;  %v5473_v6 = vpop.f32.mrf.mxu1  ;;  %vm11303_vm6 = vcmp.eq.s32.totalorder %v11680_v8, %v9179_v45  ;;  %v9741_v56 = vadd.f32 %v9602_v11, %v1963_v34  ;;  %v11781_v52 = vld [vmem:[#allocation17_spill] sm:$0xff]  ;;  %v5387_v61 = vpop.f32.mrf.mxu0  ;;  %v11784_v10 = vand.u32 4294901760, %v9665_v31  ;;  %v9750_v15 = vsub.f32 %v409_v2, %v409_v2  ;;  %v11787_v34 = vld [vmem:[#allocation20_spill] sm:$0xff] }
 0x1eb   : > { %5108 = vmatprep.mubr.msk.f32.mxu1 %vm11287_vm7, %v11406_v58  ;;  %3492 = vmatprep.mubr.f32.mxu0 %v3491_v16  ;;  %v9745_v16 = vsub.f32 %v404_v62, %v404_v62  ;;  %v1976_v19 = vadd.f32 %v5386_v14, %v9226_v7  ;;  %v413_v62 = vsel %vm11300_vm14, 1.0, %v11711_v42  ;;  %v9769_v14 = vsub.f32 %v408_v26, %v408_v26 }
 0x1ec   : > { %11780 = vst [vmem:[#allocation72_spill] sm:$0xff] %v9741_v56  ;;  %5990 = vmatprep.subr.mxu0 %v11781_v52  ;;  %6070 = vmatprep.subr.mxu1 %v11782_v27  ;;  %v3508_v60 = vsub.f32 %v9665_v31, %v11784_v10  ;;  %11785 = vst [vmem:[#allocation101_spill] sm:$0xff] %v9750_v15  ;;  %v5474_v11 = vpop.f32.mrf.mxu1  ;;  %v11788_v52 = vand.u32 4294901760, %v9667_v13  ;;  %v5388_v2 = vpop.f32.mrf.mxu0  ;;  %v412_v10 = vsel %vm11303_vm6, 1.0, %v11711_v42  ;;  %v11794_v31 = vld [vmem:[#allocation23_spill] sm:$0xff] }
 0x1ed   : > { %11783 = vst [vmem:[#allocation71_spill] sm:$0xff] %v9745_v16  ;;  %5991 = vmatpush3.msra.mxu0 %v11786_v38  ;;  %6071 = vmatpush3.msra.mxu1 %v11787_v34  ;;  %v9767_v7 = vadd.f32 %v5474_v11, %v5473_v6  ;;  %11789 = vst [vmem:[#allocation102_spill] sm:$0xff] %v9769_v14  ;;  %v9785_v26 = vadd.f32 %v9642_v1, %v1976_v19  ;;  %v11791_v11 = vld [vmem:[#allocation22_spill] sm:$0xff]  ;;  %v11796_v1 = vand.u32 4294901760, %v9701_v46 }
 0x1ee   : > { %v3516_v51 = vsub.f32 %v9667_v13, %v11788_v52  ;;  %5109 = vmatmul.mubr.msk.f32.gmra.mxu1 %vm11278_vm2, %v11406_v58  ;;  %3497 = vmatmul.mubr.f32.gmra.mxu0 %v3496_v22  ;;  %v11790_v52 = vand.u32 4294901760, %v9673_v43  ;;  %v5389_v22 = vadd.f32 %v5388_v2, %v5387_v61  ;;  %v5476_v6 = vpop.f32.mrf.mxu1  ;;  %vm11302_vm2 = vcmp.eq.s32.totalorder %v11693_v21, %v9194_v5  ;;  %v11793_v61 = vld [vmem:[#allocation78_spill] sm:$0xff] }
 0x1ef   : > { %5110 = vmatprep.mubr.msk.f32.mxu1 %vm11286_vm15, %v11406_v58  ;;  %3505 = vmatprep.mubr.f32.mxu0 %v3504_v41  ;;  %v3509_v29 = vand.u32 4294901760, %v3508_v60  ;;  %v9789_v34 = vsub.f32 %v413_v62, %v413_v62  ;;  %v11291_v13 = vand.u32 4294901760, %v9745_v16  ;;  %v11795_v19 = vld [vmem:[#allocation10_spill] sm:$0xff]  ;;  %v3529_v60 = vsub.f32 %v9701_v46, %v11796_v1  ;;  %v11798_v1 = vld [vmem:[#allocation25_spill] sm:$0xff]  ;;  %v11799_v41 = vld [vmem:[#allocation27_spill] sm:$0xff] }
 0x1f0   : > { %v3521_v38 = vsub.f32 %v9673_v43, %v11790_v52  ;;  %5992 = vmatprep.subr.mxu0 %v11791_v11  ;;  %v5390_v52 = vpop.f32.mrf.mxu0  ;;  %v11792_v43 = vld [vmem:[#allocation21_spill] sm:$0xff]  ;;  %v1989_v2 = vadd.f32 %v5389_v22, %v11793_v61  ;;  %v5477_v27 = vpop.f32.mrf.mxu1  ;;  %v3517_v56 = vand.u32 4294901760, %v3516_v51  ;;  %v9799_v11 = vsub.f32 %v412_v10, %v412_v10 }
 0x1f1   : > { %6072 = vmatprep.subr.mxu1 %v11792_v43  ;;  %5993 = vmatpush3.msra.mxu0 %v11794_v31  ;;  %v9805_v62 = vadd.f32 %v5477_v27, %v5476_v6  ;;  %v417_v51 = vsel %vm11302_vm2, 1.0, %v11711_v42  ;;  %vm352_vm15 = vcmp.eq.s32.totalorder %v11693_v21, %v9179_v45  ;;  %vm364_vm7 = vcmp.eq.s32.totalorder %v11717_v30, %v9179_v45 }
 0x1f2   : > { %6073 = vmatpush3.msra.mxu1 %v11795_v19  ;;  %3510 = vmatmul.mubr.f32.gmra.mxu0 %v3509_v29  ;;  %v5391_v22 = vpop.f32.mrf.mxu0  ;;  %v5479_v29 = vpop.f32.mrf.mxu1  ;;  %v3522_v6 = vand.u32 4294901760, %v3521_v38  ;;  %v9823_v61 = vadd.f32 %v9686_v39, %v1989_v2  ;;  %v3534_v37 = vsub.f32 %v9745_v16, %v11291_v13  ;;  %v11801_v2 = vld [vmem:[#allocation64_spill] sm:$0xff]  ;;  %v9839_v31 = vsub.f32 %v417_v51, %v417_v51 }
 0x1f3   : > { %5111 = vmatmul.mubr.msk.f32.gmra.mxu1 %vm11288_vm11, %v11406_v58  ;;  %3518 = vmatprep.mubr.f32.mxu0 %v3517_v56  ;;  %v5392_v27 = vadd.f32 %v5391_v22, %v5390_v52  ;;  %vm11305_vm11 = vcmp.eq.s32.totalorder %v11704_v18, %v9194_v5  ;;  %v11800_v56 = vand.u32 4294901760, %v9750_v15  ;;  %v11809_v8 = vand.u32 4294901760, %v9799_v11 }
 0x1f4   : > { %5112 = vmatprep.mubr.msk.f32.mxu1 %vm11290_vm0, %v11406_v58  ;;  %11797 = vst [vmem:[#allocation21_spill] sm:$0xff] %v9823_v61  ;;  %5994 = vmatprep.subr.mxu0 %v11798_v1  ;;  %v5393_v10 = vpop.f32.mrf.mxu0  ;;  %vm356_vm0 = vcmp.eq.s32.totalorder %v11704_v18, %v9179_v45  ;;  %v5480_v22 = vpop.f32.mrf.mxu1  ;;  %v3530_v1 = vand.u32 4294901760, %v3529_v60  ;;  %v11803_v60 = vand.u32 4294901760, %v9769_v14  ;;  %v421_v51 = vsel %vm11305_vm11, 1.0, %v11711_v42  ;;  %v11807_v61 = vld [vmem:[#allocation34_spill] sm:$0xff] }
 0x1f5   : > { %6074 = vmatprep.subr.mxu1 %v11799_v41  ;;  %v3542_v52 = vsub.f32 %v9750_v15, %v11800_v56  ;;  %v2002_v39 = vadd.f32 %v5392_v27, %v9302_v63  ;;  %5995 = vmatpush3.msra.mxu0 %v11801_v2  ;;  %v11802_v41 = vld [vmem:[#allocation28_spill] sm:$0xff]  ;;  %v416_v56 = vsel %vm352_vm15, 1.0, %v11711_v42  ;;  %v9849_v63 = vadd.f32 %v5480_v22, %v5479_v29  ;;  %v11805_v15 = vld [vmem:[#allocation30_spill] sm:$0xff] }
 0x1f6   : > { %6075 = vmatpush3.msra.mxu1 %v11802_v41  ;;  %3523 = vmatmul.mubr.f32.gmra.mxu0 %v3522_v6  ;;  %v5394_v27 = vpop.f32.mrf.mxu0  ;;  %v3547_v13 = vsub.f32 %v9769_v14, %v11803_v60  ;;  %v5482_v6 = vpop.f32.mrf.mxu1  ;;  %v420_v22 = vsel %vm356_vm0, 1.0, %v11711_v42  ;;  %v3535_v2 = vand.u32 4294901760, %v3534_v37  ;;  %v425_v37 = vsel %vm361_vm4, 1.0, %v11711_v42 }
 0x1f7   : > { %5113 = vmatmul.mubr.msk.f32.gmra.mxu1 %vm344_vm1, %v11406_v58  ;;  %3531 = vmatprep.mubr.f32.mxu0 %v3530_v1  ;;  %v5395_v29 = vadd.f32 %v5394_v27, %v5393_v10  ;;  %v9870_v38 = vadd.f32 %v9725_v24, %v2002_v39  ;;  %v3543_v41 = vand.u32 4294901760, %v3542_v52  ;;  %v9874_v1 = vsub.f32 %v416_v56, %v416_v56  ;;  %v11808_v24 = vld [vmem:[#allocation26_spill] sm:$0xff] }
 0x1f8   : > { %5114 = vmatprep.mubr.msk.f32.mxu1 %vm11300_vm14, %v11406_v58  ;;  %5996 = vmatprep.subr.mxu0 %v11804_v20  ;;  %v5396_v14 = vpop.f32.mrf.mxu0  ;;  %v11806_v10 = vand.u32 4294901760, %v9789_v34  ;;  %v5483_v60 = vpop.f32.mrf.mxu1  ;;  %v9882_v39 = vsub.f32 %v421_v51, %v421_v51  ;;  %vm360_vm14 = vcmp.eq.s32.totalorder %v11712_v53, %v9179_v45  ;;  %v3548_v52 = vand.u32 4294901760, %v3547_v13 }
 0x1f9   : > { %6076 = vmatprep.subr.mxu1 %v11805_v15  ;;  %v2015_v16 = vadd.f32 %v5395_v29, %v9274_v36  ;;  %5997 = vmatpush3.msra.mxu0 %v11807_v61  ;;  %v9893_v36 = vadd.f32 %v5483_v60, %v5482_v6  ;;  %v9895_v29 = vsub.f32 %v420_v22, %v420_v22  ;;  %v11810_v22 = vld [vmem:[#allocation32_spill] sm:$0xff] }
 0x1fa   : > { %v3555_v27 = vsub.f32 %v9789_v34, %v11806_v10  ;;  %6077 = vmatpush3.msra.mxu1 %v11808_v24  ;;  %3536 = vmatmul.mubr.f32.gmra.mxu0 %v3535_v2  ;;  %v5397_v56 = vpop.f32.mrf.mxu0  ;;  %v5485_v10 = vpop.f32.mrf.mxu1  ;;  %v3560_v2 = vsub.f32 %v9799_v11, %v11809_v8  ;;  %v11811_v24 = vld [vmem:[#allocation31_spill] sm:$0xff]  ;;  %v9911_v20 = vsub.f32 %v425_v37, %v425_v37  ;;  %v424_v37 = vsel %vm360_vm14, 1.0, %v11711_v42 }
 0x1fb   : > { %5115 = vmatmul.mubr.msk.f32.gmra.mxu1 %vm11303_vm6, %v11406_v58  ;;  %3544 = vmatprep.mubr.f32.mxu0 %v3543_v41  ;;  %v5398_v51 = vadd.f32 %v5397_v56, %v5396_v14  ;;  %v9907_v6 = vadd.f32 %v9767_v7, %v2015_v16  ;;  %v11812_v14 = vld [vmem:[#allocation40_spill] sm:$0xff]  ;;  %v11814_v7 = vand.u32 4294901760, %v9839_v31  ;;  %vm368_vm6 = vcmp.eq.s32.totalorder %v11721_v32, %v9179_v45  ;;  %v11834_v45 = vld [vmem:[#allocation81_spill] sm:$0xff] }
 0x1fc   : > { %5116 = vmatprep.mubr.msk.f32.mxu1 %vm11302_vm2, %v11406_v58  ;;  %5998 = vmatprep.subr.mxu0 %v11810_v22  ;;  %v5399_v60 = vpop.f32.mrf.mxu0  ;;  %v3556_v61 = vand.u32 4294901760, %v3555_v27  ;;  %vm365_vm2 = vcmp.eq.s32.totalorder %v11717_v30, %v9194_v5  ;;  %v5486_v8 = vpop.f32.mrf.mxu1  ;;  %v11813_v16 = vld [vmem:[#allocation36_spill] sm:$0xff] }
 0x1fd   : > { %6078 = vmatprep.subr.mxu1 %v11811_v24  ;;  %v2028_v13 = vadd.f32 %v5398_v51, %v9365_v48  ;;  %5999 = vmatpush3.msra.mxu0 %v11812_v14  ;;  %v3568_v27 = vsub.f32 %v9839_v31, %v11814_v7  ;;  %v428_v48 = vsel %vm364_vm7, 1.0, %v11711_v42  ;;  %v9937_v51 = vadd.f32 %v5486_v8, %v5485_v10 }
 0x1fe   : > { %6079 = vmatpush3.msra.mxu1 %v11813_v16  ;;  %3549 = vmatmul.mubr.f32.gmra.mxu0 %v3548_v52  ;;  %v5400_v7 = vpop.f32.mrf.mxu0  ;;  %v5488_v41 = vpop.f32.mrf.mxu1  ;;  %v3561_v14 = vand.u32 4294901760, %v3560_v2  ;;  %v429_v16 = vsel %vm365_vm2, 1.0, %v11711_v42  ;;  %v11816_v52 = vld [vmem:[#allocation38_spill] sm:$0xff]  ;;  %v9952_v8 = vsub.f32 %v424_v37, %v424_v37  ;;  %v11308_v2 = vand.u32 4294901760, %v9895_v29 }
 0x1ff   : > { %5117 = vmatmul.mubr.msk.f32.gmra.mxu1 %vm352_vm15, %v11406_v58  ;;  %3557 = vmatprep.mubr.f32.mxu0 %v3556_v61  ;;  %v5401_v56 = vadd.f32 %v5400_v7, %v5399_v60  ;;  %v9948_v21 = vadd.f32 %v9805_v62, %v2028_v13  ;;  %v11817_v61 = vand.u32 4294901760, %v9874_v1  ;;  %v11818_v62 = vld [vmem:[#allocation42_spill] sm:$0xff]  ;;  %v11819_v37 = vand.u32 4294901760, %v9882_v39 }
 0x200   : > { %5118 = vmatprep.mubr.msk.f32.mxu1 %vm11305_vm11, %v11406_v58  ;;  %6000 = vmatprep.subr.mxu0 %v11816_v52  ;;  %v5402_v10 = vpop.f32.mrf.mxu0  ;;  %vm369_vm11 = vcmp.eq.s32.totalorder %v11721_v32, %v9194_v5  ;;  %v5489_v13 = vpop.f32.mrf.mxu1  ;;  %v3569_v52 = vand.u32 4294901760, %v3568_v27 }
 0x201   : > { %11815 = vst [vmem:[#allocation78_spill] sm:$0xff] %v9948_v21  ;;  %6080 = vmatprep.subr.mxu1 %v8967_v35  ;;  %v3573_v60 = vsub.f32 %v9874_v1, %v11817_v61  ;;  %v2041_v7 = vadd.f32 %v5401_v56, %v9347_v54  ;;  %6001 = vmatpush3.msra.mxu0 %v11818_v62  ;;  %v433_v21 = vsel %vm369_vm11, 1.0, %v11711_v42 }
 0x202   : > { %6081 = vmatpush3.msra.mxu1 %v8978_v59  ;;  %v3581_v35 = vsub.f32 %v9882_v39, %v11819_v37  ;;  %3562 = vmatmul.mubr.f32.gmra.mxu0 %v3561_v14  ;;  %v9971_v61 = vadd.f32 %v5489_v13, %v5488_v41  ;;  %v5403_v54 = vpop.f32.mrf.mxu0  ;;  %v9973_v56 = vsub.f32 %v429_v16, %v429_v16  ;;  %v5491_v37 = vpop.f32.mrf.mxu1  ;;  %v432_v41 = vsel %vm368_vm6, 1.0, %v11711_v42  ;;  %v11820_v13 = vld [vmem:[#allocation46_spill] sm:$0xff] }
 0x203   : > { %5119 = vmatmul.mubr.msk.f32.gmra.mxu1 %vm356_vm0, %v11406_v58  ;;  %3570 = vmatprep.mubr.f32.mxu0 %v3569_v52  ;;  %v5404_v27 = vadd.f32 %v5403_v54, %v5402_v10  ;;  %v9984_v14 = vadd.f32 %v9849_v63, %v2041_v7  ;;  %v9990_v16 = vsub.f32 %v428_v48, %v428_v48  ;;  %v3574_v10 = vand.u32 4294901760, %v3573_v60  ;;  %v11821_v7 = vld [vmem:[#allocation69_spill] sm:$0xff] }
 0x204   : > { %5120 = vmatprep.mubr.msk.f32.mxu1 %vm361_vm4, %v11406_v58  ;;  %6002 = vmatprep.subr.mxu0 %v11820_v13  ;;  %v5405_v52 = vpop.f32.mrf.mxu0  ;;  %v3586_v54 = vsub.f32 %v9895_v29, %v11308_v2  ;;  %v5492_v18 = vpop.f32.mrf.mxu1  ;;  %v3582_v62 = vand.u32 4294901760, %v3581_v35  ;;  %v11822_v42 = vand.u32 4294901760, %v9911_v20  ;;  %v10020_v53 = vsub.f32 %v432_v41, %v432_v41  ;;  %v11825_v35 = vld [vmem:[#allocation73_spill] sm:$0xff] }
 0x205   : > { %6082 = vmatprep.subr.mxu1 %v9021_v44  ;;  %v2054_v63 = vadd.f32 %v5404_v27, %v9432_v12  ;;  %6003 = vmatpush3.msra.mxu0 %v11821_v7  ;;  %v10008_v2 = vadd.f32 %v5492_v18, %v5491_v37  ;;  %v10010_v27 = vsub.f32 %v433_v21, %v433_v21  ;;  %v11824_v18 = vld [vmem:[#allocation70_spill] sm:$0xff]  ;;  %v11829_v30 = vand.u32 4294901760, %v9990_v16 }
 0x206   : > { %6083 = vmatpush3.msra.mxu1 %v9037_v55  ;;  %v3594_v48 = vsub.f32 %v9911_v20, %v11822_v42  ;;  %3575 = vmatmul.mubr.f32.gmra.mxu0 %v3574_v10  ;;  %v5406_v12 = vpop.f32.mrf.mxu0  ;;  %v5494_v60 = vpop.f32.mrf.mxu1  ;;  %11823 = vst [vmem:[#allocation10_spill] sm:$0xff] %v10020_v53  ;;  %v3587_v37 = vand.u32 4294901760, %v3586_v54 }
 0x207   : > { %5121 = vmatmul.mubr.msk.f32.gmra.mxu1 %vm360_vm14, %v11406_v58  ;;  %3583 = vmatprep.mubr.f32.mxu0 %v3582_v62  ;;  %v5407_v42 = vadd.f32 %v5406_v12, %v5405_v52  ;;  %v10018_v7 = vadd.f32 %v9893_v36, %v2054_v63  ;;  %v11826_v12 = vand.u32 4294901760, %v9952_v8  ;;  %v11827_v63 = vand.u32 4294901760, %v9973_v56 }
 0x208   : > { %5122 = vmatprep.mubr.msk.f32.mxu1 %vm365_vm2, %v11406_v58  ;;  %6004 = vmatprep.subr.mxu0 %v11824_v18  ;;  %v5408_v21 = vpop.f32.mrf.mxu0  ;;  %v5495_v62 = vpop.f32.mrf.mxu1  ;;  %v3595_v52 = vand.u32 4294901760, %v3594_v48 }
 0x209   : > { %6084 = vmatprep.subr.mxu1 %v9059_v33  ;;  %v2067_v10 = vadd.f32 %v5407_v42, %v9409_v57  ;;  %6005 = vmatpush3.msra.mxu0 %v11825_v35  ;;  %v3599_v36 = vsub.f32 %v9952_v8, %v11826_v12  ;;  %v10035_v54 = vadd.f32 %v5495_v62, %v5494_v60 }
 0x20a   : > { %6085 = vmatpush3.msra.mxu1 %v9100_v50  ;;  %3588 = vmatmul.mubr.f32.gmra.mxu0 %v3587_v37  ;;  %v5409_v57 = vpop.f32.mrf.mxu0  ;;  %v3607_v42 = vsub.f32 %v9973_v56, %v11827_v63  ;;  %v5497_v60 = vpop.f32.mrf.mxu1  ;;  %v11828_v37 = vld [vmem:[#allocation74_spill] sm:$0xff] }
 0x20b   : > { %5123 = vmatmul.mubr.msk.f32.gmra.mxu1 %vm364_vm7, %v11406_v58  ;;  %3596 = vmatprep.mubr.f32.mxu0 %v3595_v52  ;;  %v5410_v12 = vadd.f32 %v5409_v57, %v5408_v21  ;;  %v10046_v41 = vadd.f32 %v9937_v51, %v2067_v10  ;;  %v3600_v48 = vand.u32 4294901760, %v3599_v36  ;;  %v3612_v21 = vsub.f32 %v9990_v16, %v11829_v30  ;;  %v11832_v51 = vld [vmem:[#allocation88_spill] sm:$0xff] }
 0x20c   : > { %5124 = vmatprep.mubr.msk.f32.mxu1 %vm369_vm11, %v11406_v58  ;;  %6086 = vmatprep.subr.mxu1 %v9109_v3  ;;  %v5411_v63 = vpop.f32.mrf.mxu0  ;;  %v3608_v10 = vand.u32 4294901760, %v3607_v42  ;;  %v11830_v52 = vand.u32 4294901760, %v10010_v27  ;;  %v11833_v5 = vand.u32 4294901760, %v11832_v51 }
 0x20d   : > { %6006 = vmatprep.subr.mxu0 %v11828_v37  ;;  %v2080_v62 = vadd.f32 %v5410_v12, %v9496_v17  ;;  %6087 = vmatpush3.msra.mxu1 %v9161_v9  ;;  %v5498_v17 = vpop.f32.mrf.mxu1 }
 0x20e   : > { %6007 = vmatpush3.msra.mxu0 %v9220_v23  ;;  %6088 = vmatprep.subr.mxu1 %v9173_v28  ;;  %v3620_v36 = vsub.f32 %v10010_v27, %v11830_v52  ;;  %v5499_v57 = vadd.f32 %v5498_v17, %v5497_v60  ;;  %v5412_v30 = vpop.f32.mrf.mxu0  ;;  %v3613_v52 = vand.u32 4294901760, %v3612_v21  ;;  %v11837_v17 = vld [vmem:[#allocation92_spill] sm:$0xff] }
 0x20f   : > { %5125 = vmatmul.mubr.msk.f32.gmra.mxu1 %vm368_vm6, %v11406_v58  ;;  %3601 = vmatmul.mubr.f32.gmra.mxu0 %v3600_v48  ;;  %v10067_v12 = vadd.f32 %v9971_v61, %v2080_v62  ;;  %v5413_v32 = vadd.f32 %v5412_v30, %v5411_v63  ;;  %v5612_v42 = vpop.f32.mrf.mxu1  ;;  %v11835_v58 = vld [vmem:[#allocation82_spill] sm:$0xff]  ;;  %v11836_v48 = vand.u32 4294901760, %v10020_v53  ;;  %v11838_v61 = vld [vmem:[#allocation84_spill] sm:$0xff]  ;;  %v11839_v62 = vld [vmem:[#allocation87_spill] sm:$0xff] }
 0x210   : > { %6089 = vmatpush3.msra.mxu1 %v9212_v0  ;;  %4276 = vmatprep.mubr.f32.mxu1 %v11833_v5  ;;  %v5414_v23 = vpop.f32.mrf.mxu0  ;;  %v3621_v5 = vand.u32 4294901760, %v3620_v36  ;;  %v11840_v63 = vand.u32 4294901760, %v11839_v62 }
 0x211   : > { %11831 = vst [vmem:[#allocation30_spill] sm:$0xff] %v10067_v12  ;;  %3609 = vmatprep.mubr.f32.mxu0 %v3608_v10  ;;  %6090 = vmatprep.subr.mxu1 %v11834_v45  ;;  %v3625_v60 = vsub.f32 %v10020_v53, %v11836_v48  ;;  %v2093_v0 = vadd.f32 %v5413_v32, %v11837_v17  ;;  %v5613_v10 = vpop.f32.mrf.mxu1  ;;  %v11844_v17 = vld [vmem:[#allocation85_spill] sm:$0xff]  ;;  %v11847_v53 = vld [vmem:[#allocation86_spill] sm:$0xff] }
 0x212   : > { %6008 = vmatprep.subr.mxu0 %v11835_v58  ;;  %6091 = vmatpush3.msra.mxu1 %v9233_v4  ;;  %v5415_v30 = vpop.f32.mrf.mxu0  ;;  %v11841_v58 = vld [vmem:[#allocation89_spill] sm:$0xff]  ;;  %v5614_v21 = vadd.f32 %v5613_v10, %v5612_v42  ;;  %v11845_v4 = vld [vmem:[#allocation43_spill] sm:$0xff] }
 0x213   : > { %6009 = vmatpush3.msra.mxu0 %v11838_v61  ;;  %4279 = vmatmul.mubr.f32.vlgmr.msra.gmra.mxu1 %v11840_v63  ;;  %v11842_v45 = vand.u32 4294901760, %v11841_v58  ;;  %v5416_v28 = vadd.f32 %v5415_v30, %v5414_v23  ;;  %v10084_v48 = vadd.f32 %v10008_v2, %v2093_v0  ;;  %v5615_v32 = vpop.f32.mrf.mxu1  ;;  %v3626_v36 = vand.u32 4294901760, %v3625_v60  ;;  %v11846_v63 = vld [vmem:[#allocation41_spill] sm:$0xff]  ;;  %v11851_v2 = vld [vmem:[#allocation91_spill] sm:$0xff] }
 0x214   : > { %3614 = vmatmul.mubr.f32.gmra.mxu0 %v3613_v52  ;;  %6010 = vmatprep.subr.mxu0 %v11844_v17  ;;  %v5417_v61 = vpop.f32.mrf.mxu0  ;;  %v11848_v12 = vld [vmem:[#allocation45_spill] sm:$0xff]  ;;  %v11854_v30 = vld [vmem:[#allocation51_spill] sm:$0xff]  ;;  %v11858_v17 = vld [vmem:[#allocation8_spill] sm:$0xff] }
 0x215   : > { %4285 = vmatprep.mubr.f32.mxu1 %v11842_v45  ;;  %3622 = vmatprep.mubr.f32.mxu0 %v3621_v5  ;;  %11843 = vst [vmem:[#allocation32_spill] sm:$0xff] %v10084_v48  ;;  %v2106_v52 = vadd.f32 %v5416_v28, %v11846_v63  ;;  %v11849_v45 = vld [vmem:[#allocation90_spill] sm:$0xff]  ;;  %v5616_v23 = vpop.f32.mrf.mxu1  ;;  %v11852_v5 = vand.u32 4294901760, %v11851_v2  ;;  %v11855_v63 = vand.u32 4294901760, %v11854_v30  ;;  %v11859_v48 = vld [vmem:[#allocation29_spill] sm:$0xff] }
 0x216   : > { %6220 = vmatprep.subr.mxu1 %v11845_v4  ;;  %6011 = vmatpush3.msra.mxu0 %v11847_v53  ;;  %v11850_v42 = vand.u32 4294901760, %v11849_v45  ;;  %v5418_v0 = vpop.f32.mrf.mxu0  ;;  %v5617_v10 = vadd.f32 %v5616_v23, %v5615_v32  ;;  %v11856_v53 = vld [vmem:[#allocation6_spill] sm:$0xff] }
 0x217   : > { %6221 = vmatpush3.msra.mxu1 %v11848_v12  ;;  %v5419_v60 = vadd.f32 %v5418_v0, %v5417_v61  ;;  %v10097_v4 = vadd.f32 %v10035_v54, %v2106_v52  ;;  %v5618_v28 = vpop.f32.mrf.mxu1  ;;  %6140 = vmatprep.subr.mxu0 %v11855_v63  ;;  %v11861_v54 = vld [vmem:[#allocation93_spill] sm:$0xff]  ;;  %v11863_v52 = vld [vmem:[#allocation7_spill] sm:$0xff] }
 0x218   : > { %4288 = vmatmul.mubr.f32.gmra.mxu1 %v11850_v42  ;;  %3627 = vmatmul.mubr.f32.gmra.mxu0 %v3626_v36  ;;  %v5532_v12 = vpop.f32.mrf.mxu0  ;;  %v11857_v36 = vld [vmem:[#allocation95_spill] sm:$0xff]  ;;  %v11862_v32 = vand.u32 4294901760, %v11861_v54  ;;  %v11864_v23 = vand.u32 4294901760, %v11863_v52 }
 0x219   : > { %4294 = vmatprep.mubr.f32.mxu1 %v11852_v5  ;;  %4066 = vmatprep.mubr.f32.mxu0 %v11832_v51  ;;  %11853 = vst [vmem:[#allocation31_spill] sm:$0xff] %v10097_v4  ;;  %v2119_v42 = vadd.f32 %v5419_v60, %v11857_v36  ;;  %v11860_v5 = vand.u32 4294901760, %v11859_v48  ;;  %v5619_v51 = vpop.f32.mrf.mxu1  ;;  %v11865_v60 = vld [vmem:[#allocation52_spill] sm:$0xff]  ;;  %v11868_v4 = vld [vmem:[#allocation54_spill] sm:$0xff]  ;;  %v11871_v52 = vld [vmem:[#allocation35_spill] sm:$0xff] }
 0x21a   : > { %6222 = vmatprep.subr.mxu1 %v11856_v53  ;;  %v5533_v61 = vpop.f32.mrf.mxu0  ;;  %v5620_v0 = vadd.f32 %v5619_v51, %v5618_v28  ;;  %v11866_v63 = vand.u32 4294901760, %v11865_v60  ;;  %v11869_v37 = vand.u32 4294901760, %v11868_v4 }
 0x21b   : > { %6223 = vmatpush3.msra.mxu1 %v11858_v17  ;;  %v5534_v30 = vadd.f32 %v5533_v61, %v5532_v12  ;;  %v10111_v53 = vadd.f32 %v5499_v57, %v2119_v42  ;;  %v5621_v17 = vpop.f32.mrf.mxu1 }
 0x21c   : > { %4297 = vmatmul.mubr.f32.gmra.mxu1 %v11860_v5  ;;  %4068 = vmatmul.mubr.f32.vlgmr.msra.gmra.mxu0 %v11839_v62  ;;  %v5535_v36 = vpop.f32.mrf.mxu0  ;;  %v11867_v62 = vld [vmem:[#allocation99_spill] sm:$0xff] }
 0x21d   : > { %4303 = vmatprep.mubr.f32.mxu1 %v11862_v32  ;;  %6141 = vmatpush3.msra.mxu0 %v11864_v23  ;;  %v2560_v5 = vadd.f32 %v5534_v30, %v11867_v62  ;;  %v11870_v32 = vld [vmem:[#allocation11_spill] sm:$0xff]  ;;  %v11872_v23 = vand.u32 4294901760, %v11871_v52  ;;  %v5622_v57 = vpop.f32.mrf.mxu1  ;;  %v11878_v62 = vld [vmem:[#allocation56_spill] sm:$0xff] }
 0x21e   : > { %4073 = vmatprep.mubr.f32.mxu0 %v11841_v58  ;;  %6142 = vmatprep.subr.mxu0 %v11866_v63  ;;  %v5536_v28 = vpop.f32.mrf.mxu0  ;;  %v11873_v58 = vld [vmem:[#allocation94_spill] sm:$0xff]  ;;  %v5623_v42 = vadd.f32 %v5622_v57, %v5621_v17  ;;  %v11877_v63 = vld [vmem:[#allocation12_spill] sm:$0xff] }
 0x21f   : > { %6143 = vmatpush3.msra.mxu0 %v11869_v37  ;;  %6224 = vmatprep.subr.mxu1 %v11870_v32  ;;  %v11874_v12 = vand.u32 4294901760, %v11873_v58  ;;  %v5537_v51 = vadd.f32 %v5536_v28, %v5535_v36  ;;  %v10126_v61 = vadd.f32 %v5614_v21, %v2560_v5  ;;  %v5624_v4 = vpop.f32.mrf.mxu1  ;;  %v11875_v37 = vld [vmem:[#allocation15_spill] sm:$0xff]  ;;  %v11879_v32 = vand.u32 4294901760, %v11878_v62  ;;  %v11880_v17 = vld [vmem:[#allocation96_spill] sm:$0xff]  ;;  %v11882_v36 = vld [vmem:[#allocation97_spill] sm:$0xff] }
 0x220   : > { %4306 = vmatmul.mubr.f32.gmra.mxu1 %v11872_v23  ;;  %4075 = vmatmul.mubr.f32.gmra.mxu0 %v11849_v45  ;;  %v11876_v30 = vand.u32 4294901760, %v11875_v37  ;;  %v5538_v60 = vpop.f32.mrf.mxu0  ;;  %v11881_v23 = vand.u32 4294901760, %v11880_v17  ;;  %v11883_v5 = vand.u32 4294901760, %v11882_v36  ;;  %v11885_v37 = vld [vmem:[#allocation57_spill] sm:$0xff]  ;;  %v11888_v62 = vld [vmem:[#allocation18_spill] sm:$0xff] }
 0x221   : > { %4312 = vmatprep.mubr.f32.mxu1 %v11874_v12  ;;  %4080 = vmatprep.mubr.f32.mxu0 %v11851_v2  ;;  %v2567_v45 = vadd.f32 %v5537_v51, %v9661_v49  ;;  %v5625_v21 = vpop.f32.mrf.mxu1  ;;  %v11884_v51 = vand.u32 4294901760, %v11765_v40 }
 0x222   : > { %6144 = vmatprep.subr.mxu0 %v11876_v30  ;;  %6225 = vmatpush3.msra.mxu1 %v11877_v63  ;;  %v5539_v2 = vpop.f32.mrf.mxu0  ;;  %v5626_v57 = vadd.f32 %v5625_v21, %v5624_v4  ;;  %v11886_v30 = vld [vmem:[#allocation13_spill] sm:$0xff]  ;;  %v11889_v4 = vld [vmem:[#allocation98_spill] sm:$0xff] }
 0x223   : > { %6145 = vmatpush3.msra.mxu0 %v11879_v32  ;;  %6226 = vmatprep.subr.mxu1 %v11766_v25  ;;  %v5540_v28 = vadd.f32 %v5539_v2, %v5538_v60  ;;  %v10141_v49 = vadd.f32 %v5617_v10, %v2567_v45  ;;  %v5627_v12 = vpop.f32.mrf.mxu1  ;;  %v11887_v63 = vand.u32 4294901760, %v11886_v30  ;;  %v11890_v32 = vand.u32 4294901760, %v11889_v4  ;;  %v11891_v60 = vld [vmem:[#allocation100_spill] sm:$0xff]  ;;  %v11897_v30 = vld [vmem:[#allocation62_spill] sm:$0xff] }
 0x224   : > { %4315 = vmatmul.mubr.f32.gmra.mxu1 %v11881_v23  ;;  %4082 = vmatmul.mubr.f32.gmra.mxu0 %v11859_v48  ;;  %v5541_v25 = vpop.f32.mrf.mxu0  ;;  %v11892_v40 = vand.u32 4294901760, %v11891_v60  ;;  %v11893_v2 = vld [vmem:[#allocation60_spill] sm:$0xff] }
 0x225   : > { %4321 = vmatprep.mubr.f32.mxu1 %v11883_v5  ;;  %4087 = vmatprep.mubr.f32.mxu0 %v11861_v54  ;;  %v2574_v48 = vadd.f32 %v5540_v28, %v9697_v47  ;;  %v5628_v10 = vpop.f32.mrf.mxu1  ;;  %v11894_v5 = vand.u32 4294901760, %v11893_v2  ;;  %v11904_v2 = vld [vmem:[#allocation17_spill] sm:$0xff] }
 0x226   : > { %6146 = vmatprep.subr.mxu0 %v11884_v51  ;;  %6227 = vmatpush3.msra.mxu1 %v11885_v37  ;;  %v5542_v54 = vpop.f32.mrf.mxu0  ;;  %v5629_v45 = vadd.f32 %v5628_v10, %v5627_v12  ;;  %v11895_v51 = vld [vmem:[#allocation58_spill] sm:$0xff]  ;;  %v11896_v37 = vld [vmem:[#allocation72_spill] sm:$0xff]  ;;  %v11900_v12 = vld [vmem:[#allocation5_spill] sm:$0xff] }
 0x227   : > { %6147 = vmatpush3.msra.mxu0 %v11887_v63  ;;  %6228 = vmatprep.subr.mxu1 %v11888_v62  ;;  %v5543_v23 = vadd.f32 %v5542_v54, %v5541_v25  ;;  %v10156_v47 = vadd.f32 %v5620_v0, %v2574_v48  ;;  %v5630_v21 = vpop.f32.mrf.mxu1  ;;  %v11898_v63 = vand.u32 4294901760, %v11897_v30  ;;  %v11899_v62 = vld [vmem:[#allocation19_spill] sm:$0xff]  ;;  %v11902_v25 = vld [vmem:[#allocation16_spill] sm:$0xff] }
 0x228   : > { %4324 = vmatmul.mubr.f32.gmra.mxu1 %v11890_v32  ;;  %4089 = vmatmul.mubr.f32.gmra.mxu0 %v11871_v52  ;;  %v5544_v28 = vpop.f32.mrf.mxu0  ;;  %v11901_v32 = vand.u32 4294901760, %v11900_v12  ;;  %v11903_v48 = vand.u32 4294901760, %v11902_v25  ;;  %v11907_v30 = vld [vmem:[#allocation24_spill] sm:$0xff] }
 0x229   : > { %4330 = vmatprep.mubr.f32.mxu1 %v11892_v40  ;;  %4094 = vmatprep.mubr.f32.mxu0 %v11873_v58  ;;  %v2581_v52 = vadd.f32 %v5543_v23, %v11896_v37  ;;  %v5631_v0 = vpop.f32.mrf.mxu1  ;;  %v11906_v37 = vld [vmem:[#allocation20_spill] sm:$0xff] }
 0x22a   : > { %6148 = vmatprep.subr.mxu0 %v11894_v5  ;;  %6229 = vmatpush3.msra.mxu1 %v11895_v51  ;;  %v5545_v58 = vpop.f32.mrf.mxu0  ;;  %v5632_v10 = vadd.f32 %v5631_v0, %v5630_v21  ;;  %v11905_v5 = vand.u32 4294901760, %v11904_v2  ;;  %v11909_v21 = vld [vmem:[#allocation9_spill] sm:$0xff]  ;;  %v11915_v2 = vld [vmem:[#allocation23_spill] sm:$0xff] }
 0x22b   : > { %6149 = vmatpush3.msra.mxu0 %v11898_v63  ;;  %6230 = vmatprep.subr.mxu1 %v11899_v62  ;;  %v5546_v54 = vadd.f32 %v5545_v58, %v5544_v28  ;;  %v10171_v40 = vadd.f32 %v5623_v42, %v2581_v52  ;;  %v5633_v23 = vpop.f32.mrf.mxu1  ;;  %v11908_v63 = vand.u32 4294901760, %v11907_v30  ;;  %v11910_v62 = vand.u32 4294901760, %v11909_v21  ;;  %v11912_v58 = vld [vmem:[#allocation22_spill] sm:$0xff] }
 0x22c   : > { %4333 = vmatmul.mubr.f32.gmra.mxu1 %v11901_v32  ;;  %4096 = vmatmul.mubr.f32.gmra.mxu0 %v11880_v17  ;;  %v5547_v51 = vpop.f32.mrf.mxu0  ;;  %v11911_v28 = vand.u32 4294901760, %v9701_v46 }
 0x22d   : > { %4339 = vmatprep.mubr.f32.mxu1 %v11903_v48  ;;  %4101 = vmatprep.mubr.f32.mxu0 %v11882_v36  ;;  %v2588_v17 = vadd.f32 %v5546_v54, %v9785_v26  ;;  %v5634_v42 = vpop.f32.mrf.mxu1  ;;  %v11913_v48 = vand.u32 4294901760, %v11912_v58  ;;  %v11914_v54 = vld [vmem:[#allocation21_spill] sm:$0xff]  ;;  %v11924_v58 = vld [vmem:[#allocation28_spill] sm:$0xff] }
 0x22e   : > { %6150 = vmatprep.subr.mxu0 %v11905_v5  ;;  %6231 = vmatpush3.msra.mxu1 %v11906_v37  ;;  %v5548_v36 = vpop.f32.mrf.mxu0  ;;  %v5635_v52 = vadd.f32 %v5634_v42, %v5633_v23  ;;  %v11916_v5 = vand.u32 4294901760, %v11915_v2  ;;  %v11917_v37 = vld [vmem:[#allocation27_spill] sm:$0xff] }
 0x22f   : > { %6151 = vmatpush3.msra.mxu0 %v11908_v63  ;;  %6232 = vmatprep.subr.mxu1 %v11792_v43  ;;  %v5549_v32 = vadd.f32 %v5548_v36, %v5547_v51  ;;  %v10186_v26 = vadd.f32 %v5626_v57, %v2588_v17  ;;  %v5636_v0 = vpop.f32.mrf.mxu1  ;;  %v11918_v23 = vld [vmem:[#allocation71_spill] sm:$0xff]  ;;  %v11920_v51 = vld [vmem:[#allocation101_spill] sm:$0xff] }
 0x230   : > { %4342 = vmatmul.mubr.f32.gmra.mxu1 %v11910_v62  ;;  %4103 = vmatmul.mubr.f32.gmra.mxu0 %v11889_v4  ;;  %v5550_v43 = vpop.f32.mrf.mxu0  ;;  %v11919_v30 = vand.u32 4294901760, %v11918_v23  ;;  %v11921_v17 = vand.u32 4294901760, %v11920_v51  ;;  %v11922_v36 = vld [vmem:[#allocation25_spill] sm:$0xff] }
 0x231   : > { %4348 = vmatprep.mubr.f32.mxu1 %v11911_v28  ;;  %4108 = vmatprep.mubr.f32.mxu0 %v11891_v60  ;;  %v2595_v4 = vadd.f32 %v5549_v32, %v11914_v54  ;;  %v5637_v57 = vpop.f32.mrf.mxu1  ;;  %v11923_v28 = vand.u32 4294901760, %v11922_v36  ;;  %v11936_v36 = vand.u32 4294901760, %v9839_v31 }
 0x232   : > { %6152 = vmatprep.subr.mxu0 %v11913_v48  ;;  %6233 = vmatpush3.msra.mxu1 %v11795_v19  ;;  %v5551_v60 = vpop.f32.mrf.mxu0  ;;  %v5638_v63 = vadd.f32 %v5637_v57, %v5636_v0  ;;  %v11925_v48 = vld [vmem:[#allocation64_spill] sm:$0xff]  ;;  %v11927_v0 = vld [vmem:[#allocation102_spill] sm:$0xff] }
 0x233   : > { %6153 = vmatpush3.msra.mxu0 %v11916_v5  ;;  %6234 = vmatprep.subr.mxu1 %v11917_v37  ;;  %v5552_v19 = vadd.f32 %v5551_v60, %v5550_v43  ;;  %v10201_v62 = vadd.f32 %v5629_v45, %v2595_v4  ;;  %v5639_v42 = vpop.f32.mrf.mxu1  ;;  %v11926_v54 = vand.u32 4294901760, %v11925_v48  ;;  %v11928_v2 = vand.u32 4294901760, %v11927_v0  ;;  %v11932_v60 = vld [vmem:[#allocation26_spill] sm:$0xff]  ;;  %v11938_v48 = vld [vmem:[#allocation36_spill] sm:$0xff] }
 0x234   : > { %4351 = vmatmul.mubr.f32.gmra.mxu1 %v11919_v30  ;;  %4110 = vmatmul.mubr.f32.gmra.mxu0 %v11900_v12  ;;  %v5553_v32 = vpop.f32.mrf.mxu0  ;;  %v11929_v43 = vand.u32 4294901760, %v9789_v34  ;;  %v11930_v30 = vld [vmem:[#allocation33_spill] sm:$0xff] }
 0x235   : > { %4357 = vmatprep.mubr.f32.mxu1 %v11921_v17  ;;  %4115 = vmatprep.mubr.f32.mxu0 %v11902_v25  ;;  %v2602_v12 = vadd.f32 %v5552_v19, %v9870_v38  ;;  %v5640_v45 = vpop.f32.mrf.mxu1  ;;  %v11931_v57 = vand.u32 4294901760, %v11930_v30  ;;  %v11933_v17 = vld [vmem:[#allocation34_spill] sm:$0xff] }
 0x236   : > { %6154 = vmatprep.subr.mxu0 %v11923_v28  ;;  %6235 = vmatpush3.msra.mxu1 %v11924_v58  ;;  %v5554_v25 = vpop.f32.mrf.mxu0  ;;  %v5641_v4 = vadd.f32 %v5640_v45, %v5639_v42  ;;  %v11934_v19 = vand.u32 4294901760, %v11933_v17  ;;  %v11935_v42 = vand.u32 4294901760, %v9799_v11  ;;  %v11947_v17 = vld [vmem:[#allocation42_spill] sm:$0xff] }
 0x237   : > { %6155 = vmatpush3.msra.mxu0 %v11926_v54  ;;  %6236 = vmatprep.subr.mxu1 %v11805_v15  ;;  %v5555_v5 = vadd.f32 %v5554_v25, %v5553_v32  ;;  %v10216_v38 = vadd.f32 %v5632_v10, %v2602_v12  ;;  %v5642_v37 = vpop.f32.mrf.mxu1  ;;  %v11937_v12 = vand.u32 4294901760, %v11810_v22  ;;  %v11939_v54 = vld [vmem:[#allocation78_spill] sm:$0xff]  ;;  %v11942_v25 = vld [vmem:[#allocation39_spill] sm:$0xff]  ;;  %v11944_v22 = vand.u32 4294901760, %v9882_v39 }
 0x238   : > { %4360 = vmatmul.mubr.f32.gmra.mxu1 %v11928_v2  ;;  %4117 = vmatmul.mubr.f32.gmra.mxu0 %v11909_v21  ;;  %v5556_v15 = vpop.f32.mrf.mxu0  ;;  %v11940_v2 = vld [vmem:[#allocation40_spill] sm:$0xff] }
 0x239   : > { %4366 = vmatprep.mubr.f32.mxu1 %v11929_v43  ;;  %4122 = vmatprep.mubr.f32.mxu0 %v9701_v46  ;;  %v2609_v21 = vadd.f32 %v5555_v5, %v9907_v6  ;;  %v5643_v46 = vpop.f32.mrf.mxu1  ;;  %v11941_v45 = vand.u32 4294901760, %v11940_v2  ;;  %v11943_v43 = vand.u32 4294901760, %v9874_v1  ;;  %v11957_v2 = vand.u32 4294901760, %v11825_v35 }
 0x23a   : > { %6156 = vmatprep.subr.mxu0 %v11931_v57  ;;  %6237 = vmatpush3.msra.mxu1 %v11932_v60  ;;  %v5557_v10 = vpop.f32.mrf.mxu0  ;;  %v5644_v28 = vadd.f32 %v5643_v46, %v5642_v37  ;;  %v11950_v46 = vand.u32 4294901760, %v9911_v20 }
 0x23b   : > { %6157 = vmatpush3.msra.mxu0 %v11934_v19  ;;  %6238 = vmatprep.subr.mxu1 %v11811_v24  ;;  %v5558_v32 = vadd.f32 %v5557_v10, %v5556_v15  ;;  %v10231_v6 = vadd.f32 %v5635_v52, %v2609_v21  ;;  %v5645_v58 = vpop.f32.mrf.mxu1  ;;  %v11945_v15 = vld [vmem:[#allocation38_spill] sm:$0xff]  ;;  %v11948_v19 = vand.u32 4294901760, %v11947_v17 }
 0x23c   : > { %4369 = vmatmul.mubr.f32.gmra.mxu1 %v11935_v42  ;;  %4124 = vmatmul.mubr.f32.gmra.mxu0 %v11918_v23  ;;  %v5559_v24 = vpop.f32.mrf.mxu0  ;;  %v11946_v60 = vand.u32 4294901760, %v11945_v15  ;;  %v11949_v42 = vand.u32 4294901760, %v9895_v29  ;;  %v11966_v15 = vld [vmem:[#allocation10_spill] sm:$0xff] }
 0x23d   : > { %4375 = vmatprep.mubr.f32.mxu1 %v11936_v36  ;;  %4129 = vmatprep.mubr.f32.mxu0 %v11920_v51  ;;  %v2616_v23 = vadd.f32 %v5558_v32, %v11939_v54  ;;  %v5646_v52 = vpop.f32.mrf.mxu1  ;;  %v11951_v32 = vand.u32 4294901760, %v11820_v13  ;;  %v11955_v13 = vand.u32 4294901760, %v9973_v56 }
 0x23e   : > { %6158 = vmatprep.subr.mxu0 %v11937_v12  ;;  %6239 = vmatpush3.msra.mxu1 %v11938_v48  ;;  %v5560_v51 = vpop.f32.mrf.mxu0  ;;  %v5647_v5 = vadd.f32 %v5646_v52, %v5645_v58  ;;  %v11952_v58 = vld [vmem:[#allocation69_spill] sm:$0xff]  ;;  %v11962_v52 = vld [vmem:[#allocation30_spill] sm:$0xff] }
 0x23f   : > { %6159 = vmatpush3.msra.mxu0 %v11941_v45  ;;  %6240 = vmatprep.subr.mxu1 %v11942_v25  ;;  %v5561_v37 = vadd.f32 %v5560_v51, %v5559_v24  ;;  %v10246_v30 = vadd.f32 %v5638_v63, %v2616_v23  ;;  %v5648_v57 = vpop.f32.mrf.mxu1  ;;  %v11953_v12 = vand.u32 4294901760, %v11952_v58  ;;  %v11954_v24 = vand.u32 4294901760, %v9952_v8  ;;  %v11977_v58 = vld [vmem:[#allocation76_spill] sm:$0xff] }
 0x240   : > { %4378 = vmatmul.mubr.f32.gmra.mxu1 %v11943_v43  ;;  %4131 = vmatmul.mubr.f32.gmra.mxu0 %v11927_v0  ;;  %v5562_v21 = vpop.f32.mrf.mxu0  ;;  %v11956_v23 = vand.u32 4294901760, %v11824_v18  ;;  %v11958_v45 = vand.u32 4294901760, %v9990_v16  ;;  %v11959_v18 = vand.u32 4294901760, %v10010_v27 }
 0x241   : > { %4384 = vmatprep.mubr.f32.mxu1 %v11944_v22  ;;  %4136 = vmatprep.mubr.f32.mxu0 %v9789_v34  ;;  %v2623_v0 = vadd.f32 %v5561_v37, %v9984_v14  ;;  %v5649_v34 = vpop.f32.mrf.mxu1  ;;  %v11964_v37 = vld [vmem:[#allocation80_spill] sm:$0xff] }
 0x242   : > { %6160 = vmatprep.subr.mxu0 %v11946_v60  ;;  %6241 = vmatpush3.msra.mxu1 %v8978_v59  ;;  %v5563_v63 = vpop.f32.mrf.mxu0  ;;  %v5650_v10 = vadd.f32 %v5649_v34, %v5648_v57  ;;  %v11965_v57 = vand.u32 4294901760, %v11964_v37  ;;  %v11967_v60 = vand.u32 4294901760, %v11966_v15  ;;  %v11972_v34 = vld [vmem:[#allocation81_spill] sm:$0xff] }
 0x243   : > { %6161 = vmatpush3.msra.mxu0 %v11948_v19  ;;  %6242 = vmatprep.subr.mxu1 %v9021_v44  ;;  %v5564_v59 = vadd.f32 %v5563_v63, %v5562_v21  ;;  %v10261_v14 = vadd.f32 %v5641_v4, %v2623_v0  ;;  %v5651_v36 = vpop.f32.mrf.mxu1  ;;  %v11971_v0 = vld [vmem:[#allocation77_spill] sm:$0xff] }
 0x244   : > { %4387 = vmatmul.mubr.f32.gmra.mxu1 %v11949_v42  ;;  %4138 = vmatmul.mubr.f32.gmra.mxu0 %v9799_v11  ;;  %v5565_v44 = vpop.f32.mrf.mxu0 }
 0x245   : > { %4393 = vmatprep.mubr.f32.mxu1 %v11950_v46  ;;  %4143 = vmatprep.mubr.f32.mxu0 %v9839_v31  ;;  %v2630_v11 = vadd.f32 %v5564_v59, %v10018_v7  ;;  %v5652_v31 = vpop.f32.mrf.mxu1  ;;  %v11973_v46 = vld [vmem:[#allocation83_spill] sm:$0xff]  ;;  %v11974_v59 = vld [vmem:[#allocation82_spill] sm:$0xff] }
 0x246   : > { %6162 = vmatprep.subr.mxu0 %v11951_v32  ;;  %6243 = vmatpush3.msra.mxu1 %v9037_v55  ;;  %v5566_v4 = vpop.f32.mrf.mxu0  ;;  %v5653_v48 = vadd.f32 %v5652_v31, %v5651_v36  ;;  %v11975_v36 = vand.u32 4294901760, %v11974_v59 }
 0x247   : > { %6163 = vmatpush3.msra.mxu0 %v11953_v12  ;;  %6244 = vmatprep.subr.mxu1 %v9059_v33  ;;  %v5567_v55 = vadd.f32 %v5566_v4, %v5565_v44  ;;  %v10276_v7 = vadd.f32 %v5644_v28, %v2630_v11  ;;  %v5654_v54 = vpop.f32.mrf.mxu1  ;;  %v11976_v44 = vld [vmem:[#allocation32_spill] sm:$0xff]  ;;  %v11996_v12 = vld [vmem:[#allocation55_spill] sm:$0xff] }
 0x248   : > { %4396 = vmatmul.mubr.f32.gmra.mxu1 %v11954_v24  ;;  %4145 = vmatmul.mubr.f32.gmra.mxu0 %v9874_v1  ;;  %v5568_v33 = vpop.f32.mrf.mxu0 }
 0x249   : > { %4402 = vmatprep.mubr.f32.mxu1 %v11955_v13  ;;  %4150 = vmatprep.mubr.f32.mxu0 %v9882_v39  ;;  %v2637_v1 = vadd.f32 %v5567_v55, %v10046_v41  ;;  %v5655_v39 = vpop.f32.mrf.mxu1  ;;  %v11981_v55 = vld [vmem:[#allocation85_spill] sm:$0xff] }
 0x24a   : > { %6164 = vmatprep.subr.mxu0 %v11956_v23  ;;  %6245 = vmatpush3.msra.mxu1 %v9100_v50  ;;  %v5569_v28 = vpop.f32.mrf.mxu0  ;;  %v5656_v25 = vadd.f32 %v5655_v39, %v5654_v54  ;;  %v11982_v54 = vand.u32 4294901760, %v11981_v55 }
 0x24b   : > { %6165 = vmatpush3.msra.mxu0 %v11957_v2  ;;  %6246 = vmatprep.subr.mxu1 %v9109_v3  ;;  %v5570_v50 = vadd.f32 %v5569_v28, %v5568_v33  ;;  %v10291_v41 = vadd.f32 %v5647_v5, %v2637_v1  ;;  %v5657_v35 = vpop.f32.mrf.mxu1  ;;  %v11960_v3 = vld [vmem:[#allocation74_spill] sm:$0xff]  ;;  %v11968_v5 = vld [vmem:[#allocation79_spill] sm:$0xff] }
 0x24c   : > { %4405 = vmatmul.mubr.f32.gmra.mxu1 %v11958_v45  ;;  %4152 = vmatmul.mubr.f32.gmra.mxu0 %v9895_v29  ;;  %v11961_v43 = vand.u32 4294901760, %v11960_v3  ;;  %v11963_v29 = vld [vmem:[#allocation75_spill] sm:$0xff]  ;;  %v5571_v22 = vpop.f32.mrf.mxu0  ;;  %v11983_v1 = vld [vmem:[#allocation86_spill] sm:$0xff] }
 0x24d   : > { %4411 = vmatprep.mubr.f32.mxu1 %v11959_v18  ;;  %4157 = vmatprep.mubr.f32.mxu0 %v9911_v20  ;;  %v2644_v51 = vadd.f32 %v5570_v50, %v11962_v52  ;;  %v5658_v20 = vpop.f32.mrf.mxu1  ;;  %v11984_v2 = vand.u32 4294901760, %v11983_v1  ;;  %v11985_v45 = vld [vmem:[#allocation31_spill] sm:$0xff] }
 0x24e   : > { %6247 = vmatpush3.msra.mxu1 %v9161_v9  ;;  %6166 = vmatprep.subr.mxu0 %v11961_v43  ;;  %v11969_v9 = vmov 1.0   ;;  %v5659_v17 = vadd.f32 %v5658_v20, %v5657_v35  ;;  %v5572_v19 = vpop.f32.mrf.mxu0  ;;  %v11989_v20 = vld [vmem:[#allocation50_spill] sm:$0xff] }
 0x24f   : > { %6248 = vmatprep.subr.mxu1 %v11963_v29  ;;  %6167 = vmatpush3.msra.mxu0 %v11965_v57  ;;  %v10308_v42 = vadd.f32 %v5650_v10, %v2644_v51  ;;  %v5573_v63 = vadd.f32 %v5572_v19, %v5571_v22  ;;  %v11987_v51 = vld [vmem:[#allocation49_spill] sm:$0xff] }
 0x250   : > { %4414 = vmatmul.mubr.f32.gmra.mxu1 %v11967_v60  ;;  %4159 = vmatmul.mubr.f32.gmra.mxu0 %v9952_v8  ;;  %v5772_v8 = vpop.f32.mrf.mxu1  ;;  %v5574_v32 = vpop.f32.mrf.mxu0 }
 0x251   : > { %6249 = vmatpush3.msra.mxu1 %v11968_v5  ;;  %5158 = vmatprep.mubr.msk.f32.mxu1 %vm309_vm8, %v11969_v9  ;;  %v2651_v11 = vadd.f32 %v5573_v63, %v11976_v44 }
 0x252   : > { %4164 = vmatprep.mubr.f32.mxu0 %v9973_v56  ;;  %6250 = vmatprep.subr.mxu1 %v11972_v34  ;;  %v11978_v56 = vld [vmem:[#allocation84_spill] sm:$0xff]  ;;  %v5773_v24 = vpop.f32.mrf.mxu1  ;;  %v5575_v31 = vpop.f32.mrf.mxu0 }
 0x253   : > { %6251 = vmatpush3.msra.mxu1 %v11973_v46  ;;  %6168 = vmatprep.subr.mxu0 %v11975_v36  ;;  %v11979_v10 = vand.u32 4294901760, %v11978_v56  ;;  %v5774_v4 = vadd.f32 %v5773_v24, %v5772_v8  ;;  %v5576_v13 = vadd.f32 %v5575_v31, %v5574_v32  ;;  %v10330_v23 = vadd.f32 %v5653_v48, %v2651_v11  ;;  %v11992_v8 = vld [vmem:[#allocation53_spill] sm:$0xff] }
 0x254   : > { %5159 = vmatmul.mubr.msk.f32.vlgmr.msra.gmra.mxu1 %vm308_vm12, %v11969_v9  ;;  %4166 = vmatmul.mubr.f32.gmra.mxu0 %v9990_v16  ;;  %v5775_v16 = vpop.f32.mrf.mxu1 }
 0x255   : > { %6169 = vmatpush3.msra.mxu0 %v11979_v10  ;;  %5160 = vmatprep.mubr.msk.f32.mxu1 %vm313_vm5, %v11969_v9  ;;  %v5577_v33 = vpop.f32.mrf.mxu0  ;;  %v2658_v39 = vadd.f32 %v5576_v13, %v11985_v45 }
 0x256   : > { %4171 = vmatprep.mubr.f32.mxu0 %v10010_v27  ;;  %6170 = vmatprep.subr.mxu0 %v11982_v54  ;;  %v5776_v48 = vpop.f32.mrf.mxu1 }
 0x257   : > { %6171 = vmatpush3.msra.mxu0 %v11984_v2  ;;  %v5578_v28 = vpop.f32.mrf.mxu0  ;;  %v5777_v18 = vadd.f32 %v5776_v48, %v5775_v16  ;;  %v10348_v35 = vadd.f32 %v5656_v25, %v2658_v39 }
 0x258   : > { %5161 = vmatmul.mubr.msk.f32.gmra.mxu1 %vm312_vm9, %v11969_v9  ;;  %4173 = vmatmul.mubr.f32.gmra.mxu0 %v11966_v15  ;;  %v5579_v50 = vadd.f32 %v5578_v28, %v5577_v33  ;;  %v5778_v3 = vpop.f32.mrf.mxu1  ;;  %v12000_v33 = vld [vmem:[#allocation59_spill] sm:$0xff] }
 0x259   : > { %5162 = vmatprep.mubr.msk.f32.mxu1 %vm317_vm10, %v11969_v9  ;;  %5126 = vmatprep.mubr.msk.f32.mxu0 %vm309_vm8, %v11969_v9  ;;  %v5692_v43 = vpop.f32.mrf.mxu0  ;;  %vm11990_vm8 = vcmp.eq.s32.totalorder %v11989_v20, %v11971_v0 }
 0x25a   : > { %v2665_v52 = vadd.f32 %v5579_v50, %v10111_v53  ;;  %v5779_v25 = vpop.f32.mrf.mxu1 }
 0x25b   : > { %v5693_v53 = vpop.f32.mrf.mxu0  ;;  %v5780_v29 = vadd.f32 %v5779_v25, %v5778_v3 }
 0x25c   : > { %5163 = vmatmul.mubr.msk.f32.gmra.mxu1 %vm316_vm13, %v11969_v9  ;;  %5127 = vmatmul.mubr.msk.f32.vlgmr.msra.gmra.mxu0 %vm308_vm12, %v11969_v9  ;;  %v5694_v22 = vadd.f32 %v5693_v53, %v5692_v43  ;;  %v10367_v37 = vadd.f32 %v5659_v17, %v2665_v52  ;;  %v5781_v57 = vpop.f32.mrf.mxu1  ;;  %vm11988_vm12 = vcmp.eq.s32.totalorder %v11987_v51, %v11977_v58 }
 0x25d   : > { %5164 = vmatprep.mubr.msk.f32.mxu1 %vm321_vm3, %v11969_v9  ;;  %5128 = vmatprep.mubr.msk.f32.mxu0 %vm313_vm5, %v11969_v9  ;;  %v5695_v15 = vpop.f32.mrf.mxu0  ;;  %vm11991_vm5 = vcmp.eq.s32.totalorder %v11989_v20, %v11977_v58 }
 0x25e   : > { %v3072_v60 = vadd.f32 %v5694_v22, %v10126_v61  ;;  %v5782_v5 = vpop.f32.mrf.mxu1 }
 0x25f   : > { %v5696_v61 = vpop.f32.mrf.mxu0  ;;  %v5783_v21 = vadd.f32 %v5782_v5, %v5781_v57 }
 0x260   : > { %5165 = vmatmul.mubr.msk.f32.gmra.mxu1 %vm11988_vm12, %v11969_v9  ;;  %5129 = vmatmul.mubr.msk.f32.gmra.mxu0 %vm312_vm9, %v11969_v9  ;;  %v5697_v17 = vadd.f32 %v5696_v61, %v5695_v15  ;;  %v10386_v19 = vadd.f32 %v5774_v4, %v3072_v60  ;;  %v5784_v34 = vpop.f32.mrf.mxu1  ;;  %vm11993_vm9 = vcmp.eq.s32.totalorder %v11992_v8, %v11971_v0 }
 0x261   : > { %5166 = vmatprep.mubr.msk.f32.mxu1 %vm11990_vm8, %v11969_v9  ;;  %5130 = vmatprep.mubr.msk.f32.mxu0 %vm317_vm10, %v11969_v9  ;;  %v5698_v63 = vpop.f32.mrf.mxu0  ;;  %vm11994_vm10 = vcmp.eq.s32.totalorder %v11992_v8, %v11977_v58 }
 0x262   : > { %v3077_v46 = vadd.f32 %v5697_v17, %v10141_v49  ;;  %v5785_v59 = vpop.f32.mrf.mxu1 }
 0x263   : > { %v5699_v49 = vpop.f32.mrf.mxu0  ;;  %v5786_v36 = vadd.f32 %v5785_v59, %v5784_v34 }
 0x264   : > { %5167 = vmatmul.mubr.msk.f32.gmra.mxu1 %vm11991_vm5, %v11969_v9  ;;  %5131 = vmatmul.mubr.msk.f32.gmra.mxu0 %vm316_vm13, %v11969_v9  ;;  %v5700_v32 = vadd.f32 %v5699_v49, %v5698_v63  ;;  %v10405_v44 = vadd.f32 %v5777_v18, %v3077_v46  ;;  %v5787_v11 = vpop.f32.mrf.mxu1  ;;  %vm11995_vm13 = vmmov %vm11988_vm12  ;;  %v12005_v18 = vld [vmem:[#allocation61_spill] sm:$0xff] }
 0x265   : > { %5168 = vmatprep.mubr.msk.f32.mxu1 %vm11993_vm9, %v11969_v9  ;;  %5132 = vmatprep.mubr.msk.f32.mxu0 %vm321_vm3, %v11969_v9  ;;  %v5701_v56 = vpop.f32.mrf.mxu0  ;;  %vm11997_vm3 = vcmp.eq.s32.totalorder %v11996_v12, %v11971_v0  ;;  %vm11998_vm12 = vmmov %vm11990_vm8  ;;  %vm11999_vm8 = vcmp.eq.s32.totalorder %v11996_v12, %v11977_v58  ;;  %vm12001_vm9 = vcmp.eq.s32.totalorder %v12000_v33, %v11971_v0 }
 0x266   : > { %v3082_v10 = vadd.f32 %v5700_v32, %v10156_v47  ;;  %v5788_v24 = vpop.f32.mrf.mxu1 }
 0x267   : > { %v5702_v47 = vpop.f32.mrf.mxu0  ;;  %v5789_v31 = vadd.f32 %v5788_v24, %v5787_v11 }
 0x268   : > { %5169 = vmatmul.mubr.msk.f32.gmra.mxu1 %vm11994_vm10, %v11969_v9  ;;  %5133 = vmatmul.mubr.msk.f32.gmra.mxu0 %vm11995_vm13, %v11969_v9  ;;  %v5703_v4 = vadd.f32 %v5702_v47, %v5701_v56  ;;  %v10424_v13 = vadd.f32 %v5780_v29, %v3082_v10  ;;  %v5790_v55 = vpop.f32.mrf.mxu1  ;;  %vm12002_vm10 = vcmp.eq.s32.totalorder %v11992_v8, %v11971_v0  ;;  %v12010_v29 = vld [vmem:[#allocation63_spill] sm:$0xff] }
 0x269   : > { %5170 = vmatprep.mubr.msk.f32.mxu1 %vm11997_vm3, %v11969_v9  ;;  %5134 = vmatprep.mubr.msk.f32.mxu0 %vm11998_vm12, %v11969_v9  ;;  %v5704_v54 = vpop.f32.mrf.mxu0  ;;  %vm12003_vm13 = vcmp.eq.s32.totalorder %v12000_v33, %v11977_v58  ;;  %vm12004_vm3 = vcmp.eq.s32.totalorder %v11992_v8, %v11977_v58  ;;  %vm12006_vm12 = vcmp.eq.s32.totalorder %v12005_v18, %v11971_v0 }
 0x26a   : > { %v3087_v16 = vadd.f32 %v5703_v4, %v10171_v40  ;;  %v5791_v1 = vpop.f32.mrf.mxu1 }
 0x26b   : > { %v5705_v40 = vpop.f32.mrf.mxu0  ;;  %v5792_v2 = vadd.f32 %v5791_v1, %v5790_v55 }
 0x26c   : > { %5171 = vmatmul.mubr.msk.f32.gmra.mxu1 %vm11999_vm8, %v11969_v9  ;;  %5135 = vmatmul.mubr.msk.f32.gmra.mxu0 %vm11991_vm5, %v11969_v9  ;;  %v5706_v45 = vadd.f32 %v5705_v40, %v5704_v54  ;;  %v10443_v39 = vadd.f32 %v5783_v21, %v3087_v16  ;;  %vm12007_vm8 = vcmp.eq.s32.totalorder %v11996_v12, %v11971_v0  ;;  %v12014_v21 = vld [vmem:[#allocation14_spill] sm:$0xff] }
 0x26d   : > { %5172 = vmatprep.mubr.msk.f32.mxu1 %vm12001_vm9, %v11969_v9  ;;  %5136 = vmatprep.mubr.msk.f32.mxu0 %vm12002_vm10, %v11969_v9  ;;  %v5793_v27 = vpop.f32.mrf.mxu1  ;;  %v5707_v48 = vpop.f32.mrf.mxu0  ;;  %vm12008_vm5 = vcmp.eq.s32.totalorder %v12005_v18, %v11977_v58  ;;  %vm12009_vm9 = vcmp.eq.s32.totalorder %v11996_v12, %v11977_v58  ;;  %vm12011_vm10 = vcmp.eq.s32.totalorder %v12010_v29, %v11971_v0 }
 0x26e   : > { %v3092_v28 = vadd.f32 %v5706_v45, %v10186_v26 }
 0x26f   : > { %v5794_v50 = vpop.f32.mrf.mxu1  ;;  %v5708_v26 = vpop.f32.mrf.mxu0 }
 0x270   : > { %5173 = vmatmul.mubr.msk.f32.gmra.mxu1 %vm12003_vm13, %v11969_v9  ;;  %5137 = vmatmul.mubr.msk.f32.gmra.mxu0 %vm12004_vm3, %v11969_v9  ;;  %v5795_v3 = vadd.f32 %v5794_v50, %v5793_v27  ;;  %v5709_v43 = vadd.f32 %v5708_v26, %v5707_v48  ;;  %v10462_v52 = vadd.f32 %v5786_v36, %v3092_v28  ;;  %v12019_v36 = vld [vmem:[#allocation65_spill] sm:$0xff] }
 0x271   : > { %5174 = vmatprep.mubr.msk.f32.mxu1 %vm12006_vm12, %v11969_v9  ;;  %5138 = vmatprep.mubr.msk.f32.mxu0 %vm12007_vm8, %v11969_v9  ;;  %v5796_v51 = vpop.f32.mrf.mxu1  ;;  %v5710_v25 = vpop.f32.mrf.mxu0  ;;  %vm12012_vm13 = vcmp.eq.s32.totalorder %v12000_v33, %v11971_v0  ;;  %vm12013_vm3 = vcmp.eq.s32.totalorder %v12000_v33, %v11977_v58  ;;  %vm12015_vm12 = vcmp.eq.s32.totalorder %v12014_v21, %v11971_v0 }
 0x272   : > { %v3097_v53 = vadd.f32 %v5709_v43, %v10201_v62  ;;  %vm12016_vm8 = vcmp.eq.s32.totalorder %v12005_v18, %v11971_v0 }
 0x273   : > { %v5797_v22 = vpop.f32.mrf.mxu1  ;;  %v5711_v62 = vpop.f32.mrf.mxu0 }
 0x274   : > { %5175 = vmatmul.mubr.msk.f32.gmra.mxu1 %vm12008_vm5, %v11969_v9  ;;  %5139 = vmatmul.mubr.msk.f32.gmra.mxu0 %vm12009_vm9, %v11969_v9  ;;  %v5798_v57 = vadd.f32 %v5797_v22, %v5796_v51  ;;  %v5712_v15 = vadd.f32 %v5711_v62, %v5710_v25  ;;  %v10481_v60 = vadd.f32 %v5789_v31, %v3097_v53  ;;  %v12022_v31 = vld [vmem:[#allocation66_spill] sm:$0xff] }
 0x275   : > { %5176 = vmatprep.mubr.msk.f32.mxu1 %vm12011_vm10, %v11969_v9  ;;  %5140 = vmatprep.mubr.msk.f32.mxu0 %vm12012_vm13, %v11969_v9  ;;  %v5799_v20 = vpop.f32.mrf.mxu1  ;;  %v5713_v5 = vpop.f32.mrf.mxu0  ;;  %vm12017_vm5 = vcmp.eq.s32.totalorder %v12014_v21, %v11977_v58  ;;  %vm12018_vm9 = vcmp.eq.s32.totalorder %v12005_v18, %v11977_v58  ;;  %vm12020_vm10 = vcmp.eq.s32.totalorder %v12019_v36, %v11971_v0 }
 0x276   : > { %v3102_v61 = vadd.f32 %v5712_v15, %v10216_v38  ;;  %vm12021_vm13 = vcmp.eq.s32.totalorder %v12010_v29, %v11971_v0 }
 0x277   : > { %v5800_v17 = vpop.f32.mrf.mxu1  ;;  %v5714_v38 = vpop.f32.mrf.mxu0 }
 0x278   : > { %5177 = vmatmul.mubr.msk.f32.gmra.mxu1 %vm344_vm1, %v11969_v9  ;;  %5141 = vmatmul.mubr.msk.f32.gmra.mxu0 %vm12013_vm3, %v11969_v9  ;;  %v5801_v34 = vadd.f32 %v5800_v17, %v5799_v20  ;;  %v5715_v63 = vadd.f32 %v5714_v38, %v5713_v5  ;;  %v10500_v46 = vadd.f32 %v5792_v2, %v3102_v61 }
 0x279   : > { %5178 = vmatprep.mubr.msk.f32.mxu1 %vm12015_vm12, %v11969_v9  ;;  %5142 = vmatprep.mubr.msk.f32.mxu0 %vm12016_vm8, %v11969_v9  ;;  %v5802_v8 = vpop.f32.mrf.mxu1  ;;  %v5716_v59 = vpop.f32.mrf.mxu0  ;;  %vm12023_vm3 = vcmp.eq.s32.totalorder %v12022_v31, %v11971_v0  ;;  %vm12026_vm8 = vmmov %vm12020_vm10 }
 0x27a   : > { %v3107_v49 = vadd.f32 %v5715_v63, %v10231_v6 }
 0x27b   : > { %v5803_v32 = vpop.f32.mrf.mxu1  ;;  %v5717_v6 = vpop.f32.mrf.mxu0 }
 0x27c   : > { %5179 = vmatmul.mubr.msk.f32.gmra.mxu1 %vm12017_vm5, %v11969_v9  ;;  %5143 = vmatmul.mubr.msk.f32.gmra.mxu0 %vm12018_vm9, %v11969_v9  ;;  %v5804_v11 = vadd.f32 %v5803_v32, %v5802_v8  ;;  %v5718_v56 = vadd.f32 %v5717_v6, %v5716_v59  ;;  %v10519_v10 = vadd.f32 %v5795_v3, %v3107_v49 }
 0x27d   : > { %5180 = vmatprep.mubr.msk.f32.mxu1 %vm12020_vm10, %v11969_v9  ;;  %5144 = vmatprep.mubr.msk.f32.mxu0 %vm12021_vm13, %v11969_v9  ;;  %v5719_v24 = vpop.f32.mrf.mxu0 }
 0x27e   : > { %v5805_v12 = vpop.f32.mrf.mxu1  ;;  %v3112_v47 = vadd.f32 %v5718_v56, %v10246_v30 }
 0x27f   : > { %v5720_v30 = vpop.f32.mrf.mxu0 }
 0x280   : > { %5181 = vmatmul.mubr.msk.f32.gmra.mxu1 %vm352_vm15, %v11969_v9  ;;  %5145 = vmatmul.mubr.msk.f32.gmra.mxu0 %vm344_vm1, %v11969_v9  ;;  %v5806_v4 = vpop.f32.mrf.mxu1  ;;  %v5721_v54 = vadd.f32 %v5720_v30, %v5719_v24  ;;  %v10538_v16 = vadd.f32 %v5798_v57, %v3112_v47  ;;  %vm12024_vm1 = vmmov %vm12017_vm5 }
 0x281   : > { %5182 = vmatprep.mubr.msk.f32.mxu1 %vm12023_vm3, %v11969_v9  ;;  %5146 = vmatprep.mubr.msk.f32.mxu0 %vm12015_vm12, %v11969_v9  ;;  %v5807_v55 = vadd.f32 %v5806_v4, %v5805_v12  ;;  %v5722_v1 = vpop.f32.mrf.mxu0  ;;  %vm12028_vm5 = vmmov %vm12023_vm3 }
 0x282   : > { %v5808_v33 = vpop.f32.mrf.mxu1  ;;  %v3117_v40 = vadd.f32 %v5721_v54, %v10261_v14 }
 0x283   : > { %v5723_v14 = vpop.f32.mrf.mxu0 }
 0x284   : > { %5183 = vmatmul.mubr.msk.f32.gmra.mxu1 %vm356_vm0, %v11969_v9  ;;  %5147 = vmatmul.mubr.msk.f32.gmra.mxu0 %vm12024_vm1, %v11969_v9  ;;  %v5809_v45 = vpop.f32.mrf.mxu1  ;;  %v5724_v48 = vadd.f32 %v5723_v14, %v5722_v1  ;;  %v10557_v28 = vadd.f32 %v5801_v34, %v3117_v40 }
 0x285   : > { %5184 = vmatprep.mubr.msk.f32.mxu1 %vm361_vm4, %v11969_v9  ;;  %5148 = vmatprep.mubr.msk.f32.mxu0 %vm12026_vm8, %v11969_v9  ;;  %v5810_v27 = vadd.f32 %v5809_v45, %v5808_v33  ;;  %v5725_v50 = vpop.f32.mrf.mxu0 }
 0x286   : > { %v5811_v18 = vpop.f32.mrf.mxu1  ;;  %v3122_v26 = vadd.f32 %v5724_v48, %v10276_v7 }
 0x287   : > { %v5726_v7 = vpop.f32.mrf.mxu0 }
 0x288   : > { %5185 = vmatmul.mubr.msk.f32.gmra.mxu1 %vm360_vm14, %v11969_v9  ;;  %5149 = vmatmul.mubr.msk.f32.gmra.mxu0 %vm352_vm15, %v11969_v9  ;;  %v5812_v43 = vpop.f32.mrf.mxu1  ;;  %v5727_v25 = vadd.f32 %v5726_v7, %v5725_v50  ;;  %v10576_v53 = vadd.f32 %v5804_v11, %v3122_v26 }
 0x289   : > { %5186 = vmatprep.mubr.msk.f32.mxu1 %vm365_vm2, %v11969_v9  ;;  %5150 = vmatprep.mubr.msk.f32.mxu0 %vm12028_vm5, %v11969_v9  ;;  %v5813_v51 = vadd.f32 %v5812_v43, %v5811_v18  ;;  %v5728_v22 = vpop.f32.mrf.mxu0 }
 0x28a   : > { %v5814_v29 = vpop.f32.mrf.mxu1  ;;  %v3127_v62 = vadd.f32 %v5727_v25, %v10291_v41 }
 0x28b   : > { %v5729_v41 = vpop.f32.mrf.mxu0 }
 0x28c   : > { %5187 = vmatmul.mubr.msk.f32.gmra.mxu1 %vm364_vm7, %v11969_v9  ;;  %5151 = vmatmul.mubr.msk.f32.gmra.mxu0 %vm356_vm0, %v11969_v9  ;;  %v5815_v15 = vpop.f32.mrf.mxu1  ;;  %v5730_v5 = vadd.f32 %v5729_v41, %v5728_v22  ;;  %v10595_v61 = vadd.f32 %v5807_v55, %v3127_v62 }
 0x28d   : > { %5188 = vmatprep.mubr.msk.f32.mxu1 %vm369_vm11, %v11969_v9  ;;  %5152 = vmatprep.mubr.msk.f32.mxu0 %vm361_vm4, %v11969_v9  ;;  %v5816_v20 = vadd.f32 %v5815_v15, %v5814_v29 }
 0x28e   : > { %v5817_v21 = vpop.f32.mrf.mxu1  ;;  %v5731_v17 = vpop.f32.mrf.mxu0  ;;  %v3132_v38 = vadd.f32 %v5730_v5, %v10308_v42 }
 0x290   : > { %5189 = vmatmul.mubr.msk.f32.gmra.mxu1 %vm368_vm6, %v11969_v9  ;;  %5153 = vmatmul.mubr.msk.f32.gmra.mxu0 %vm360_vm14, %v11969_v9  ;;  %v5818_v34 = vpop.f32.mrf.mxu1  ;;  %v5732_v63 = vpop.f32.mrf.mxu0  ;;  %v10610_v42 = vadd.f32 %v5810_v27, %v3132_v38 }
 0x291   : > { %5154 = vmatprep.mubr.msk.f32.mxu0 %vm365_vm2, %v11969_v9  ;;  %v5819_v8 = vadd.f32 %v5818_v34, %v5817_v21  ;;  %v5733_v59 = vadd.f32 %v5732_v63, %v5731_v17 }
 0x292   : > { %v5932_v49 = vpop.f32.mrf.mxu1  ;;  %v5734_v36 = vpop.f32.mrf.mxu0 }
 0x293   : > { %v3137_v32 = vadd.f32 %v5733_v59, %v10330_v23 }
 0x294   : > { %5155 = vmatmul.mubr.msk.f32.gmra.mxu0 %vm364_vm7, %v11969_v9  ;;  %v5933_v6 = vpop.f32.mrf.mxu1  ;;  %v5735_v11 = vpop.f32.mrf.mxu0 }
 0x295   : > { %5156 = vmatprep.mubr.msk.f32.mxu0 %vm369_vm11, %v11969_v9  ;;  %v5934_v56 = vadd.f32 %v5933_v6, %v5932_v49  ;;  %v5736_v12 = vadd.f32 %v5735_v11, %v5734_v36  ;;  %v10621_v24 = vadd.f32 %v5813_v51, %v3137_v32 }
 0x296   : > { %v5935_v47 = vpop.f32.mrf.mxu1  ;;  %v5737_v31 = vpop.f32.mrf.mxu0 }
 0x297   : > { %v3142_v23 = vadd.f32 %v5736_v12, %v10348_v35 }
 0x298   : > { %5157 = vmatmul.mubr.msk.f32.gmra.mxu0 %vm368_vm6, %v11969_v9  ;;  %v5936_v4 = vpop.f32.mrf.mxu1  ;;  %v5738_v30 = vpop.f32.mrf.mxu0 }
 0x299   : > { %v5937_v55 = vadd.f32 %v5936_v4, %v5935_v47  ;;  %v5739_v54 = vadd.f32 %v5738_v30, %v5737_v31  ;;  %v10628_v0 = vadd.f32 %v5816_v20, %v3142_v23 }
 0x29a   : > { %v5938_v33 = vpop.f32.mrf.mxu1  ;;  %v5852_v1 = vpop.f32.mrf.mxu0 }
 0x29b   : > { %v3147_v40 = vadd.f32 %v5739_v54, %v10367_v37 }
 0x29c   : > { %v5939_v2 = vpop.f32.mrf.mxu1  ;;  %v5853_v45 = vpop.f32.mrf.mxu0 }
 0x29d   : > { %v5940_v14 = vadd.f32 %v5939_v2, %v5938_v33  ;;  %v5854_v27 = vadd.f32 %v5853_v45, %v5852_v1  ;;  %v10631_v35 = vadd.f32 %v5819_v8, %v3147_v40 }
 0x29e   : > { %v5941_v48 = vpop.f32.mrf.mxu1  ;;  %v5855_v18 = vpop.f32.mrf.mxu0 }
 0x29f   : > { %v3434_v9 = vadd.f32 %v5854_v27, %v10386_v19 }
 0x2a0   : > { %v5942_v58 = vpop.f32.mrf.mxu1  ;;  %v5856_v50 = vpop.f32.mrf.mxu0 }
 0x2a1   : > { %v5943_v26 = vadd.f32 %v5942_v58, %v5941_v48  ;;  %v5857_v3 = vadd.f32 %v5856_v50, %v5855_v18  ;;  %v10634_v43 = vadd.f32 %v5934_v56, %v3434_v9 }
 0x2a2   : > { %v5944_v7 = vpop.f32.mrf.mxu1  ;;  %v5858_v51 = vpop.f32.mrf.mxu0 }
 0x2a3   : > { %v3447_v37 = vadd.f32 %v5857_v3, %v10405_v44 }
 0x2a4   : > { %v5945_v25 = vpop.f32.mrf.mxu1  ;;  %v5859_v29 = vpop.f32.mrf.mxu0 }
 0x2a5   : > { %v5946_v22 = vadd.f32 %v5945_v25, %v5944_v7  ;;  %v5860_v62 = vadd.f32 %v5859_v29, %v5858_v51  ;;  %v10637_v57 = vadd.f32 %v5937_v55, %v3447_v37 }
 0x2a6   : > { %v5947_v15 = vpop.f32.mrf.mxu1  ;;  %v5861_v41 = vpop.f32.mrf.mxu0 }
 0x2a7   : > { %v3460_v19 = vadd.f32 %v5860_v62, %v10424_v13 }
 0x2a8   : > { %v5948_v20 = vpop.f32.mrf.mxu1  ;;  %v5862_v5 = vpop.f32.mrf.mxu0 }
 0x2a9   : > { %v5949_v21 = vadd.f32 %v5948_v20, %v5947_v15  ;;  %v5863_v17 = vadd.f32 %v5862_v5, %v5861_v41  ;;  %v10640_v38 = vadd.f32 %v5940_v14, %v3460_v19 }
 0x2aa   : > { %v5950_v34 = vpop.f32.mrf.mxu1  ;;  %v5864_v63 = vpop.f32.mrf.mxu0 }
 0x2ab   : > { %v3473_v44 = vadd.f32 %v5863_v17, %v10443_v39 }
 0x2ac   : > { %v5951_v8 = vpop.f32.mrf.mxu1  ;;  %v5865_v59 = vpop.f32.mrf.mxu0 }
 0x2ad   : > { %v5952_v49 = vadd.f32 %v5951_v8, %v5950_v34  ;;  %v5866_v36 = vadd.f32 %v5865_v59, %v5864_v63  ;;  %v10643_v32 = vadd.f32 %v5943_v26, %v3473_v44 }
 0x2ae   : > { %v5953_v6 = vpop.f32.mrf.mxu1  ;;  %v5867_v11 = vpop.f32.mrf.mxu0 }
 0x2af   : > { %v3486_v13 = vadd.f32 %v5866_v36, %v10462_v52 }
 0x2b0   : > { %v5954_v56 = vpop.f32.mrf.mxu1  ;;  %v5868_v12 = vpop.f32.mrf.mxu0 }
 0x2b1   : > { %v5955_v47 = vadd.f32 %v5954_v56, %v5953_v6  ;;  %v5869_v31 = vadd.f32 %v5868_v12, %v5867_v11  ;;  %v10646_v23 = vadd.f32 %v5946_v22, %v3486_v13 }
 0x2b2   : > { %v5870_v30 = vpop.f32.mrf.mxu0 }
 0x2b3   : > { %v5956_v4 = vpop.f32.mrf.mxu1  ;;  %v3499_v39 = vadd.f32 %v5869_v31, %v10481_v60 }
 0x2b4   : > { %v5871_v54 = vpop.f32.mrf.mxu0 }
 0x2b5   : > { %v5957_v55 = vpop.f32.mrf.mxu1  ;;  %v5872_v1 = vadd.f32 %v5871_v54, %v5870_v30  ;;  %v10649_v40 = vadd.f32 %v5949_v21, %v3499_v39 }
 0x2b6   : > { %v5958_v33 = vadd.f32 %v5957_v55, %v5956_v4  ;;  %v5873_v45 = vpop.f32.mrf.mxu0 }
 0x2b7   : > { %v5959_v2 = vpop.f32.mrf.mxu1  ;;  %v3512_v52 = vadd.f32 %v5872_v1, %v10500_v46 }
 0x2b8   : > { %v5874_v27 = vpop.f32.mrf.mxu0 }
 0x2b9   : > { %v5960_v14 = vpop.f32.mrf.mxu1  ;;  %v5875_v18 = vadd.f32 %v5874_v27, %v5873_v45  ;;  %v10652_v9 = vadd.f32 %v5952_v49, %v3512_v52 }
 0x2ba   : > { %v5961_v48 = vadd.f32 %v5960_v14, %v5959_v2  ;;  %v5876_v50 = vpop.f32.mrf.mxu0 }
 0x2bb   : > { %v5962_v58 = vpop.f32.mrf.mxu1  ;;  %v3525_v60 = vadd.f32 %v5875_v18, %v10519_v10 }
 0x2bc   : > { %v5877_v3 = vpop.f32.mrf.mxu0 }
 0x2bd   : > { %v5963_v26 = vpop.f32.mrf.mxu1  ;;  %v5878_v51 = vadd.f32 %v5877_v3, %v5876_v50  ;;  %v10655_v37 = vadd.f32 %v5955_v47, %v3525_v60 }
 0x2be   : > { %v5964_v7 = vadd.f32 %v5963_v26, %v5962_v58  ;;  %v5879_v29 = vpop.f32.mrf.mxu0 }
 0x2bf   : > { %v5965_v25 = vpop.f32.mrf.mxu1  ;;  %v3538_v46 = vadd.f32 %v5878_v51, %v10538_v16 }
 0x2c0   : > { %v5880_v62 = vpop.f32.mrf.mxu0 }
 0x2c1   : > { %v5966_v22 = vpop.f32.mrf.mxu1  ;;  %v5881_v41 = vadd.f32 %v5880_v62, %v5879_v29  ;;  %v10658_v19 = vadd.f32 %v5958_v33, %v3538_v46 }
 0x2c2   : > { %v5967_v15 = vadd.f32 %v5966_v22, %v5965_v25  ;;  %v5882_v5 = vpop.f32.mrf.mxu0 }
 0x2c3   : > { %v5968_v20 = vpop.f32.mrf.mxu1  ;;  %v3551_v10 = vadd.f32 %v5881_v41, %v10557_v28 }
 0x2c4   : > { %v5883_v17 = vpop.f32.mrf.mxu0 }
 0x2c5   : > { %v5969_v21 = vpop.f32.mrf.mxu1  ;;  %v5884_v63 = vadd.f32 %v5883_v17, %v5882_v5  ;;  %v10661_v44 = vadd.f32 %v5961_v48, %v3551_v10 }
 0x2c6   : > { %v5970_v34 = vadd.f32 %v5969_v21, %v5968_v20  ;;  %v5885_v59 = vpop.f32.mrf.mxu0 }
 0x2c7   : > { %12030 = vst [vmem:[#allocation46_spill] sm:$0xff] %v10661_v44  ;;  %v5971_v8 = vpop.f32.mrf.mxu1  ;;  %v3564_v16 = vadd.f32 %v5884_v63, %v10576_v53 }
 0x2c8   : > { %v5886_v36 = vpop.f32.mrf.mxu0 }
 0x2c9   : > { %v5972_v49 = vpop.f32.mrf.mxu1  ;;  %v5887_v11 = vadd.f32 %v5886_v36, %v5885_v59  ;;  %v10664_v13 = vadd.f32 %v5964_v7, %v3564_v16 }
 0x2ca   : > { %v5973_v6 = vadd.f32 %v5972_v49, %v5971_v8  ;;  %v5888_v12 = vpop.f32.mrf.mxu0 }
 0x2cb   : > { %12031 = vst [vmem:[#allocation70_spill] sm:$0xff] %v10664_v13  ;;  %v5974_v56 = vpop.f32.mrf.mxu1  ;;  %v3577_v28 = vadd.f32 %v5887_v11, %v10595_v61 }
 0x2cc   : > { %v5889_v31 = vpop.f32.mrf.mxu0 }
 0x2cd   : > { %v5975_v47 = vpop.f32.mrf.mxu1  ;;  %v5890_v30 = vadd.f32 %v5889_v31, %v5888_v12  ;;  %v10667_v39 = vadd.f32 %v5967_v15, %v3577_v28 }
 0x2ce   : > { %v5976_v4 = vadd.f32 %v5975_v47, %v5974_v56 }
 0x2cf   : > { %12032 = vst [vmem:[#allocation73_spill] sm:$0xff] %v10667_v39  ;;  %v5977_v55 = vpop.f32.mrf.mxu1  ;;  %v3590_v54 = vadd.f32 %v5890_v30, %v10610_v42  ;;  %v5891_v53 = vpop.f32.mrf.mxu0 }
 0x2d1   : > { %v5978_v33 = vpop.f32.mrf.mxu1  ;;  %v5892_v2 = vpop.f32.mrf.mxu0  ;;  %v10670_v45 = vadd.f32 %v5970_v34, %v3590_v54 }
 0x2d2   : > { %v5979_v1 = vadd.f32 %v5978_v33, %v5977_v55  ;;  %v5893_v52 = vadd.f32 %v5892_v2, %v5891_v53 }
 0x2d3   : > { %12033 = vst [vmem:[#allocation88_spill] sm:$0xff] %v10670_v45  ;;  %v10672_v14 = vpop.f32.mrf.mxu1 }
 0x2d4   : > { %v5894_v27 = vpop.f32.mrf.mxu0  ;;  %v3603_v61 = vadd.f32 %v5893_v52, %v10621_v24 }
 0x2d5   : > { %v10675_v48 = vpop.f32.mrf.mxu1 }
 0x2d6   : > { %v5895_v18 = vpop.f32.mrf.mxu0  ;;  %v10677_v50 = vadd.f32 %v5973_v6, %v3603_v61 }
 0x2d7   : > { %v5896_v58 = vadd.f32 %v5895_v18, %v5894_v27 }
 0x2d8   : > { %12034 = vst [vmem:[#allocation92_spill] sm:$0xff] %v10677_v50  ;;  %v10679_v60 = vpop.f32.mrf.mxu1  ;;  %v5897_v42 = vpop.f32.mrf.mxu0 }
 0x2d9   : > { %v3616_v26 = vadd.f32 %v5896_v58, %v10628_v0 }
 0x2da   : > { %v10682_v3 = vpop.f32.mrf.mxu1  ;;  %v5898_v7 = vpop.f32.mrf.mxu0 }
 0x2db   : > { %v5899_v51 = vadd.f32 %v5898_v7, %v5897_v42  ;;  %v10684_v25 = vadd.f32 %v5976_v4, %v3616_v26 }
 0x2dc   : > { %v10686_v29 = vpop.f32.mrf.mxu1  ;;  %v6012_v24 = vpop.f32.mrf.mxu0 }
 0x2dd   : > { %12035 = vst [vmem:[#allocation87_spill] sm:$0xff] %v10684_v25  ;;  %v3629_v46 = vadd.f32 %v5899_v51, %v10631_v35 }
 0x2de   : > { %v10689_v22 = vpop.f32.mrf.mxu1  ;;  %v6013_v62 = vpop.f32.mrf.mxu0 }
 0x2df   : > { %v10691_v15 = vadd.f32 %v5979_v1, %v3629_v46 }
 0x2e0   : > { %v10693_v41 = vpop.f32.mrf.mxu1  ;;  %v6015_v20 = vpop.f32.mrf.mxu0 }
 0x2e1   : > { %12036 = vst [vmem:[#allocation89_spill] sm:$0xff] %v10691_v15 }
 0x2e2   : > { %v10695_v0 = vpop.f32.mrf.mxu1  ;;  %v6016_v5 = vpop.f32.mrf.mxu0 }
 0x2e4   : > { %v10697_v10 = vpop.f32.mrf.mxu1  ;;  %v10699_v21 = vpop.f32.mrf.mxu0 }
 0x2e6   : > { %v10701_v17 = vpop.f32.mrf.mxu1  ;;  %v10703_v34 = vpop.f32.mrf.mxu0 }
 0x2e8   : > { %v10705_v35 = vpop.f32.mrf.mxu1  ;;  %v10707_v63 = vpop.f32.mrf.mxu0 }
 0x2ea   : > { %v10709_v8 = vpop.f32.mrf.mxu1  ;;  %v10711_v59 = vpop.f32.mrf.mxu0 }
 0x2ec   : > { %v10713_v16 = vpop.f32.mrf.mxu1  ;;  %v10715_v49 = vpop.f32.mrf.mxu0 }
 0x2ee   : > { %v10717_v36 = vpop.f32.mrf.mxu1  ;;  %v10719_v6 = vpop.f32.mrf.mxu0 }
 0x2f0   : > { %v10721_v11 = vpop.f32.mrf.mxu1  ;;  %v10723_v56 = vpop.f32.mrf.mxu0 }
 0x2f2   : > { %v10725_v12 = vpop.f32.mrf.mxu1  ;;  %v10727_v28 = vpop.f32.mrf.mxu0 }
 0x2f4   : > { %v10729_v47 = vpop.f32.mrf.mxu1  ;;  %v10731_v31 = vpop.f32.mrf.mxu0 }
 0x2f6   : > { %v10733_v4 = vpop.f32.mrf.mxu1  ;;  %v10735_v30 = vpop.f32.mrf.mxu0 }
 0x2f8   : > { %v10737_v55 = vpop.f32.mrf.mxu1  ;;  %v10739_v54 = vpop.f32.mrf.mxu0 }
 0x2f9   : > { %12037 = vst [vmem:[#allocation43_spill] sm:$0xff] %v10737_v55 }
 0x2fa   : > { %v10741_v53 = vpop.f32.mrf.mxu1  ;;  %v10743_v33 = vpop.f32.mrf.mxu0 }
 0x2fb   : > { %12038 = vst [vmem:[#allocation41_spill] sm:$0xff] %v10741_v53 }
 0x2fc   : > { %v10745_v1 = vpop.f32.mrf.mxu1  ;;  %v10747_v2 = vpop.f32.mrf.mxu0 }
 0x2fd   : > { %12039 = vst [vmem:[#allocation45_spill] sm:$0xff] %v10745_v1 }
 0x2fe   : > { %v10749_v52 = vpop.f32.mrf.mxu1  ;;  %v10751_v27 = vpop.f32.mrf.mxu0 }
 0x2ff   : > { %12040 = vst [vmem:[#allocation90_spill] sm:$0xff] %v10749_v52 }
 0x300   : > { %v10753_v61 = vpop.f32.mrf.mxu1  ;;  %v10755_v18 = vpop.f32.mrf.mxu0 }
 0x301   : > { %12041 = vst [vmem:[#allocation91_spill] sm:$0xff] %v10753_v61 }
 0x302   : > { %v10757_v58 = vpop.f32.mrf.mxu1  ;;  %v10759_v42 = vpop.f32.mrf.mxu0 }
 0x303   : > { %12042 = vst [vmem:[#allocation51_spill] sm:$0xff] %v10757_v58 }
 0x304   : > { %v10761_v26 = vpop.f32.mrf.mxu1  ;;  %v10763_v7 = vpop.f32.mrf.mxu0 }
 0x305   : > { %12043 = vst [vmem:[#allocation6_spill] sm:$0xff] %v10761_v26  ;;  %12044 = vst [vmem:[#allocation95_spill] sm:$0xff] %v10763_v7 }
 0x306   : > { %v10765_v51 = vpop.f32.mrf.mxu1  ;;  %v10767_v46 = vpop.f32.mrf.mxu0 }
 0x307   : > { %12045 = vst [vmem:[#allocation8_spill] sm:$0xff] %v10765_v51  ;;  %12046 = vst [vmem:[#allocation29_spill] sm:$0xff] %v10767_v46 }
 0x308   : > { %v10769_v15 = vpop.f32.mrf.mxu1  ;;  %v10771_v25 = vpop.f32.mrf.mxu0 }
 0x309   : > { %12047 = vst [vmem:[#allocation93_spill] sm:$0xff] %v10769_v15  ;;  %12048 = vst [vmem:[#allocation7_spill] sm:$0xff] %v10771_v25 }
 0x30a   : > { %v10773_v50 = vpop.f32.mrf.mxu1  ;;  %v10775_v45 = vpop.f32.mrf.mxu0 }
 0x30b   : > { %12049 = vst [vmem:[#allocation52_spill] sm:$0xff] %v10773_v50  ;;  %12050 = vst [vmem:[#allocation99_spill] sm:$0xff] %v10775_v45 }
 0x30c   : > { %v10777_v61 = vpop.f32.mrf.mxu1  ;;  %v10779_v58 = vpop.f32.mrf.mxu0 }
 0x30d   : > { %12051 = vst [vmem:[#allocation54_spill] sm:$0xff] %v10777_v61  ;;  %12052 = vst [vmem:[#allocation11_spill] sm:$0xff] %v10779_v58  ;;  %v6014_v58 = vadd.f32 %v6013_v62, %v6012_v24  ;;  %v6020_v24 = vadd.f32 %v10703_v34, %v10699_v21 }
 0x30e   : > { %v10781_v39 = vpop.f32.mrf.mxu1  ;;  %v10783_v26 = vpop.f32.mrf.mxu0 }
 0x30f   : > { %12053 = vst [vmem:[#allocation35_spill] sm:$0xff] %v10781_v39  ;;  %12054 = vst [vmem:[#allocation94_spill] sm:$0xff] %v10783_v26  ;;  %v6017_v26 = vadd.f32 %v6016_v5, %v6015_v20 }
 0x310   : > { %v10785_v52 = vpop.f32.mrf.mxu1  ;;  %v10787_v51 = vpop.f32.mrf.mxu0 }
 0x311   : > { %12055 = vst [vmem:[#allocation15_spill] sm:$0xff] %v10785_v52  ;;  %12056 = vst [vmem:[#allocation12_spill] sm:$0xff] %v10787_v51  ;;  %v4070_v51 = vadd.f32 %v6014_v58, %v10634_v43  ;;  %v6097_v43 = vadd.f32 %v10682_v3, %v10679_v60 }
 0x312   : > { %v10789_v15 = vpop.f32.mrf.mxu1  ;;  %v10791_v1 = vpop.f32.mrf.mxu0 }
 0x313   : > { %12057 = vst [vmem:[#allocation56_spill] sm:$0xff] %v10789_v15  ;;  %12058 = vst [vmem:[#allocation96_spill] sm:$0xff] %v10791_v1  ;;  %v4077_v1 = vadd.f32 %v6017_v26, %v10637_v57  ;;  %v4084_v57 = vadd.f32 %v6020_v24, %v10640_v38  ;;  %v6023_v26 = vadd.f32 %v10711_v59, %v10707_v63 }
 0x314   : > { %v6252_v50 = vpop.f32.mrf.mxu1  ;;  %v10793_v25 = vpop.f32.mrf.mxu0  ;;  %v6026_v38 = vadd.f32 %v10719_v6, %v10715_v49  ;;  %v6029_v6 = vadd.f32 %v10727_v28, %v10723_v56  ;;  %v6032_v56 = vadd.f32 %v10735_v30, %v10731_v31 }
 0x315   : > { %12059 = vst [vmem:[#allocation97_spill] sm:$0xff] %v10793_v25  ;;  %v6094_v25 = vadd.f32 %v10675_v48, %v10672_v14  ;;  %v4290_v14 = vadd.f32 %v6097_v43, %v4077_v1 }
 0x316   : > { %v6253_v45 = vpop.f32.mrf.mxu1  ;;  %v10795_v61 = vpop.f32.mrf.mxu0 }
 0x317   : > { %12060 = vst [vmem:[#allocation57_spill] sm:$0xff] %v10795_v61  ;;  %v4281_v62 = vadd.f32 %v6094_v25, %v4070_v51 }
 0x318   : > { %v6255_v39 = vpop.f32.mrf.mxu1  ;;  %v10797_v13 = vpop.f32.mrf.mxu0 }
 0x319   : > { %12061 = vst [vmem:[#allocation13_spill] sm:$0xff] %v10797_v13 }
 0x31a   : > { %v6256_v52 = vpop.f32.mrf.mxu1  ;;  %v10799_v53 = vpop.f32.mrf.mxu0 }
 0x31b   : > { %12062 = vst [vmem:[#allocation18_spill] sm:$0xff] %v10799_v53  ;;  %v6254_v53 = vadd.f32 %v6253_v45, %v6252_v50  ;;  %v6257_v60 = vadd.f32 %v6256_v52, %v6255_v39  ;;  %v6103_v39 = vadd.f32 %v10695_v0, %v10693_v41  ;;  %v4098_v52 = vadd.f32 %v6026_v38, %v10646_v23 }
 0x31c   : > { %v6258_v15 = vpop.f32.mrf.mxu1  ;;  %v6172_v55 = vpop.f32.mrf.mxu0 }
 0x31e   : > { %v6259_v61 = vpop.f32.mrf.mxu1  ;;  %v6173_v44 = vpop.f32.mrf.mxu0 }
 0x31f   : > { %v6174_v20 = vadd.f32 %v6173_v44, %v6172_v55  ;;  %v6100_v44 = vadd.f32 %v10689_v22, %v10686_v29  ;;  %v6260_v29 = vadd.f32 %v6259_v61, %v6258_v15 }
 0x320   : > { %v6261_v5 = vpop.f32.mrf.mxu1  ;;  %v6175_v58 = vpop.f32.mrf.mxu0 }
 0x321   : > { %v4582_v13 = vadd.f32 %v6174_v20, %v4281_v62  ;;  %v4299_v59 = vadd.f32 %v6100_v44, %v4084_v57  ;;  %v6106_v20 = vadd.f32 %v10701_v17, %v10697_v10  ;;  %v6109_v10 = vadd.f32 %v10709_v8, %v10705_v35 }
 0x322   : > { %v6262_v46 = vpop.f32.mrf.mxu1  ;;  %v6176_v48 = vpop.f32.mrf.mxu0 }
 0x323   : > { %v4759_v21 = vadd.f32 %v6254_v53, %v4582_v13  ;;  %v6177_v34 = vadd.f32 %v6176_v48, %v6175_v58  ;;  %v4091_v13 = vadd.f32 %v6023_v26, %v10643_v32  ;;  %v6263_v41 = vadd.f32 %v6262_v46, %v6261_v5 }
 0x324   : > { %v6264_v7 = vpop.f32.mrf.mxu1  ;;  %v6178_v25 = vpop.f32.mrf.mxu0  ;;  %v4317_v61 = vadd.f32 %v6106_v20, %v4098_v52  ;;  %v6035_v5 = vadd.f32 %v10743_v33, %v10739_v54  ;;  %v6038_v33 = vadd.f32 %v10751_v27, %v10747_v2  ;;  %v6041_v2 = vadd.f32 %v10759_v42, %v10755_v18 }
 0x325   : > { %4837 = vst [vmem:[%s10817_s29] sm:$0xff] %v4759_v21  ;;  %v4587_v45 = vadd.f32 %v6177_v34, %v4290_v14  ;;  %v4308_v24 = vadd.f32 %v6103_v39, %v4091_v13  ;;  %v4105_v14 = vadd.f32 %v6029_v6, %v10649_v40  ;;  %v4112_v40 = vadd.f32 %v6032_v56, %v10652_v9 }
 0x326   : > { %v6265_v50 = vpop.f32.mrf.mxu1  ;;  %v6179_v3 = vpop.f32.mrf.mxu0  ;;  %v6115_v13 = vadd.f32 %v10725_v12, %v10721_v11  ;;  %v6118_v11 = vadd.f32 %v10733_v4, %v10729_v47 }
 0x327   : > { %v4764_v63 = vadd.f32 %v6257_v60, %v4587_v45  ;;  %v6180_v55 = vadd.f32 %v6179_v3, %v6178_v25  ;;  %v6266_v17 = vadd.f32 %v6265_v50, %v6264_v7  ;;  %v4326_v31 = vadd.f32 %v6109_v10, %v4105_v14 }
 0x328   : > { %v6267_v53 = vpop.f32.mrf.mxu1  ;;  %v6181_v1 = vpop.f32.mrf.mxu0  ;;  %v6112_v45 = vadd.f32 %v10717_v36, %v10713_v16  ;;  %v4119_v7 = vadd.f32 %v6035_v5, %v10655_v37  ;;  %v12072_v5 = vld [vmem:[#allocation90_spill] sm:$0xff] }
 0x329   : > { %4838 = vst [vmem:[%s10817_s29 + $0x8] sm:$0xff] %v4764_v63  ;;  %v4592_v22 = vadd.f32 %v6180_v55, %v4299_v59 }
 0x32a   : > { %v6268_v51 = vpop.f32.mrf.mxu1  ;;  %v6182_v49 = vpop.f32.mrf.mxu0  ;;  %v4335_v50 = vadd.f32 %v6112_v45, %v4112_v40  ;;  %v12073_v45 = vld [vmem:[#allocation73_spill] sm:$0xff] }
 0x32b   : > { %v4769_v32 = vadd.f32 %v6260_v29, %v4592_v22  ;;  %v6183_v62 = vadd.f32 %v6182_v49, %v6181_v1  ;;  %v6269_v35 = vadd.f32 %v6268_v51, %v6267_v53  ;;  %v4344_v53 = vadd.f32 %v6115_v13, %v4119_v7  ;;  %v12063_v51 = vld [vmem:[#allocation95_spill] sm:$0xff]  ;;  %v12064_v49 = vld [vmem:[#allocation29_spill] sm:$0xff]  ;;  %v12075_v7 = vld [vmem:[#allocation94_spill] sm:$0xff] }
 0x32c   : > { %v6270_v43 = vpop.f32.mrf.mxu1  ;;  %v6184_v58 = vpop.f32.mrf.mxu0  ;;  %v4126_v1 = vadd.f32 %v6038_v33, %v10658_v19  ;;  %v6044_v6 = vadd.f32 %v12064_v49, %v12063_v51  ;;  %v12065_v19 = vld [vmem:[#allocation46_spill] sm:$0xff]  ;;  %v12077_v13 = vld [vmem:[#allocation51_spill] sm:$0xff]  ;;  %v12082_v51 = vld [vmem:[#allocation8_spill] sm:$0xff] }
 0x32d   : > { %4839 = vst [vmem:[%s10817_s29 + $0x10] sm:$0xff] %v4769_v32  ;;  %v4597_v15 = vadd.f32 %v6183_v62, %v4308_v24  ;;  %v4133_v62 = vadd.f32 %v6041_v2, %v12065_v19  ;;  %v12080_v2 = vld [vmem:[#allocation88_spill] sm:$0xff] }
 0x32e   : > { %v6271_v0 = vpop.f32.mrf.mxu1  ;;  %v6185_v23 = vpop.f32.mrf.mxu0  ;;  %v4353_v18 = vadd.f32 %v6118_v11, %v4126_v1 }
 0x32f   : > { %v4774_v28 = vadd.f32 %v6263_v41, %v4597_v15  ;;  %v6186_v48 = vadd.f32 %v6185_v23, %v6184_v58  ;;  %v6272_v16 = vadd.f32 %v6271_v0, %v6270_v43  ;;  %v12066_v41 = vld [vmem:[#allocation43_spill] sm:$0xff]  ;;  %v12067_v15 = vld [vmem:[#allocation41_spill] sm:$0xff] }
 0x330   : > { %v6273_v57 = vpop.f32.mrf.mxu1  ;;  %v6187_v26 = vpop.f32.mrf.mxu0  ;;  %v6121_v0 = vadd.f32 %v12067_v15, %v12066_v41 }
 0x331   : > { %4840 = vst [vmem:[%s10817_s29 + $0x18] sm:$0xff] %v4774_v28  ;;  %v4602_v46 = vadd.f32 %v6186_v48, %v4317_v61  ;;  %v12068_v61 = vld [vmem:[#allocation70_spill] sm:$0xff]  ;;  %v12069_v28 = vld [vmem:[#allocation7_spill] sm:$0xff] }
 0x332   : > { %v6274_v21 = vpop.f32.mrf.mxu1  ;;  %v6188_v34 = vpop.f32.mrf.mxu0  ;;  %v4140_v23 = vadd.f32 %v6044_v6, %v12068_v61  ;;  %v12070_v48 = vld [vmem:[#allocation99_spill] sm:$0xff]  ;;  %v4362_v10 = vadd.f32 %v6121_v0, %v4133_v62  ;;  %v12086_v0 = vld [vmem:[#allocation93_spill] sm:$0xff] }
 0x333   : > { %v4779_v25 = vadd.f32 %v6266_v17, %v4602_v46  ;;  %v6189_v30 = vadd.f32 %v6188_v34, %v6187_v26  ;;  %v6275_v12 = vadd.f32 %v6274_v21, %v6273_v57  ;;  %v6047_v57 = vadd.f32 %v12070_v48, %v12069_v28  ;;  %v12071_v46 = vld [vmem:[#allocation45_spill] sm:$0xff]  ;;  %v12088_v48 = vld [vmem:[#allocation87_spill] sm:$0xff] }
 0x334   : > { %v6276_v44 = vpop.f32.mrf.mxu1  ;;  %v6190_v60 = vpop.f32.mrf.mxu0  ;;  %v6124_v21 = vadd.f32 %v12072_v5, %v12071_v46 }
 0x335   : > { %4841 = vst [vmem:[%s10817_s29 + $0x20] sm:$0xff] %v4779_v25  ;;  %v4607_v8 = vadd.f32 %v6189_v30, %v4326_v31 }
 0x336   : > { %v6277_v38 = vpop.f32.mrf.mxu1  ;;  %v6191_v54 = vpop.f32.mrf.mxu0 }
 0x337   : > { %v4784_v9 = vadd.f32 %v6269_v35, %v4607_v8  ;;  %v6192_v3 = vadd.f32 %v6191_v54, %v6190_v60  ;;  %v6278_v47 = vadd.f32 %v6277_v38, %v6276_v44  ;;  %v4371_v44 = vadd.f32 %v6124_v21, %v4140_v23  ;;  %v12074_v8 = vld [vmem:[#allocation11_spill] sm:$0xff] }
 0x338   : > { %v6279_v63 = vpop.f32.mrf.mxu1  ;;  %v6193_v59 = vpop.f32.mrf.mxu0  ;;  %v4147_v35 = vadd.f32 %v6047_v57, %v12073_v45  ;;  %v6050_v38 = vadd.f32 %v12075_v7, %v12074_v8  ;;  %v12093_v45 = vld [vmem:[#allocation89_spill] sm:$0xff] }
 0x339   : > { %4842 = vst [vmem:[%s10817_s29 + $0x28] sm:$0xff] %v4784_v9  ;;  %v4612_v36 = vadd.f32 %v6192_v3, %v4335_v50  ;;  %v12076_v3 = vld [vmem:[#allocation91_spill] sm:$0xff] }
 0x33a   : > { %v6280_v55 = vpop.f32.mrf.mxu1  ;;  %v6194_v37 = vpop.f32.mrf.mxu0 }
 0x33b   : > { %v4789_v27 = vadd.f32 %v6272_v16, %v4612_v36  ;;  %v6195_v39 = vadd.f32 %v6194_v37, %v6193_v59  ;;  %v6281_v25 = vadd.f32 %v6280_v55, %v6279_v63  ;;  %v6127_v59 = vadd.f32 %v12077_v13, %v12076_v3  ;;  %v12078_v36 = vld [vmem:[#allocation12_spill] sm:$0xff] }
 0x33c   : > { %v6282_v29 = vpop.f32.mrf.mxu1  ;;  %v6196_v22 = vpop.f32.mrf.mxu0  ;;  %v12079_v55 = vld [vmem:[#allocation96_spill] sm:$0xff] }
 0x33d   : > { %4843 = vst [vmem:[%s10817_s29 + $0x30] sm:$0xff] %v4789_v27  ;;  %v4617_v52 = vadd.f32 %v6195_v39, %v4344_v53  ;;  %v6053_v53 = vadd.f32 %v12079_v55, %v12078_v36  ;;  %v4154_v27 = vadd.f32 %v6050_v38, %v12080_v2 }
 0x33e   : > { %v6283_v32 = vpop.f32.mrf.mxu1  ;;  %v6197_v24 = vpop.f32.mrf.mxu0 }
 0x33f   : > { %v4794_v20 = vadd.f32 %v6275_v12, %v4617_v52  ;;  %v6198_v42 = vadd.f32 %v6197_v24, %v6196_v22  ;;  %v6284_v16 = vadd.f32 %v6283_v32, %v6282_v29  ;;  %v4380_v22 = vadd.f32 %v6127_v59, %v4147_v35  ;;  %v12081_v52 = vld [vmem:[#allocation6_spill] sm:$0xff]  ;;  %v12083_v32 = vld [vmem:[#allocation92_spill] sm:$0xff] }
 0x340   : > { %v6285_v43 = vpop.f32.mrf.mxu1  ;;  %v6199_v58 = vpop.f32.mrf.mxu0  ;;  %v6130_v49 = vadd.f32 %v12082_v51, %v12081_v52  ;;  %v4161_v24 = vadd.f32 %v6053_v53, %v12083_v32 }
 0x341   : > { %4844 = vst [vmem:[%s10817_s29 + $0x38] sm:$0xff] %v4794_v20  ;;  %v4622_v4 = vadd.f32 %v6198_v42, %v4353_v18  ;;  %v12084_v20 = vld [vmem:[#allocation97_spill] sm:$0xff] }
 0x342   : > { %v6286_v14 = vpop.f32.mrf.mxu1  ;;  %v6200_v56 = vpop.f32.mrf.mxu0  ;;  %v12085_v18 = vld [vmem:[#allocation57_spill] sm:$0xff]  ;;  %v4389_v41 = vadd.f32 %v6130_v49, %v4154_v27 }
 0x343   : > { %v4799_v26 = vadd.f32 %v6278_v47, %v4622_v4  ;;  %v6201_v17 = vadd.f32 %v6200_v56, %v6199_v58  ;;  %v6287_v6 = vadd.f32 %v6286_v14, %v6285_v43  ;;  %v6056_v42 = vadd.f32 %v12085_v18, %v12084_v20  ;;  %v12087_v47 = vld [vmem:[#allocation52_spill] sm:$0xff] }
 0x344   : > { %v6288_v34 = vpop.f32.mrf.mxu1  ;;  %v6202_v40 = vpop.f32.mrf.mxu0  ;;  %v6133_v4 = vadd.f32 %v12087_v47, %v12086_v0 }
 0x345   : > { %4845 = vst [vmem:[%s10817_s29 + $0x40] sm:$0xff] %v4799_v26  ;;  %v4627_v31 = vadd.f32 %v6201_v17, %v4362_v10  ;;  %v4168_v57 = vadd.f32 %v6056_v42, %v12088_v48  ;;  %v12089_v26 = vld [vmem:[#allocation13_spill] sm:$0xff]  ;;  %v12090_v10 = vld [vmem:[#allocation18_spill] sm:$0xff] }
 0x346   : > { %v6289_v30 = vpop.f32.mrf.mxu1  ;;  %v6203_v60 = vpop.f32.mrf.mxu0  ;;  %v4398_v56 = vadd.f32 %v6133_v4, %v4161_v24  ;;  %v6059_v17 = vadd.f32 %v12090_v10, %v12089_v26 }
 0x347   : > { %v4804_v54 = vadd.f32 %v6281_v25, %v4627_v31  ;;  %v6204_v33 = vadd.f32 %v6203_v60, %v6202_v40  ;;  %v6290_v23 = vadd.f32 %v6289_v30, %v6288_v34  ;;  %v12091_v40 = vld [vmem:[#allocation54_spill] sm:$0xff]  ;;  %v12092_v25 = vld [vmem:[#allocation35_spill] sm:$0xff] }
 0x348   : > { %v6291_v9 = vpop.f32.mrf.mxu1  ;;  %v6205_v50 = vpop.f32.mrf.mxu0  ;;  %v6136_v31 = vadd.f32 %v12092_v25, %v12091_v40  ;;  %v4175_v35 = vadd.f32 %v6059_v17, %v12093_v45 }
 0x349   : > { %4846 = vst [vmem:[%s10817_s29 + $0x48] sm:$0xff] %v4804_v54  ;;  %v4632_v63 = vadd.f32 %v6204_v33, %v4371_v44  ;;  %v12094_v33 = vld [vmem:[#allocation15_spill] sm:$0xff] }
 0x34a   : > { %v6292_v37 = vpop.f32.mrf.mxu1  ;;  %v6206_v1 = vpop.f32.mrf.mxu0  ;;  %v4407_v7 = vadd.f32 %v6136_v31, %v4168_v57 }
 0x34b   : > { %v4809_v39 = vadd.f32 %v6284_v16, %v4632_v63  ;;  %v6207_v11 = vadd.f32 %v6206_v1, %v6205_v50  ;;  %v6293_v44 = vadd.f32 %v6292_v37, %v6291_v9  ;;  %v12095_v50 = vld [vmem:[#allocation56_spill] sm:$0xff] }
 0x34c   : > { %v6208_v12 = vpop.f32.mrf.mxu0  ;;  %v6294_v19 = vpop.f32.mrf.mxu1  ;;  %v6139_v3 = vadd.f32 %v12095_v50, %v12094_v33 }
 0x34d   : > { %4847 = vst [vmem:[%s10817_s29 + $0x50] sm:$0xff] %v4809_v39  ;;  %v4637_v29 = vadd.f32 %v6207_v11, %v4380_v22 }
 0x34e   : > { %v6209_v62 = vpop.f32.mrf.mxu0  ;;  %v6295_v14 = vpop.f32.mrf.mxu1  ;;  %v4416_v36 = vadd.f32 %v6139_v3, %v4175_v35 }
 0x34f   : > { %v4814_v58 = vadd.f32 %v6287_v6, %v4637_v29  ;;  %v6210_v15 = vadd.f32 %v6209_v62, %v6208_v12  ;;  %v6296_v13 = vadd.f32 %v6295_v14, %v6294_v19 }
 0x350   : > { %v6211_v61 = vpop.f32.mrf.mxu0  ;;  %v6297_v30 = vpop.f32.mrf.mxu1 }
 0x351   : > { %4848 = vst [vmem:[%s10817_s29 + $0x58] sm:$0xff] %v4814_v58  ;;  %v4642_v43 = vadd.f32 %v6210_v15, %v4389_v41 }
 0x352   : > { %v6212_v28 = vpop.f32.mrf.mxu0  ;;  %v6298_v59 = vpop.f32.mrf.mxu1 }
 0x353   : > { %v4819_v46 = vadd.f32 %v6290_v23, %v4642_v43  ;;  %v6213_v5 = vadd.f32 %v6212_v28, %v6211_v61  ;;  %v6299_v53 = vadd.f32 %v6298_v59, %v6297_v30 }
 0x354   : > { %v6214_v21 = vpop.f32.mrf.mxu0 }
 0x355   : > { %4849 = vst [vmem:[%s10817_s29 + $0x60] sm:$0xff] %v4819_v46  ;;  %v4647_v34 = vadd.f32 %v6213_v5, %v4398_v56 }
 0x356   : > { %v6215_v60 = vpop.f32.mrf.mxu0 }
 0x357   : > { %v4824_v8 = vadd.f32 %v6293_v44, %v4647_v34  ;;  %v6216_v38 = vadd.f32 %v6215_v60, %v6214_v21 }
 0x358   : > { %v6217_v54 = vpop.f32.mrf.mxu0 }
 0x359   : > { %4850 = vst [vmem:[%s10817_s29 + $0x68] sm:$0xff] %v4824_v8  ;;  %v4652_v9 = vadd.f32 %v6216_v38, %v4407_v7 }
 0x35a   : > { %v6218_v16 = vpop.f32.mrf.mxu0 }
 0x35b   : > { %v4829_v63 = vadd.f32 %v6296_v13, %v4652_v9  ;;  %v6219_v55 = vadd.f32 %v6218_v16, %v6217_v54 }
 0x35d   : > { %4851 = vst [vmem:[%s10817_s29 + $0x70] sm:$0xff] %v4829_v63  ;;  %v4657_v37 = vadd.f32 %v6219_v55, %v4416_v36 }
 0x35f   : > { %v4834_v1 = vadd.f32 %v6299_v53, %v4657_v37 }
 0x361   : > { %4852 = vst [vmem:[%s10817_s29 + $0x78] sm:$0xff] %v4834_v1 }
 0x362   : > { %6599 = shalt.err (!%p6596_p3)
}
 0x363   : > { %s6600_s12 = scalar_lea.hbm %s10902_s8, 2048  ;;  %s6604_s20 = scalar_lea.hbm %s10953_s4, 4096 }
 0x364   : > { %p6601_p4 = scmp.ne.s32.totalorder %s10902_s8, %s6600_s12  ;;  %p6605_p9 = scmp.lt.s32.totalorder %s10902_s8, %s10953_s4 }
 0x365   : > { %p6606_p10 = scmp.lt.s32.totalorder %s6604_s20, %s6600_s12 }
 0x366   : > { %p6602_p7 = pnand %p6601_p4, %p6717_p5 }
 0x367   : > { %p6607_p11 = por %p6606_p10, %p6605_p9 }
 0x368   : > { %p6603_p8 = pneg %p6602_p7 }
 0x36a   : > { %p6608_p12 = pnand %p6607_p11, %p6603_p8 }
 0x36c   : > { %6611 = shalt.err (!%p6608_p12)
}
 0x36d   : > { %s6652_s28 = smov 128   ;;  %s6653_s29 = smov 8  }
 0x36e   : > { %6540 = dma.vmem_to_hbm [thread:$0]  (%p6717_p5), %s10904_s5, 2048, %s10902_s8, %s10909_s27, %s6652_s28, %s6652_s28, %s6653_s29  }
 0x36f PF: > { %p6546_p13 = scmp.ge.s32.totalorder %s6646_s18, 2  ;;  %s4882_s30 = sand.u32 1, %s6634_s15  }
 0x370   : > { %s4883_s6 = scalar_lea.sflag [#allocation3], %s4882_s30 }
 0x371   : > { %p6543_p0 = pnand %p6546_p13, %p6721_p6 }
 0x373   : > { %p6544_p1 = pneg %p6543_p0 }
 0x375   : > { %6629 = dma.done.wait (%p6544_p1), %s4883_s6, 2048  }
 0x376   : > { %6631 = vsyncadd (%p6544_p1), %s4883_s6, 4294965248  ;;  %p14_p2 = scmp.ge.s32.totalorder %s6704_s21, 4   ;;  %s12096_s15 = smov %s6638_s16 }
 0x377   : > { %s12097_s16 = smov %s6642_s17  ;;  %s12098_s17 = smov %s6715_s24 }
 0x378   : > { %s12099_s18 = smov %s6704_s21  ;;  %16 = sbr.rel (!%p14_p2) target bundleno = 3 (0x3), region = 74 }
 0x37d   :  { %4888 = vsyncpa [#allocation3], 1 }
 0x37e   :  { %4890 = vsyncpa [#allocation3 + $0x1], 1 }

</bundles_post_ra>
